<compile_context>
chip_gen: v7x
topology: tpu7x:2x2x1
jax: 0.10.0
libtpu: 0.0.40
codegen_flags: <defaults>
</compile_context>

<pallas_src>
import functools

import jax
import jax.numpy as jnp
from jax.experimental import pallas as pl
from jax.experimental.pallas import tpu as pltpu

K = 3  # every conv and every maxpool in this model uses kernel_size=3


def _cnn_fused_kernel(*refs, block_dims):
  """Fused forward pass for one batch element.

  refs layout:
    refs[0]        x_ref               (Lin, 1) f32 channels-last input
    refs[1:17]     w1,b1,...,w8,b8     conv weights (K, Cin, Cout) / biases (1, Cout)
                                       (w1 f32 for the VPU path, w2..w8 bf16)
    refs[17:19]    fc_w (1,64) f32, fc_b (1,1) f32
    refs[19]       o_ref (1, 1) f32
    refs[20:]      12 VMEM scratches: per block h1 (L1,Cmid), h2 (L2,Cout), p (Lp,Cout)
  """
  x_ref = refs[0]
  conv_refs = refs[1:17]
  wfc_ref = refs[17]
  bfc_ref = refs[18]
  o_ref = refs[19]
  scr = refs[20:]
  assert len(scr) == 3 * len(block_dims)

  def conv_relu(src_ref, w_ref, b_ref, dst_ref, l_out, use_mxu):
    # VALID conv1d(kernel=3) as 3 shifted-tap contractions, f32 accumulate.
    src = src_ref[...]                                       # (l_out + 2, Cin)
    if use_mxu:
      src = src.astype(jnp.bfloat16)                         # single cast per conv
    acc = jnp.zeros(dst_ref.shape, jnp.float32)
    for k in range(K):
      xk = src[k:k + l_out, :]                               # (l_out, Cin), static slice
      if use_mxu:
        acc = acc + jnp.dot(xk, w_ref[k],
                            preferred_element_type=jnp.float32)
      else:
        # Cin == 1: (l_out, 1) * (1, Cout) broadcast on the VPU.
        acc = acc + xk * w_ref[k]
    dst_ref[...] = jnp.maximum(acc + b_ref[...], 0.0)

  def pool3(src_ref, dst_ref, l_pool):
    # MaxPool1d(kernel=3, stride=3), floor semantics, via stride-3 sublane reads.
    p01 = jnp.maximum(src_ref[pl.ds(0, l_pool, stride=3), :],
                      src_ref[pl.ds(1, l_pool, stride=3), :])
    dst_ref[...] = jnp.maximum(p01, src_ref[pl.ds(2, l_pool, stride=3), :])

  src = x_ref
  for blk in range(len(block_dims)):
    l1, l2, lp = block_dims[blk]
    w_a, b_a, w_b, b_b = conv_refs[4 * blk:4 * blk + 4]
    h1, h2, pooled = scr[3 * blk:3 * blk + 3]
    conv_relu(src, w_a, b_a, h1, l1, use_mxu=(blk != 0))
    conv_relu(h1, w_b, b_b, h2, l2, use_mxu=True)
    pool3(h2, pooled, lp)
    src = pooled

  # Flatten (spatial length is 1 here) + Linear(64, 1), fused.
  feat = src[...]                                            # (1, 64)
  o_ref[...] = (jnp.sum(feat * wfc_ref[...], axis=-1, keepdims=True)
                + bfc_ref[...])


def cnn_forward_pallas(x_ncl, params):
  """x_ncl: (N, 1, Lin) like torch.  Returns (N, 1) f32."""
  N, Cin, Lin = x_ncl.shape
  assert Cin == 1
  x = jnp.transpose(x_ncl, (0, 2, 1))                        # NCL -> NLC (N, Lin, 1)

  kconvs = params["kconvs"]
  assert len(kconvs) == 8

  # Static per-block spatial dims + VMEM scratch plan.
  block_dims, scratch_shapes = [], []
  L = Lin
  for blk in range(4):
    w_a, _ = kconvs[2 * blk]
    w_b, _ = kconvs[2 * blk + 1]
    cmid, cout = w_a.shape[2], w_b.shape[2]
    l1 = L - (K - 1)
    l2 = l1 - (K - 1)
    lp = (l2 - K) // K + 1                                   # PyTorch floor pooling
    block_dims.append((l1, l2, lp))
    scratch_shapes += [pltpu.VMEM((l1, cmid), jnp.float32),
                       pltpu.VMEM((l2, cout), jnp.float32),
                       pltpu.VMEM((lp, cout), jnp.float32)]
    L = lp
  assert L == 1, "spatial length must reduce to 1 before Flatten + Linear(64, 1)"

  inputs = [x]
  in_specs = [pl.BlockSpec((None, Lin, 1), lambda n: (n, 0, 0))]
  for w, b in kconvs:
    inputs += [w, b]
    in_specs += [pl.BlockSpec(w.shape, lambda n: (0, 0, 0)),
                 pl.BlockSpec(b.shape, lambda n: (0, 0))]
  inputs += [params["fc_w"], params["fc_b"]]
  in_specs += [pl.BlockSpec(params["fc_w"].shape, lambda n: (0, 0)),
               pl.BlockSpec(params["fc_b"].shape, lambda n: (0, 0))]

  kernel = functools.partial(_cnn_fused_kernel, block_dims=tuple(block_dims))
  out = pl.pallas_call(
      kernel,
      out_shape=jax.ShapeDtypeStruct((N, 1, 1), jnp.float32),
      grid=(N,),
      in_specs=in_specs,
      out_specs=pl.BlockSpec((None, 1, 1), lambda n: (n, 0, 0)),
      scratch_shapes=scratch_shapes,
      compiler_params=pltpu.CompilerParams(dimension_semantics=("parallel",)),
  )(*inputs)
  return out.reshape(N, 1)


# ---------------- pure-JAX f32 reference (for a correctness check) -----------
def cnn_forward_reference(x_ncl, params):
  def conv_relu(x, w, b):
    y = jax.lax.conv_general_dilated(
        x, w, window_strides=(1,), padding="VALID",
        dimension_numbers=("NCH", "OIH", "NCH"), precision="highest")
    return jax.nn.relu(y + b[None, :, None])

  def maxpool3(x):
    N, C, L = x.shape
    Lp = (L - 3) // 3 + 1
    return jnp.max(x[:, :, :3 * Lp].reshape(N, C, Lp, 3), axis=-1)

  h = x_ncl
  for i, (w, b) in enumerate(params["convs"]):
    h = conv_relu(h, w, b)
    if i % 2 == 1:
      h = maxpool3(h)
  h = h.reshape(h.shape[0], -1)
  return h @ params["fc_w"].T + params["fc_b"]


# ---------------- deterministic synthetic parameters -------------------------
def init_params(key):
  chans = [(1, 16), (16, 16), (16, 64), (64, 64),
           (64, 128), (128, 128), (128, 64), (64, 64)]
  convs, kconvs = [], []
  for idx, (ci, co) in enumerate(chans):
    key, kw, kb = jax.random.split(key, 3)
    std = (2.0 / (ci * K)) ** 0.5
    w = jax.random.normal(kw, (co, ci, K), jnp.float32) * std   # torch (Co, Ci, K)
    b = jax.random.normal(kb, (co,), jnp.float32) * 0.05
    convs.append((w, b))
    wk = jnp.transpose(w, (2, 1, 0))                            # (K, Ci, Co)
    if idx != 0:                                                # MXU convs take bf16 weights
      wk = wk.astype(jnp.bfloat16)
    kconvs.append((wk, b.reshape(1, co)))
  key, kw, kb = jax.random.split(key, 3)
  fc_w = jax.random.normal(kw, (1, 64), jnp.float32) * (1.0 / 64) ** 0.5
  fc_b = jax.random.normal(kb, (1,), jnp.float32) * 0.05
  return {"convs": convs, "kconvs": kconvs,
          "fc_w": fc_w, "fc_b": fc_b.reshape(1, 1)}


if __name__ == "__main__":
  key = jax.random.PRNGKey(0)
  kparam, kx = jax.random.split(key)
  params = init_params(kparam)
  # L=241 is the smallest sequence length for which 8x conv(k=3) + 4x
  # maxpool(k=3,s=3) ends at spatial length 1, as required by Flatten->Linear(64,1).
  x = jax.random.normal(kx, (2, 1, 241), jnp.float32)           # (N, C=1, L), like torch

  fwd = jax.jit(cnn_forward_pallas)
  out = jax.block_until_ready(fwd(x, params))
  ref = jax.block_until_ready(cnn_forward_reference(x, params))

  assert out.shape == (2, 1), out.shape
  # Tolerance widened vs. the f32-HIGHEST reference because the kernel uses
  # single-pass bf16 MXU matmuls (f32 accumulation).
  assert jnp.allclose(out, ref, rtol=5e-2, atol=1e-1), (out, ref)
  print("KERNEL_OK")
</pallas_src>

<mosaic_0001>
module attributes {stable_mosaic.version = 11 : i64} {
  func.func @_cnn_fused_kernel(%arg0: i32, %arg1: memref<1x241x1xf32, #tpu.memory_space<vmem>>, %arg2: memref<3x1x16xf32, #tpu.memory_space<vmem>>, %arg3: memref<1x16xf32, #tpu.memory_space<vmem>>, %arg4: memref<3x16x16xbf16, #tpu.memory_space<vmem>>, %arg5: memref<1x16xf32, #tpu.memory_space<vmem>>, %arg6: memref<3x16x64xbf16, #tpu.memory_space<vmem>>, %arg7: memref<1x64xf32, #tpu.memory_space<vmem>>, %arg8: memref<3x64x64xbf16, #tpu.memory_space<vmem>>, %arg9: memref<1x64xf32, #tpu.memory_space<vmem>>, %arg10: memref<3x64x128xbf16, #tpu.memory_space<vmem>>, %arg11: memref<1x128xf32, #tpu.memory_space<vmem>>, %arg12: memref<3x128x128xbf16, #tpu.memory_space<vmem>>, %arg13: memref<1x128xf32, #tpu.memory_space<vmem>>, %arg14: memref<3x128x64xbf16, #tpu.memory_space<vmem>>, %arg15: memref<1x64xf32, #tpu.memory_space<vmem>>, %arg16: memref<3x64x64xbf16, #tpu.memory_space<vmem>>, %arg17: memref<1x64xf32, #tpu.memory_space<vmem>>, %arg18: memref<1x64xf32, #tpu.memory_space<vmem>>, %arg19: memref<1x1xf32, #tpu.memory_space<vmem>>, %arg20: memref<1x1x1xf32, #tpu.memory_space<vmem>>, %arg21: memref<239x16xf32, #tpu.memory_space<vmem>>, %arg22: memref<237x16xf32, #tpu.memory_space<vmem>>, %arg23: memref<79x16xf32, #tpu.memory_space<vmem>>, %arg24: memref<77x64xf32, #tpu.memory_space<vmem>>, %arg25: memref<75x64xf32, #tpu.memory_space<vmem>>, %arg26: memref<25x64xf32, #tpu.memory_space<vmem>>, %arg27: memref<23x128xf32, #tpu.memory_space<vmem>>, %arg28: memref<21x128xf32, #tpu.memory_space<vmem>>, %arg29: memref<7x128xf32, #tpu.memory_space<vmem>>, %arg30: memref<5x64xf32, #tpu.memory_space<vmem>>, %arg31: memref<3x64xf32, #tpu.memory_space<vmem>>, %arg32: memref<1x64xf32, #tpu.memory_space<vmem>>) attributes {dimension_semantics = [#tpu.dimension_semantics<parallel>], iteration_bounds = array<i64: 2>, scalar_prefetch = 0 : i64, scratch_operands = 12 : i64, tpu.core_type = #tpu.core_type<tc>, window_params = [{transform_indices = @transform_0, window_bounds = array<i64: 1, 241, 1>}, {pipeline_mode = #tpu.pipeline_mode<synchronous>, transform_indices = @transform_1, window_bounds = array<i64: 3, 1, 16>}, {pipeline_mode = #tpu.pipeline_mode<synchronous>, transform_indices = @transform_2, window_bounds = array<i64: 1, 16>}, {pipeline_mode = #tpu.pipeline_mode<synchronous>, transform_indices = @transform_3, window_bounds = array<i64: 3, 16, 16>}, {pipeline_mode = #tpu.pipeline_mode<synchronous>, transform_indices = @transform_4, window_bounds = array<i64: 1, 16>}, {pipeline_mode = #tpu.pipeline_mode<synchronous>, transform_indices = @transform_5, window_bounds = array<i64: 3, 16, 64>}, {pipeline_mode = #tpu.pipeline_mode<synchronous>, transform_indices = @transform_6, window_bounds = array<i64: 1, 64>}, {pipeline_mode = #tpu.pipeline_mode<synchronous>, transform_indices = @transform_7, window_bounds = array<i64: 3, 64, 64>}, {pipeline_mode = #tpu.pipeline_mode<synchronous>, transform_indices = @transform_8, window_bounds = array<i64: 1, 64>}, {pipeline_mode = #tpu.pipeline_mode<synchronous>, transform_indices = @transform_9, window_bounds = array<i64: 3, 64, 128>}, {pipeline_mode = #tpu.pipeline_mode<synchronous>, transform_indices = @transform_10, window_bounds = array<i64: 1, 128>}, {pipeline_mode = #tpu.pipeline_mode<synchronous>, transform_indices = @transform_11, window_bounds = array<i64: 3, 128, 128>}, {pipeline_mode = #tpu.pipeline_mode<synchronous>, transform_indices = @transform_12, window_bounds = array<i64: 1, 128>}, {pipeline_mode = #tpu.pipeline_mode<synchronous>, transform_indices = @transform_13, window_bounds = array<i64: 3, 128, 64>}, {pipeline_mode = #tpu.pipeline_mode<synchronous>, transform_indices = @transform_14, window_bounds = array<i64: 1, 64>}, {pipeline_mode = #tpu.pipeline_mode<synchronous>, transform_indices = @transform_15, window_bounds = array<i64: 3, 64, 64>}, {pipeline_mode = #tpu.pipeline_mode<synchronous>, transform_indices = @transform_16, window_bounds = array<i64: 1, 64>}, {pipeline_mode = #tpu.pipeline_mode<synchronous>, transform_indices = @transform_17, window_bounds = array<i64: 1, 64>}, {pipeline_mode = #tpu.pipeline_mode<synchronous>, transform_indices = @transform_18, window_bounds = array<i64: 1, 1>}, {transform_indices = @transform_19, window_bounds = array<i64: 1, 1, 1>}]} {
    %c0 = arith.constant 0 : index
    %c0_0 = arith.constant 0 : index
    %c0_1 = arith.constant 0 : index
    %0 = vector.load %arg1[%c0, %c0_0, %c0_1] : memref<1x241x1xf32, #tpu.memory_space<vmem>>, vector<1x241x1xf32>
    %1 = vector.shape_cast %0 : vector<1x241x1xf32> to vector<241x1xf32>
    %cst = arith.constant 0.000000e+00 : f32
    %2 = vector.broadcast %cst : f32 to vector<239x16xf32>
    %3 = vector.extract_strided_slice %1 {offsets = [0, 0], sizes = [239, 1], strides = [1, 1]} : vector<241x1xf32> to vector<239x1xf32>
    %c0_2 = arith.constant 0 : index
    %c0_3 = arith.constant 0 : index
    %c0_4 = arith.constant 0 : index
    %4 = vector.load %arg2[%c0_2, %c0_3, %c0_4] : memref<3x1x16xf32, #tpu.memory_space<vmem>>, vector<1x1x16xf32>
    %5 = vector.shape_cast %4 : vector<1x1x16xf32> to vector<1x16xf32>
    %6 = vector.broadcast %3 : vector<239x1xf32> to vector<239x16xf32>
    %7 = vector.broadcast %5 : vector<1x16xf32> to vector<239x16xf32>
    %8 = arith.mulf %6, %7 : vector<239x16xf32>
    %9 = arith.addf %2, %8 : vector<239x16xf32>
    %10 = vector.extract_strided_slice %1 {offsets = [1, 0], sizes = [239, 1], strides = [1, 1]} : vector<241x1xf32> to vector<239x1xf32>
    %c1 = arith.constant 1 : index
    %c0_5 = arith.constant 0 : index
    %c0_6 = arith.constant 0 : index
    %11 = vector.load %arg2[%c1, %c0_5, %c0_6] : memref<3x1x16xf32, #tpu.memory_space<vmem>>, vector<1x1x16xf32>
    %12 = vector.shape_cast %11 : vector<1x1x16xf32> to vector<1x16xf32>
    %13 = vector.broadcast %10 : vector<239x1xf32> to vector<239x16xf32>
    %14 = vector.broadcast %12 : vector<1x16xf32> to vector<239x16xf32>
    %15 = arith.mulf %13, %14 : vector<239x16xf32>
    %16 = arith.addf %9, %15 : vector<239x16xf32>
    %17 = vector.extract_strided_slice %1 {offsets = [2, 0], sizes = [239, 1], strides = [1, 1]} : vector<241x1xf32> to vector<239x1xf32>
    %c2 = arith.constant 2 : index
    %c0_7 = arith.constant 0 : index
    %c0_8 = arith.constant 0 : index
    %18 = vector.load %arg2[%c2, %c0_7, %c0_8] : memref<3x1x16xf32, #tpu.memory_space<vmem>>, vector<1x1x16xf32>
    %19 = vector.shape_cast %18 : vector<1x1x16xf32> to vector<1x16xf32>
    %20 = vector.broadcast %17 : vector<239x1xf32> to vector<239x16xf32>
    %21 = vector.broadcast %19 : vector<1x16xf32> to vector<239x16xf32>
    %22 = arith.mulf %20, %21 : vector<239x16xf32>
    %23 = arith.addf %16, %22 : vector<239x16xf32>
    %c0_9 = arith.constant 0 : index
    %c0_10 = arith.constant 0 : index
    %24 = vector.load %arg3[%c0_9, %c0_10] : memref<1x16xf32, #tpu.memory_space<vmem>>, vector<1x16xf32>
    %25 = vector.broadcast %24 : vector<1x16xf32> to vector<239x16xf32>
    %26 = arith.addf %23, %25 : vector<239x16xf32>
    %cst_11 = arith.constant 0.000000e+00 : f32
    %27 = vector.broadcast %cst_11 : f32 to vector<239x16xf32>
    %28 = arith.maximumf %26, %27 : vector<239x16xf32>
    %c0_12 = arith.constant 0 : index
    %c0_13 = arith.constant 0 : index
    %29 = vector.load %arg21[%c0_12, %c0_13] : memref<239x16xf32, #tpu.memory_space<vmem>>, vector<239x16xf32>
    tpu.vector_store %arg21[%c0_12, %c0_13], %28 {strides = array<i32>} : memref<239x16xf32, #tpu.memory_space<vmem>>, vector<239x16xf32>,
    %c0_14 = arith.constant 0 : index
    %c0_15 = arith.constant 0 : index
    %30 = vector.load %arg21[%c0_14, %c0_15] : memref<239x16xf32, #tpu.memory_space<vmem>>, vector<239x16xf32>
    %31 = arith.truncf %30 : vector<239x16xf32> to vector<239x16xbf16>
    %cst_16 = arith.constant 0.000000e+00 : f32
    %32 = vector.broadcast %cst_16 : f32 to vector<237x16xf32>
    %33 = vector.extract_strided_slice %31 {offsets = [0, 0], sizes = [237, 16], strides = [1, 1]} : vector<239x16xbf16> to vector<237x16xbf16>
    %c0_17 = arith.constant 0 : index
    %c0_18 = arith.constant 0 : index
    %c0_19 = arith.constant 0 : index
    %34 = vector.load %arg4[%c0_17, %c0_18, %c0_19] : memref<3x16x16xbf16, #tpu.memory_space<vmem>>, vector<1x16x16xbf16>
    %35 = vector.shape_cast %34 : vector<1x16x16xbf16> to vector<16x16xbf16>
    %cst_20 = arith.constant dense<0.000000e+00> : vector<237x16xf32>
    %36 = tpu.matmul %33, %35, %cst_20 {dimension_numbers = #tpu.dot_dimension_numbers<[1], [0], [0], [1], [0, 0, 1, 1], [], []>} : vector<237x16xbf16>, vector<16x16xbf16>, vector<237x16xf32> -> vector<237x16xf32>
    %37 = arith.addf %32, %36 : vector<237x16xf32>
    %38 = vector.extract_strided_slice %31 {offsets = [1, 0], sizes = [237, 16], strides = [1, 1]} : vector<239x16xbf16> to vector<237x16xbf16>
    %c1_21 = arith.constant 1 : index
    %c0_22 = arith.constant 0 : index
    %c0_23 = arith.constant 0 : index
    %39 = vector.load %arg4[%c1_21, %c0_22, %c0_23] : memref<3x16x16xbf16, #tpu.memory_space<vmem>>, vector<1x16x16xbf16>
    %40 = vector.shape_cast %39 : vector<1x16x16xbf16> to vector<16x16xbf16>
    %cst_24 = arith.constant dense<0.000000e+00> : vector<237x16xf32>
    %41 = tpu.matmul %38, %40, %cst_24 {dimension_numbers = #tpu.dot_dimension_numbers<[1], [0], [0], [1], [0, 0, 1, 1], [], []>} : vector<237x16xbf16>, vector<16x16xbf16>, vector<237x16xf32> -> vector<237x16xf32>
    %42 = arith.addf %37, %41 : vector<237x16xf32>
    %43 = vector.extract_strided_slice %31 {offsets = [2, 0], sizes = [237, 16], strides = [1, 1]} : vector<239x16xbf16> to vector<237x16xbf16>
    %c2_25 = arith.constant 2 : index
    %c0_26 = arith.constant 0 : index
    %c0_27 = arith.constant 0 : index
    %44 = vector.load %arg4[%c2_25, %c0_26, %c0_27] : memref<3x16x16xbf16, #tpu.memory_space<vmem>>, vector<1x16x16xbf16>
    %45 = vector.shape_cast %44 : vector<1x16x16xbf16> to vector<16x16xbf16>
    %cst_28 = arith.constant dense<0.000000e+00> : vector<237x16xf32>
    %46 = tpu.matmul %43, %45, %cst_28 {dimension_numbers = #tpu.dot_dimension_numbers<[1], [0], [0], [1], [0, 0, 1, 1], [], []>} : vector<237x16xbf16>, vector<16x16xbf16>, vector<237x16xf32> -> vector<237x16xf32>
    %47 = arith.addf %42, %46 : vector<237x16xf32>
    %c0_29 = arith.constant 0 : index
    %c0_30 = arith.constant 0 : index
    %48 = vector.load %arg5[%c0_29, %c0_30] : memref<1x16xf32, #tpu.memory_space<vmem>>, vector<1x16xf32>
    %49 = vector.broadcast %48 : vector<1x16xf32> to vector<237x16xf32>
    %50 = arith.addf %47, %49 : vector<237x16xf32>
    %cst_31 = arith.constant 0.000000e+00 : f32
    %51 = vector.broadcast %cst_31 : f32 to vector<237x16xf32>
    %52 = arith.maximumf %50, %51 : vector<237x16xf32>
    %c0_32 = arith.constant 0 : index
    %c0_33 = arith.constant 0 : index
    %53 = vector.load %arg22[%c0_32, %c0_33] : memref<237x16xf32, #tpu.memory_space<vmem>>, vector<237x16xf32>
    tpu.vector_store %arg22[%c0_32, %c0_33], %52 {strides = array<i32>} : memref<237x16xf32, #tpu.memory_space<vmem>>, vector<237x16xf32>,
    %c0_34 = arith.constant 0 : index
    %c0_35 = arith.constant 0 : index
    %54 = tpu.strided_load %arg22[%c0_34, %c0_35] {strides = array<i32: 3, 1>} : memref<237x16xf32, #tpu.memory_space<vmem>>, vector<79x16xf32>
    %c1_36 = arith.constant 1 : index
    %c0_37 = arith.constant 0 : index
    %55 = tpu.strided_load %arg22[%c1_36, %c0_37] {strides = array<i32: 3, 1>} : memref<237x16xf32, #tpu.memory_space<vmem>>, vector<79x16xf32>
    %56 = arith.maximumf %54, %55 : vector<79x16xf32>
    %c2_38 = arith.constant 2 : index
    %c0_39 = arith.constant 0 : index
    %57 = tpu.strided_load %arg22[%c2_38, %c0_39] {strides = array<i32: 3, 1>} : memref<237x16xf32, #tpu.memory_space<vmem>>, vector<79x16xf32>
    %58 = arith.maximumf %56, %57 : vector<79x16xf32>
    %c0_40 = arith.constant 0 : index
    %c0_41 = arith.constant 0 : index
    %59 = vector.load %arg23[%c0_40, %c0_41] : memref<79x16xf32, #tpu.memory_space<vmem>>, vector<79x16xf32>
    tpu.vector_store %arg23[%c0_40, %c0_41], %58 {strides = array<i32>} : memref<79x16xf32, #tpu.memory_space<vmem>>, vector<79x16xf32>,
    %c0_42 = arith.constant 0 : index
    %c0_43 = arith.constant 0 : index
    %60 = vector.load %arg23[%c0_42, %c0_43] : memref<79x16xf32, #tpu.memory_space<vmem>>, vector<79x16xf32>
    %61 = arith.truncf %60 : vector<79x16xf32> to vector<79x16xbf16>
    %cst_44 = arith.constant 0.000000e+00 : f32
    %62 = vector.broadcast %cst_44 : f32 to vector<77x64xf32>
    %63 = vector.extract_strided_slice %61 {offsets = [0, 0], sizes = [77, 16], strides = [1, 1]} : vector<79x16xbf16> to vector<77x16xbf16>
    %c0_45 = arith.constant 0 : index
    %c0_46 = arith.constant 0 : index
    %c0_47 = arith.constant 0 : index
    %64 = vector.load %arg6[%c0_45, %c0_46, %c0_47] : memref<3x16x64xbf16, #tpu.memory_space<vmem>>, vector<1x16x64xbf16>
    %65 = vector.shape_cast %64 : vector<1x16x64xbf16> to vector<16x64xbf16>
    %cst_48 = arith.constant dense<0.000000e+00> : vector<77x64xf32>
    %66 = tpu.matmul %63, %65, %cst_48 {dimension_numbers = #tpu.dot_dimension_numbers<[1], [0], [0], [1], [0, 0, 1, 1], [], []>} : vector<77x16xbf16>, vector<16x64xbf16>, vector<77x64xf32> -> vector<77x64xf32>
    %67 = arith.addf %62, %66 : vector<77x64xf32>
    %68 = vector.extract_strided_slice %61 {offsets = [1, 0], sizes = [77, 16], strides = [1, 1]} : vector<79x16xbf16> to vector<77x16xbf16>
    %c1_49 = arith.constant 1 : index
    %c0_50 = arith.constant 0 : index
    %c0_51 = arith.constant 0 : index
    %69 = vector.load %arg6[%c1_49, %c0_50, %c0_51] : memref<3x16x64xbf16, #tpu.memory_space<vmem>>, vector<1x16x64xbf16>
    %70 = vector.shape_cast %69 : vector<1x16x64xbf16> to vector<16x64xbf16>
    %cst_52 = arith.constant dense<0.000000e+00> : vector<77x64xf32>
    %71 = tpu.matmul %68, %70, %cst_52 {dimension_numbers = #tpu.dot_dimension_numbers<[1], [0], [0], [1], [0, 0, 1, 1], [], []>} : vector<77x16xbf16>, vector<16x64xbf16>, vector<77x64xf32> -> vector<77x64xf32>
    %72 = arith.addf %67, %71 : vector<77x64xf32>
    %73 = vector.extract_strided_slice %61 {offsets = [2, 0], sizes = [77, 16], strides = [1, 1]} : vector<79x16xbf16> to vector<77x16xbf16>
    %c2_53 = arith.constant 2 : index
    %c0_54 = arith.constant 0 : index
    %c0_55 = arith.constant 0 : index
    %74 = vector.load %arg6[%c2_53, %c0_54, %c0_55] : memref<3x16x64xbf16, #tpu.memory_space<vmem>>, vector<1x16x64xbf16>
    %75 = vector.shape_cast %74 : vector<1x16x64xbf16> to vector<16x64xbf16>
    %cst_56 = arith.constant dense<0.000000e+00> : vector<77x64xf32>
    %76 = tpu.matmul %73, %75, %cst_56 {dimension_numbers = #tpu.dot_dimension_numbers<[1], [0], [0], [1], [0, 0, 1, 1], [], []>} : vector<77x16xbf16>, vector<16x64xbf16>, vector<77x64xf32> -> vector<77x64xf32>
    %77 = arith.addf %72, %76 : vector<77x64xf32>
    %c0_57 = arith.constant 0 : index
    %c0_58 = arith.constant 0 : index
    %78 = vector.load %arg7[%c0_57, %c0_58] : memref<1x64xf32, #tpu.memory_space<vmem>>, vector<1x64xf32>
    %79 = vector.broadcast %78 : vector<1x64xf32> to vector<77x64xf32>
    %80 = arith.addf %77, %79 : vector<77x64xf32>
    %cst_59 = arith.constant 0.000000e+00 : f32
    %81 = vector.broadcast %cst_59 : f32 to vector<77x64xf32>
    %82 = arith.maximumf %80, %81 : vector<77x64xf32>
    %c0_60 = arith.constant 0 : index
    %c0_61 = arith.constant 0 : index
    %83 = vector.load %arg24[%c0_60, %c0_61] : memref<77x64xf32, #tpu.memory_space<vmem>>, vector<77x64xf32>
    tpu.vector_store %arg24[%c0_60, %c0_61], %82 {strides = array<i32>} : memref<77x64xf32, #tpu.memory_space<vmem>>, vector<77x64xf32>,
    %c0_62 = arith.constant 0 : index
    %c0_63 = arith.constant 0 : index
    %84 = vector.load %arg24[%c0_62, %c0_63] : memref<77x64xf32, #tpu.memory_space<vmem>>, vector<77x64xf32>
    %85 = arith.truncf %84 : vector<77x64xf32> to vector<77x64xbf16>
    %cst_64 = arith.constant 0.000000e+00 : f32
    %86 = vector.broadcast %cst_64 : f32 to vector<75x64xf32>
    %87 = vector.extract_strided_slice %85 {offsets = [0, 0], sizes = [75, 64], strides = [1, 1]} : vector<77x64xbf16> to vector<75x64xbf16>
    %c0_65 = arith.constant 0 : index
    %c0_66 = arith.constant 0 : index
    %c0_67 = arith.constant 0 : index
    %88 = vector.load %arg8[%c0_65, %c0_66, %c0_67] : memref<3x64x64xbf16, #tpu.memory_space<vmem>>, vector<1x64x64xbf16>
    %89 = vector.shape_cast %88 : vector<1x64x64xbf16> to vector<64x64xbf16>
    %cst_68 = arith.constant dense<0.000000e+00> : vector<75x64xf32>
    %90 = tpu.matmul %87, %89, %cst_68 {dimension_numbers = #tpu.dot_dimension_numbers<[1], [0], [0], [1], [0, 0, 1, 1], [], []>} : vector<75x64xbf16>, vector<64x64xbf16>, vector<75x64xf32> -> vector<75x64xf32>
    %91 = arith.addf %86, %90 : vector<75x64xf32>
    %92 = vector.extract_strided_slice %85 {offsets = [1, 0], sizes = [75, 64], strides = [1, 1]} : vector<77x64xbf16> to vector<75x64xbf16>
    %c1_69 = arith.constant 1 : index
    %c0_70 = arith.constant 0 : index
    %c0_71 = arith.constant 0 : index
    %93 = vector.load %arg8[%c1_69, %c0_70, %c0_71] : memref<3x64x64xbf16, #tpu.memory_space<vmem>>, vector<1x64x64xbf16>
    %94 = vector.shape_cast %93 : vector<1x64x64xbf16> to vector<64x64xbf16>
    %cst_72 = arith.constant dense<0.000000e+00> : vector<75x64xf32>
    %95 = tpu.matmul %92, %94, %cst_72 {dimension_numbers = #tpu.dot_dimension_numbers<[1], [0], [0], [1], [0, 0, 1, 1], [], []>} : vector<75x64xbf16>, vector<64x64xbf16>, vector<75x64xf32> -> vector<75x64xf32>
    %96 = arith.addf %91, %95 : vector<75x64xf32>
    %97 = vector.extract_strided_slice %85 {offsets = [2, 0], sizes = [75, 64], strides = [1, 1]} : vector<77x64xbf16> to vector<75x64xbf16>
    %c2_73 = arith.constant 2 : index
    %c0_74 = arith.constant 0 : index
    %c0_75 = arith.constant 0 : index
    %98 = vector.load %arg8[%c2_73, %c0_74, %c0_75] : memref<3x64x64xbf16, #tpu.memory_space<vmem>>, vector<1x64x64xbf16>
    %99 = vector.shape_cast %98 : vector<1x64x64xbf16> to vector<64x64xbf16>
    %cst_76 = arith.constant dense<0.000000e+00> : vector<75x64xf32>
    %100 = tpu.matmul %97, %99, %cst_76 {dimension_numbers = #tpu.dot_dimension_numbers<[1], [0], [0], [1], [0, 0, 1, 1], [], []>} : vector<75x64xbf16>, vector<64x64xbf16>, vector<75x64xf32> -> vector<75x64xf32>
    %101 = arith.addf %96, %100 : vector<75x64xf32>
    %c0_77 = arith.constant 0 : index
    %c0_78 = arith.constant 0 : index
    %102 = vector.load %arg9[%c0_77, %c0_78] : memref<1x64xf32, #tpu.memory_space<vmem>>, vector<1x64xf32>
    %103 = vector.broadcast %102 : vector<1x64xf32> to vector<75x64xf32>
    %104 = arith.addf %101, %103 : vector<75x64xf32>
    %cst_79 = arith.constant 0.000000e+00 : f32
    %105 = vector.broadcast %cst_79 : f32 to vector<75x64xf32>
    %106 = arith.maximumf %104, %105 : vector<75x64xf32>
    %c0_80 = arith.constant 0 : index
    %c0_81 = arith.constant 0 : index
    %107 = vector.load %arg25[%c0_80, %c0_81] : memref<75x64xf32, #tpu.memory_space<vmem>>, vector<75x64xf32>
    tpu.vector_store %arg25[%c0_80, %c0_81], %106 {strides = array<i32>} : memref<75x64xf32, #tpu.memory_space<vmem>>, vector<75x64xf32>,
    %c0_82 = arith.constant 0 : index
    %c0_83 = arith.constant 0 : index
    %108 = tpu.strided_load %arg25[%c0_82, %c0_83] {strides = array<i32: 3, 1>} : memref<75x64xf32, #tpu.memory_space<vmem>>, vector<25x64xf32>
    %c1_84 = arith.constant 1 : index
    %c0_85 = arith.constant 0 : index
    %109 = tpu.strided_load %arg25[%c1_84, %c0_85] {strides = array<i32: 3, 1>} : memref<75x64xf32, #tpu.memory_space<vmem>>, vector<25x64xf32>
    %110 = arith.maximumf %108, %109 : vector<25x64xf32>
    %c2_86 = arith.constant 2 : index
    %c0_87 = arith.constant 0 : index
    %111 = tpu.strided_load %arg25[%c2_86, %c0_87] {strides = array<i32: 3, 1>} : memref<75x64xf32, #tpu.memory_space<vmem>>, vector<25x64xf32>
    %112 = arith.maximumf %110, %111 : vector<25x64xf32>
    %c0_88 = arith.constant 0 : index
    %c0_89 = arith.constant 0 : index
    %113 = vector.load %arg26[%c0_88, %c0_89] : memref<25x64xf32, #tpu.memory_space<vmem>>, vector<25x64xf32>
    tpu.vector_store %arg26[%c0_88, %c0_89], %112 {strides = array<i32>} : memref<25x64xf32, #tpu.memory_space<vmem>>, vector<25x64xf32>,
    %c0_90 = arith.constant 0 : index
    %c0_91 = arith.constant 0 : index
    %114 = vector.load %arg26[%c0_90, %c0_91] : memref<25x64xf32, #tpu.memory_space<vmem>>, vector<25x64xf32>
    %115 = arith.truncf %114 : vector<25x64xf32> to vector<25x64xbf16>
    %cst_92 = arith.constant 0.000000e+00 : f32
    %116 = vector.broadcast %cst_92 : f32 to vector<23x128xf32>
    %117 = vector.extract_strided_slice %115 {offsets = [0, 0], sizes = [23, 64], strides = [1, 1]} : vector<25x64xbf16> to vector<23x64xbf16>
    %c0_93 = arith.constant 0 : index
    %c0_94 = arith.constant 0 : index
    %c0_95 = arith.constant 0 : index
    %118 = vector.load %arg10[%c0_93, %c0_94, %c0_95] : memref<3x64x128xbf16, #tpu.memory_space<vmem>>, vector<1x64x128xbf16>
    %119 = vector.shape_cast %118 : vector<1x64x128xbf16> to vector<64x128xbf16>
    %cst_96 = arith.constant dense<0.000000e+00> : vector<23x128xf32>
    %120 = tpu.matmul %117, %119, %cst_96 {dimension_numbers = #tpu.dot_dimension_numbers<[1], [0], [0], [1], [0, 0, 1, 1], [], []>} : vector<23x64xbf16>, vector<64x128xbf16>, vector<23x128xf32> -> vector<23x128xf32>
    %121 = arith.addf %116, %120 : vector<23x128xf32>
    %122 = vector.extract_strided_slice %115 {offsets = [1, 0], sizes = [23, 64], strides = [1, 1]} : vector<25x64xbf16> to vector<23x64xbf16>
    %c1_97 = arith.constant 1 : index
    %c0_98 = arith.constant 0 : index
    %c0_99 = arith.constant 0 : index
    %123 = vector.load %arg10[%c1_97, %c0_98, %c0_99] : memref<3x64x128xbf16, #tpu.memory_space<vmem>>, vector<1x64x128xbf16>
    %124 = vector.shape_cast %123 : vector<1x64x128xbf16> to vector<64x128xbf16>
    %cst_100 = arith.constant dense<0.000000e+00> : vector<23x128xf32>
    %125 = tpu.matmul %122, %124, %cst_100 {dimension_numbers = #tpu.dot_dimension_numbers<[1], [0], [0], [1], [0, 0, 1, 1], [], []>} : vector<23x64xbf16>, vector<64x128xbf16>, vector<23x128xf32> -> vector<23x128xf32>
    %126 = arith.addf %121, %125 : vector<23x128xf32>
    %127 = vector.extract_strided_slice %115 {offsets = [2, 0], sizes = [23, 64], strides = [1, 1]} : vector<25x64xbf16> to vector<23x64xbf16>
    %c2_101 = arith.constant 2 : index
    %c0_102 = arith.constant 0 : index
    %c0_103 = arith.constant 0 : index
    %128 = vector.load %arg10[%c2_101, %c0_102, %c0_103] : memref<3x64x128xbf16, #tpu.memory_space<vmem>>, vector<1x64x128xbf16>
    %129 = vector.shape_cast %128 : vector<1x64x128xbf16> to vector<64x128xbf16>
    %cst_104 = arith.constant dense<0.000000e+00> : vector<23x128xf32>
    %130 = tpu.matmul %127, %129, %cst_104 {dimension_numbers = #tpu.dot_dimension_numbers<[1], [0], [0], [1], [0, 0, 1, 1], [], []>} : vector<23x64xbf16>, vector<64x128xbf16>, vector<23x128xf32> -> vector<23x128xf32>
    %131 = arith.addf %126, %130 : vector<23x128xf32>
    %c0_105 = arith.constant 0 : index
    %c0_106 = arith.constant 0 : index
    %132 = vector.load %arg11[%c0_105, %c0_106] : memref<1x128xf32, #tpu.memory_space<vmem>>, vector<1x128xf32>
    %133 = vector.broadcast %132 : vector<1x128xf32> to vector<23x128xf32>
    %134 = arith.addf %131, %133 : vector<23x128xf32>
    %cst_107 = arith.constant 0.000000e+00 : f32
    %135 = vector.broadcast %cst_107 : f32 to vector<23x128xf32>
    %136 = arith.maximumf %134, %135 : vector<23x128xf32>
    %c0_108 = arith.constant 0 : index
    %c0_109 = arith.constant 0 : index
    %137 = vector.load %arg27[%c0_108, %c0_109] : memref<23x128xf32, #tpu.memory_space<vmem>>, vector<23x128xf32>
    tpu.vector_store %arg27[%c0_108, %c0_109], %136 {strides = array<i32>} : memref<23x128xf32, #tpu.memory_space<vmem>>, vector<23x128xf32>,
    %c0_110 = arith.constant 0 : index
    %c0_111 = arith.constant 0 : index
    %138 = vector.load %arg27[%c0_110, %c0_111] : memref<23x128xf32, #tpu.memory_space<vmem>>, vector<23x128xf32>
    %139 = arith.truncf %138 : vector<23x128xf32> to vector<23x128xbf16>
    %cst_112 = arith.constant 0.000000e+00 : f32
    %140 = vector.broadcast %cst_112 : f32 to vector<21x128xf32>
    %141 = vector.extract_strided_slice %139 {offsets = [0, 0], sizes = [21, 128], strides = [1, 1]} : vector<23x128xbf16> to vector<21x128xbf16>
    %c0_113 = arith.constant 0 : index
    %c0_114 = arith.constant 0 : index
    %c0_115 = arith.constant 0 : index
    %142 = vector.load %arg12[%c0_113, %c0_114, %c0_115] : memref<3x128x128xbf16, #tpu.memory_space<vmem>>, vector<1x128x128xbf16>
    %143 = vector.shape_cast %142 : vector<1x128x128xbf16> to vector<128x128xbf16>
    %cst_116 = arith.constant dense<0.000000e+00> : vector<21x128xf32>
    %144 = tpu.matmul %141, %143, %cst_116 {dimension_numbers = #tpu.dot_dimension_numbers<[1], [0], [0], [1], [0, 0, 1, 1], [], []>} : vector<21x128xbf16>, vector<128x128xbf16>, vector<21x128xf32> -> vector<21x128xf32>
    %145 = arith.addf %140, %144 : vector<21x128xf32>
    %146 = vector.extract_strided_slice %139 {offsets = [1, 0], sizes = [21, 128], strides = [1, 1]} : vector<23x128xbf16> to vector<21x128xbf16>
    %c1_117 = arith.constant 1 : index
    %c0_118 = arith.constant 0 : index
    %c0_119 = arith.constant 0 : index
    %147 = vector.load %arg12[%c1_117, %c0_118, %c0_119] : memref<3x128x128xbf16, #tpu.memory_space<vmem>>, vector<1x128x128xbf16>
    %148 = vector.shape_cast %147 : vector<1x128x128xbf16> to vector<128x128xbf16>
    %cst_120 = arith.constant dense<0.000000e+00> : vector<21x128xf32>
    %149 = tpu.matmul %146, %148, %cst_120 {dimension_numbers = #tpu.dot_dimension_numbers<[1], [0], [0], [1], [0, 0, 1, 1], [], []>} : vector<21x128xbf16>, vector<128x128xbf16>, vector<21x128xf32> -> vector<21x128xf32>
    %150 = arith.addf %145, %149 : vector<21x128xf32>
    %151 = vector.extract_strided_slice %139 {offsets = [2, 0], sizes = [21, 128], strides = [1, 1]} : vector<23x128xbf16> to vector<21x128xbf16>
    %c2_121 = arith.constant 2 : index
    %c0_122 = arith.constant 0 : index
    %c0_123 = arith.constant 0 : index
    %152 = vector.load %arg12[%c2_121, %c0_122, %c0_123] : memref<3x128x128xbf16, #tpu.memory_space<vmem>>, vector<1x128x128xbf16>
    %153 = vector.shape_cast %152 : vector<1x128x128xbf16> to vector<128x128xbf16>
    %cst_124 = arith.constant dense<0.000000e+00> : vector<21x128xf32>
    %154 = tpu.matmul %151, %153, %cst_124 {dimension_numbers = #tpu.dot_dimension_numbers<[1], [0], [0], [1], [0, 0, 1, 1], [], []>} : vector<21x128xbf16>, vector<128x128xbf16>, vector<21x128xf32> -> vector<21x128xf32>
    %155 = arith.addf %150, %154 : vector<21x128xf32>
    %c0_125 = arith.constant 0 : index
    %c0_126 = arith.constant 0 : index
    %156 = vector.load %arg13[%c0_125, %c0_126] : memref<1x128xf32, #tpu.memory_space<vmem>>, vector<1x128xf32>
    %157 = vector.broadcast %156 : vector<1x128xf32> to vector<21x128xf32>
    %158 = arith.addf %155, %157 : vector<21x128xf32>
    %cst_127 = arith.constant 0.000000e+00 : f32
    %159 = vector.broadcast %cst_127 : f32 to vector<21x128xf32>
    %160 = arith.maximumf %158, %159 : vector<21x128xf32>
    %c0_128 = arith.constant 0 : index
    %c0_129 = arith.constant 0 : index
    %161 = vector.load %arg28[%c0_128, %c0_129] : memref<21x128xf32, #tpu.memory_space<vmem>>, vector<21x128xf32>
    tpu.vector_store %arg28[%c0_128, %c0_129], %160 {strides = array<i32>} : memref<21x128xf32, #tpu.memory_space<vmem>>, vector<21x128xf32>,
    %c0_130 = arith.constant 0 : index
    %c0_131 = arith.constant 0 : index
    %162 = tpu.strided_load %arg28[%c0_130, %c0_131] {strides = array<i32: 3, 1>} : memref<21x128xf32, #tpu.memory_space<vmem>>, vector<7x128xf32>
    %c1_132 = arith.constant 1 : index
    %c0_133 = arith.constant 0 : index
    %163 = tpu.strided_load %arg28[%c1_132, %c0_133] {strides = array<i32: 3, 1>} : memref<21x128xf32, #tpu.memory_space<vmem>>, vector<7x128xf32>
    %164 = arith.maximumf %162, %163 : vector<7x128xf32>
    %c2_134 = arith.constant 2 : index
    %c0_135 = arith.constant 0 : index
    %165 = tpu.strided_load %arg28[%c2_134, %c0_135] {strides = array<i32: 3, 1>} : memref<21x128xf32, #tpu.memory_space<vmem>>, vector<7x128xf32>
    %166 = arith.maximumf %164, %165 : vector<7x128xf32>
    %c0_136 = arith.constant 0 : index
    %c0_137 = arith.constant 0 : index
    %167 = vector.load %arg29[%c0_136, %c0_137] : memref<7x128xf32, #tpu.memory_space<vmem>>, vector<7x128xf32>
    tpu.vector_store %arg29[%c0_136, %c0_137], %166 {strides = array<i32>} : memref<7x128xf32, #tpu.memory_space<vmem>>, vector<7x128xf32>,
    %c0_138 = arith.constant 0 : index
    %c0_139 = arith.constant 0 : index
    %168 = vector.load %arg29[%c0_138, %c0_139] : memref<7x128xf32, #tpu.memory_space<vmem>>, vector<7x128xf32>
    %169 = arith.truncf %168 : vector<7x128xf32> to vector<7x128xbf16>
    %cst_140 = arith.constant 0.000000e+00 : f32
    %170 = vector.broadcast %cst_140 : f32 to vector<5x64xf32>
    %171 = vector.extract_strided_slice %169 {offsets = [0, 0], sizes = [5, 128], strides = [1, 1]} : vector<7x128xbf16> to vector<5x128xbf16>
    %c0_141 = arith.constant 0 : index
    %c0_142 = arith.constant 0 : index
    %c0_143 = arith.constant 0 : index
    %172 = vector.load %arg14[%c0_141, %c0_142, %c0_143] : memref<3x128x64xbf16, #tpu.memory_space<vmem>>, vector<1x128x64xbf16>
    %173 = vector.shape_cast %172 : vector<1x128x64xbf16> to vector<128x64xbf16>
    %cst_144 = arith.constant dense<0.000000e+00> : vector<5x64xf32>
    %174 = tpu.matmul %171, %173, %cst_144 {dimension_numbers = #tpu.dot_dimension_numbers<[1], [0], [0], [1], [0, 0, 1, 1], [], []>} : vector<5x128xbf16>, vector<128x64xbf16>, vector<5x64xf32> -> vector<5x64xf32>
    %175 = arith.addf %170, %174 : vector<5x64xf32>
    %176 = vector.extract_strided_slice %169 {offsets = [1, 0], sizes = [5, 128], strides = [1, 1]} : vector<7x128xbf16> to vector<5x128xbf16>
    %c1_145 = arith.constant 1 : index
    %c0_146 = arith.constant 0 : index
    %c0_147 = arith.constant 0 : index
    %177 = vector.load %arg14[%c1_145, %c0_146, %c0_147] : memref<3x128x64xbf16, #tpu.memory_space<vmem>>, vector<1x128x64xbf16>
    %178 = vector.shape_cast %177 : vector<1x128x64xbf16> to vector<128x64xbf16>
    %cst_148 = arith.constant dense<0.000000e+00> : vector<5x64xf32>
    %179 = tpu.matmul %176, %178, %cst_148 {dimension_numbers = #tpu.dot_dimension_numbers<[1], [0], [0], [1], [0, 0, 1, 1], [], []>} : vector<5x128xbf16>, vector<128x64xbf16>, vector<5x64xf32> -> vector<5x64xf32>
    %180 = arith.addf %175, %179 : vector<5x64xf32>
    %181 = vector.extract_strided_slice %169 {offsets = [2, 0], sizes = [5, 128], strides = [1, 1]} : vector<7x128xbf16> to vector<5x128xbf16>
    %c2_149 = arith.constant 2 : index
    %c0_150 = arith.constant 0 : index
    %c0_151 = arith.constant 0 : index
    %182 = vector.load %arg14[%c2_149, %c0_150, %c0_151] : memref<3x128x64xbf16, #tpu.memory_space<vmem>>, vector<1x128x64xbf16>
    %183 = vector.shape_cast %182 : vector<1x128x64xbf16> to vector<128x64xbf16>
    %cst_152 = arith.constant dense<0.000000e+00> : vector<5x64xf32>
    %184 = tpu.matmul %181, %183, %cst_152 {dimension_numbers = #tpu.dot_dimension_numbers<[1], [0], [0], [1], [0, 0, 1, 1], [], []>} : vector<5x128xbf16>, vector<128x64xbf16>, vector<5x64xf32> -> vector<5x64xf32>
    %185 = arith.addf %180, %184 : vector<5x64xf32>
    %c0_153 = arith.constant 0 : index
    %c0_154 = arith.constant 0 : index
    %186 = vector.load %arg15[%c0_153, %c0_154] : memref<1x64xf32, #tpu.memory_space<vmem>>, vector<1x64xf32>
    %187 = vector.broadcast %186 : vector<1x64xf32> to vector<5x64xf32>
    %188 = arith.addf %185, %187 : vector<5x64xf32>
    %cst_155 = arith.constant 0.000000e+00 : f32
    %189 = vector.broadcast %cst_155 : f32 to vector<5x64xf32>
    %190 = arith.maximumf %188, %189 : vector<5x64xf32>
    %c0_156 = arith.constant 0 : index
    %c0_157 = arith.constant 0 : index
    %191 = vector.load %arg30[%c0_156, %c0_157] : memref<5x64xf32, #tpu.memory_space<vmem>>, vector<5x64xf32>
    tpu.vector_store %arg30[%c0_156, %c0_157], %190 {strides = array<i32>} : memref<5x64xf32, #tpu.memory_space<vmem>>, vector<5x64xf32>,
    %c0_158 = arith.constant 0 : index
    %c0_159 = arith.constant 0 : index
    %192 = vector.load %arg30[%c0_158, %c0_159] : memref<5x64xf32, #tpu.memory_space<vmem>>, vector<5x64xf32>
    %193 = arith.truncf %192 : vector<5x64xf32> to vector<5x64xbf16>
    %cst_160 = arith.constant 0.000000e+00 : f32
    %194 = vector.broadcast %cst_160 : f32 to vector<3x64xf32>
    %195 = vector.extract_strided_slice %193 {offsets = [0, 0], sizes = [3, 64], strides = [1, 1]} : vector<5x64xbf16> to vector<3x64xbf16>
    %c0_161 = arith.constant 0 : index
    %c0_162 = arith.constant 0 : index
    %c0_163 = arith.constant 0 : index
    %196 = vector.load %arg16[%c0_161, %c0_162, %c0_163] : memref<3x64x64xbf16, #tpu.memory_space<vmem>>, vector<1x64x64xbf16>
    %197 = vector.shape_cast %196 : vector<1x64x64xbf16> to vector<64x64xbf16>
    %cst_164 = arith.constant dense<0.000000e+00> : vector<3x64xf32>
    %198 = tpu.matmul %195, %197, %cst_164 {dimension_numbers = #tpu.dot_dimension_numbers<[1], [0], [0], [1], [0, 0, 1, 1], [], []>} : vector<3x64xbf16>, vector<64x64xbf16>, vector<3x64xf32> -> vector<3x64xf32>
    %199 = arith.addf %194, %198 : vector<3x64xf32>
    %200 = vector.extract_strided_slice %193 {offsets = [1, 0], sizes = [3, 64], strides = [1, 1]} : vector<5x64xbf16> to vector<3x64xbf16>
    %c1_165 = arith.constant 1 : index
    %c0_166 = arith.constant 0 : index
    %c0_167 = arith.constant 0 : index
    %201 = vector.load %arg16[%c1_165, %c0_166, %c0_167] : memref<3x64x64xbf16, #tpu.memory_space<vmem>>, vector<1x64x64xbf16>
    %202 = vector.shape_cast %201 : vector<1x64x64xbf16> to vector<64x64xbf16>
    %cst_168 = arith.constant dense<0.000000e+00> : vector<3x64xf32>
    %203 = tpu.matmul %200, %202, %cst_168 {dimension_numbers = #tpu.dot_dimension_numbers<[1], [0], [0], [1], [0, 0, 1, 1], [], []>} : vector<3x64xbf16>, vector<64x64xbf16>, vector<3x64xf32> -> vector<3x64xf32>
    %204 = arith.addf %199, %203 : vector<3x64xf32>
    %205 = vector.extract_strided_slice %193 {offsets = [2, 0], sizes = [3, 64], strides = [1, 1]} : vector<5x64xbf16> to vector<3x64xbf16>
    %c2_169 = arith.constant 2 : index
    %c0_170 = arith.constant 0 : index
    %c0_171 = arith.constant 0 : index
    %206 = vector.load %arg16[%c2_169, %c0_170, %c0_171] : memref<3x64x64xbf16, #tpu.memory_space<vmem>>, vector<1x64x64xbf16>
    %207 = vector.shape_cast %206 : vector<1x64x64xbf16> to vector<64x64xbf16>
    %cst_172 = arith.constant dense<0.000000e+00> : vector<3x64xf32>
    %208 = tpu.matmul %205, %207, %cst_172 {dimension_numbers = #tpu.dot_dimension_numbers<[1], [0], [0], [1], [0, 0, 1, 1], [], []>} : vector<3x64xbf16>, vector<64x64xbf16>, vector<3x64xf32> -> vector<3x64xf32>
    %209 = arith.addf %204, %208 : vector<3x64xf32>
    %c0_173 = arith.constant 0 : index
    %c0_174 = arith.constant 0 : index
    %210 = vector.load %arg17[%c0_173, %c0_174] : memref<1x64xf32, #tpu.memory_space<vmem>>, vector<1x64xf32>
    %211 = vector.broadcast %210 : vector<1x64xf32> to vector<3x64xf32>
    %212 = arith.addf %209, %211 : vector<3x64xf32>
    %cst_175 = arith.constant 0.000000e+00 : f32
    %213 = vector.broadcast %cst_175 : f32 to vector<3x64xf32>
    %214 = arith.maximumf %212, %213 : vector<3x64xf32>
    %c0_176 = arith.constant 0 : index
    %c0_177 = arith.constant 0 : index
    %215 = vector.load %arg31[%c0_176, %c0_177] : memref<3x64xf32, #tpu.memory_space<vmem>>, vector<3x64xf32>
    tpu.vector_store %arg31[%c0_176, %c0_177], %214 {strides = array<i32>} : memref<3x64xf32, #tpu.memory_space<vmem>>, vector<3x64xf32>,
    %c0_178 = arith.constant 0 : index
    %c0_179 = arith.constant 0 : index
    %216 = tpu.strided_load %arg31[%c0_178, %c0_179] {strides = array<i32: 3, 1>} : memref<3x64xf32, #tpu.memory_space<vmem>>, vector<1x64xf32>
    %c1_180 = arith.constant 1 : index
    %c0_181 = arith.constant 0 : index
    %217 = tpu.strided_load %arg31[%c1_180, %c0_181] {strides = array<i32: 3, 1>} : memref<3x64xf32, #tpu.memory_space<vmem>>, vector<1x64xf32>
    %218 = arith.maximumf %216, %217 : vector<1x64xf32>
    %c2_182 = arith.constant 2 : index
    %c0_183 = arith.constant 0 : index
    %219 = tpu.strided_load %arg31[%c2_182, %c0_183] {strides = array<i32: 3, 1>} : memref<3x64xf32, #tpu.memory_space<vmem>>, vector<1x64xf32>
    %220 = arith.maximumf %218, %219 : vector<1x64xf32>
    %c0_184 = arith.constant 0 : index
    %c0_185 = arith.constant 0 : index
    %221 = vector.load %arg32[%c0_184, %c0_185] : memref<1x64xf32, #tpu.memory_space<vmem>>, vector<1x64xf32>
    tpu.vector_store %arg32[%c0_184, %c0_185], %220 {strides = array<i32>} : memref<1x64xf32, #tpu.memory_space<vmem>>, vector<1x64xf32>,
    %c0_186 = arith.constant 0 : index
    %c0_187 = arith.constant 0 : index
    %222 = vector.load %arg32[%c0_186, %c0_187] : memref<1x64xf32, #tpu.memory_space<vmem>>, vector<1x64xf32>
    %c0_188 = arith.constant 0 : index
    %c0_189 = arith.constant 0 : index
    %223 = vector.load %arg18[%c0_188, %c0_189] : memref<1x64xf32, #tpu.memory_space<vmem>>, vector<1x64xf32>
    %224 = arith.mulf %222, %223 : vector<1x64xf32>
    %cst_190 = arith.constant dense<0.000000e+00> : vector<1xf32>
    %225 = vector.multi_reduction <add>, %224, %cst_190 [1] : vector<1x64xf32> to vector<1xf32>
    %226 = vector.shape_cast %225 : vector<1xf32> to vector<1x1xf32>
    %c0_191 = arith.constant 0 : index
    %c0_192 = arith.constant 0 : index
    %227 = vector.load %arg19[%c0_191, %c0_192] : memref<1x1xf32, #tpu.memory_space<vmem>>, vector<1x1xf32>
    %228 = arith.addf %226, %227 : vector<1x1xf32>
    %c0_193 = arith.constant 0 : index
    %c0_194 = arith.constant 0 : index
    %c0_195 = arith.constant 0 : index
    %229 = vector.load %arg20[%c0_193, %c0_194, %c0_195] : memref<1x1x1xf32, #tpu.memory_space<vmem>>, vector<1x1x1xf32>
    %230 = vector.shape_cast %229 : vector<1x1x1xf32> to vector<1x1xf32>
    %231 = vector.shape_cast %228 : vector<1x1xf32> to vector<1x1x1xf32>
    tpu.vector_store %arg20[%c0_193, %c0_194, %c0_195], %231 {strides = array<i32>} : memref<1x1x1xf32, #tpu.memory_space<vmem>>, vector<1x1x1xf32>,
    return
  }
  func.func @transform_0(%arg0: i32) -> (i32, i32, i32) {
    %c0_i32 = arith.constant 0 : i32
    %c0_i32_0 = arith.constant 0 : i32
    %c0_i32_1 = arith.constant 0 : i32
    return %arg0, %c0_i32, %c0_i32_0 : i32, i32, i32
  }
  func.func @transform_1(%arg0: i32) -> (i32, i32, i32) {
    %c0_i32 = arith.constant 0 : i32
    %c0_i32_0 = arith.constant 0 : i32
    %c0_i32_1 = arith.constant 0 : i32
    %c0_i32_2 = arith.constant 0 : i32
    return %c0_i32, %c0_i32_0, %c0_i32_1 : i32, i32, i32
  }
  func.func @transform_2(%arg0: i32) -> (i32, i32) {
    %c0_i32 = arith.constant 0 : i32
    %c0_i32_0 = arith.constant 0 : i32
    %c0_i32_1 = arith.constant 0 : i32
    return %c0_i32, %c0_i32_0 : i32, i32
  }
  func.func @transform_3(%arg0: i32) -> (i32, i32, i32) {
    %c0_i32 = arith.constant 0 : i32
    %c0_i32_0 = arith.constant 0 : i32
    %c0_i32_1 = arith.constant 0 : i32
    %c0_i32_2 = arith.constant 0 : i32
    return %c0_i32, %c0_i32_0, %c0_i32_1 : i32, i32, i32
  }
  func.func @transform_4(%arg0: i32) -> (i32, i32) {
    %c0_i32 = arith.constant 0 : i32
    %c0_i32_0 = arith.constant 0 : i32
    %c0_i32_1 = arith.constant 0 : i32
    return %c0_i32, %c0_i32_0 : i32, i32
  }
  func.func @transform_5(%arg0: i32) -> (i32, i32, i32) {
    %c0_i32 = arith.constant 0 : i32
    %c0_i32_0 = arith.constant 0 : i32
    %c0_i32_1 = arith.constant 0 : i32
    %c0_i32_2 = arith.constant 0 : i32
    return %c0_i32, %c0_i32_0, %c0_i32_1 : i32, i32, i32
  }
  func.func @transform_6(%arg0: i32) -> (i32, i32) {
    %c0_i32 = arith.constant 0 : i32
    %c0_i32_0 = arith.constant 0 : i32
    %c0_i32_1 = arith.constant 0 : i32
    return %c0_i32, %c0_i32_0 : i32, i32
  }
  func.func @transform_7(%arg0: i32) -> (i32, i32, i32) {
    %c0_i32 = arith.constant 0 : i32
    %c0_i32_0 = arith.constant 0 : i32
    %c0_i32_1 = arith.constant 0 : i32
    %c0_i32_2 = arith.constant 0 : i32
    return %c0_i32, %c0_i32_0, %c0_i32_1 : i32, i32, i32
  }
  func.func @transform_8(%arg0: i32) -> (i32, i32) {
    %c0_i32 = arith.constant 0 : i32
    %c0_i32_0 = arith.constant 0 : i32
    %c0_i32_1 = arith.constant 0 : i32
    return %c0_i32, %c0_i32_0 : i32, i32
  }
  func.func @transform_9(%arg0: i32) -> (i32, i32, i32) {
    %c0_i32 = arith.constant 0 : i32
    %c0_i32_0 = arith.constant 0 : i32
    %c0_i32_1 = arith.constant 0 : i32
    %c0_i32_2 = arith.constant 0 : i32
    return %c0_i32, %c0_i32_0, %c0_i32_1 : i32, i32, i32
  }
  func.func @transform_10(%arg0: i32) -> (i32, i32) {
    %c0_i32 = arith.constant 0 : i32
    %c0_i32_0 = arith.constant 0 : i32
    %c0_i32_1 = arith.constant 0 : i32
    return %c0_i32, %c0_i32_0 : i32, i32
  }
  func.func @transform_11(%arg0: i32) -> (i32, i32, i32) {
    %c0_i32 = arith.constant 0 : i32
    %c0_i32_0 = arith.constant 0 : i32
    %c0_i32_1 = arith.constant 0 : i32
    %c0_i32_2 = arith.constant 0 : i32
    return %c0_i32, %c0_i32_0, %c0_i32_1 : i32, i32, i32
  }
  func.func @transform_12(%arg0: i32) -> (i32, i32) {
    %c0_i32 = arith.constant 0 : i32
    %c0_i32_0 = arith.constant 0 : i32
    %c0_i32_1 = arith.constant 0 : i32
    return %c0_i32, %c0_i32_0 : i32, i32
  }
  func.func @transform_13(%arg0: i32) -> (i32, i32, i32) {
    %c0_i32 = arith.constant 0 : i32
    %c0_i32_0 = arith.constant 0 : i32
    %c0_i32_1 = arith.constant 0 : i32
    %c0_i32_2 = arith.constant 0 : i32
    return %c0_i32, %c0_i32_0, %c0_i32_1 : i32, i32, i32
  }
  func.func @transform_14(%arg0: i32) -> (i32, i32) {
    %c0_i32 = arith.constant 0 : i32
    %c0_i32_0 = arith.constant 0 : i32
    %c0_i32_1 = arith.constant 0 : i32
    return %c0_i32, %c0_i32_0 : i32, i32
  }
  func.func @transform_15(%arg0: i32) -> (i32, i32, i32) {
    %c0_i32 = arith.constant 0 : i32
    %c0_i32_0 = arith.constant 0 : i32
    %c0_i32_1 = arith.constant 0 : i32
    %c0_i32_2 = arith.constant 0 : i32
    return %c0_i32, %c0_i32_0, %c0_i32_1 : i32, i32, i32
  }
  func.func @transform_16(%arg0: i32) -> (i32, i32) {
    %c0_i32 = arith.constant 0 : i32
    %c0_i32_0 = arith.constant 0 : i32
    %c0_i32_1 = arith.constant 0 : i32
    return %c0_i32, %c0_i32_0 : i32, i32
  }
  func.func @transform_17(%arg0: i32) -> (i32, i32) {
    %c0_i32 = arith.constant 0 : i32
    %c0_i32_0 = arith.constant 0 : i32
    %c0_i32_1 = arith.constant 0 : i32
    return %c0_i32, %c0_i32_0 : i32, i32
  }
  func.func @transform_18(%arg0: i32) -> (i32, i32) {
    %c0_i32 = arith.constant 0 : i32
    %c0_i32_0 = arith.constant 0 : i32
    %c0_i32_1 = arith.constant 0 : i32
    return %c0_i32, %c0_i32_0 : i32, i32
  }
  func.func @transform_19(%arg0: i32) -> (i32, i32, i32) {
    %c0_i32 = arith.constant 0 : i32
    %c0_i32_0 = arith.constant 0 : i32
    %c0_i32_1 = arith.constant 0 : i32
    return %arg0, %c0_i32, %c0_i32_0 : i32, i32, i32
  }
}

</mosaic_0001>

<bundles_post_ra>
// kernel: cnn_forward_pallas.1
= control target key start
LH: loop header
LB: loop body
LE: loop exit
PB: predicated region body
PF: predicated region fallthrough
CT: control target
= control target key end

     0   :  { %s5869_s20 = smov 0   ;;  %s7281_s0 = inlined_call_operand.vmem [shape: f32[2,241,1], index: 0, kind: input, shape index: {}]   ;;  %s7282_s1 = inlined_call_operand.vmem [shape: f32[3,1,16], index: 1, kind: input, shape index: {}]   ;;  %s7283_s2 = inlined_call_operand.vmem [shape: f32[1,16], index: 2, kind: input, shape index: {}]   ;;  %s7284_s3 = inlined_call_operand.vmem [shape: bf16[3,16,16], index: 3, kind: input, shape index: {}]   ;;  %s7285_s4 = inlined_call_operand.vmem [shape: f32[1,16], index: 4, kind: input, shape index: {}]   ;;  %s7286_s5 = inlined_call_operand.vmem [shape: bf16[3,16,64], index: 5, kind: input, shape index: {}]   ;;  %s7287_s6 = inlined_call_operand.vmem [shape: f32[1,64], index: 6, kind: input, shape index: {}]   ;;  %s7288_s7 = inlined_call_operand.vmem [shape: bf16[3,64,64], index: 7, kind: input, shape index: {}]   ;;  %s7289_s8 = inlined_call_operand.vmem [shape: f32[1,64], index: 8, kind: input, shape index: {}]   ;;  %s7290_s9 = inlined_call_operand.vmem [shape: bf16[3,64,128], index: 9, kind: input, shape index: {}]   ;;  %s7291_s10 = inlined_call_operand.vmem [shape: f32[1,128], index: 10, kind: input, shape index: {}]   ;;  %s7292_s11 = inlined_call_operand.vmem [shape: bf16[3,128,128], index: 11, kind: input, shape index: {}]   ;;  %s7293_s12 = inlined_call_operand.vmem [shape: f32[1,128], index: 12, kind: input, shape index: {}]   ;;  %s7294_s13 = inlined_call_operand.vmem [shape: bf16[3,128,64], index: 13, kind: input, shape index: {}]   ;;  %s7295_s14 = inlined_call_operand.vmem [shape: f32[1,64], index: 14, kind: input, shape index: {}]   ;;  %s7296_s15 = inlined_call_operand.vmem [shape: bf16[3,64,64], index: 15, kind: input, shape index: {}]   ;;  %s7297_s16 = inlined_call_operand.vmem [shape: f32[1,64], index: 16, kind: input, shape index: {}]   ;;  %s7298_s17 = inlined_call_operand.vmem [shape: f32[1,64], index: 17, kind: input, shape index: {}]   ;;  %s7299_s18 = inlined_call_operand.<no memory space> [shape: f32[1,1], index: 18, kind: input, shape index: {}]   ;;  %s7300_s19 = inlined_call_operand.vmem [shape: f32[2,1,1], index: 19, kind: output, shape index: {}]  }
   0x1   :  { %7303 = sst [smem:[#allocation15_spill]] %s7281_s0  ;;  %v24_v0 = vstv %s7299_s18 }
   0x2   :  { %7304 = sst [smem:[#allocation16_spill]] %s7282_s1  ;;  %25 = vst [vmem:[#allocation14] sm:$0x1] %v24_v0 }
   0x3   :  { %7305 = sst [smem:[#allocation17_spill]] %s7283_s2 }
   0x4   :  { %7306 = sst [smem:[#allocation18_spill]] %s7284_s3 }
   0x5 LB: > { %s4625_s21 = sadd.s32 4294967295, %s5761_s20   ;;  %p4629_p0 = scmp.ge.s32.totalorder %s5761_s20, 1  ;;  %s5761_s20 = sphi %s5869_s20, %s31_s20  }
   0x6   : > { %p539_p1 = scmp.lt.s32.totalorder %s5761_s20, 3 }
   0x8   : > { %p540_p2 = pnand %p4629_p0, %p539_p1 }
   0x9   : > { %p593_p3 = scmp.lt.s32.totalorder (!%p540_p2), %s4625_s21, 1  ;;  %v5763_v1 = vmov (!%p540_p2), 0   ;;  %s7307_s2 = sld [smem:[#allocation15_spill]] (!%p540_p2)  ;;  %v5764_v22 = vmov (!%p540_p2), 0.0   ;;  %vm5765_vm0 = vmmov (!%p540_p2), 0   ;;  %vm918_vm1 = vcmask (!%p540_p2), 1046528  }
   0xa   : > { %543 = sbr.rel (%p540_p2) target bundleno = 2534 (0x9e6), region = 96  ;;  %5664 = vset.pattern.permute.xlu1 (!%p540_p2), %v5763_v1  ;;  %5663 = vset.pattern.permute.xlu0 (!%p540_p2), %v5763_v1  ;;  %s7308_s3 = sld [smem:[#allocation18_spill]] (!%p540_p2)  ;;  %vm1113_vm2 = vcmask (!%p540_p2), 1045504   ;;  %vm1302_vm3 = vcmask (!%p540_p2), 130048   ;;  %vm1384_vm4 = vsmask.f32 (!%p540_p2), 7424 }
   0xb   : > { %5185 = vmatprep.subr.bf16.mxu1 (!%p540_p2), %v5764_v22  ;;  %5123 = vmatprep.subr.bf16.mxu0 (!%p540_p2), %v5764_v22  ;;  %s7309_s0 = sld [smem:[#allocation16_spill]] (!%p540_p2)  ;;  %s7310_s24 = sld [smem:[#allocation17_spill]] (!%p540_p2)  ;;  %vm1332_vm5 = vcmask (!%p540_p2), 129024   ;;  %vm2275_vm6 = vcmask (!%p540_p2), 126976   ;;  %vm2756_vm7 = vcmask (!%p540_p2), 523264   ;;  %vm2766_vm8 = vcmask (!%p540_p2), 520192  }
   0xc   : > { %5187 = vmatprep.mubr.msk.bf16.mxu1 (!%p540_p2), %vm5765_vm0, %v5764_v22  ;;  %5125 = vmatprep.mubr.msk.bf16.mxu0 (!%p540_p2), %vm5765_vm0, %v5764_v22  ;;  %vm3239_vm9 = vcmask (!%p540_p2), 518144   ;;  %vm3275_vm10 = vcmask (!%p540_p2), 516096   ;;  %vm4576_vm11 = vcmask (!%p540_p2), 0  }
  0x10   : > { %v5665_v23 = vld [vmem:[%s7308_s3] sm:$0xff] (!%p540_p2)   ;;  %v5666_v30 = vld [vmem:[%s7308_s3 + $0x8] sm:$0xff] (!%p540_p2)  }
  0x11   : > { %s7312_s21 = smov (!%p593_p3, %s4625_s21), 1  ;;  %5186 = vmatpush3.bf16.msra.mxu1 %v5665_v23  ;;  %5124 = vmatpush3.bf16.msra.mxu0 %v5666_v30  ;;  %v5933_v36 = vld [vmem:[%s7309_s0 + $0x1] ss:$0 sm:$0xff]  ;;  %v5938_v39 = vld [vmem:[%s7309_s0 + $0x2] ss:$0 sm:$0xff] }
  0x12   : > { %s5651_s18 = smul.u32 248, %s7312_s21  ;;  %5309 = vmatprep.subr.bf16.mxu1 %v5764_v22  ;;  %5247 = vmatprep.subr.bf16.mxu0 %v5764_v22  ;;  %v5945_v42 = vld [vmem:[%s7309_s0] ss:$0 sm:$0xff]  ;;  %s600_s27 = scalar_lea.vmem %s7300_s19, %s7312_s21 }
  0x14   : > { %s5883_s23 = scalar_lea.vmem %s7307_s2, %s5651_s18 }
  0x15   : > { %v604_v2 = vld [vmem:[%s5883_s23 + $0x10] sm:$0xff]  ;;  %v602_v3 = vld [vmem:[%s5883_s23] sm:$0xff]  ;;  %v605_v4 = vld [vmem:[%s5883_s23 + $0x18] sm:$0xff] }
  0x16   : > { %646 = vperm.xlu1 %5664, %v604_v2   ;;  %636 = vperm.xlu0 %5663, %v602_v3   ;;  %v603_v5 = vld [vmem:[%s5883_s23 + $0x8] sm:$0xff]  ;;  %v606_v7 = vld [vmem:[%s5883_s23 + $0x20] sm:$0xff]  ;;  %v609_v8 = vld [vmem:[%s5883_s23 + $0x38] sm:$0xff] }
  0x17   : > { %v607_v6 = vld [vmem:[%s5883_s23 + $0x28] sm:$0xff]  ;;  %v608_v9 = vld [vmem:[%s5883_s23 + $0x30] sm:$0xff]  ;;  %v610_v11 = vld [vmem:[%s5883_s23 + $0x40] sm:$0xff] }
  0x18   : > { %v611_v10 = vld [vmem:[%s5883_s23 + $0x48] sm:$0xff]  ;;  %v613_v12 = vld [vmem:[%s5883_s23 + $0x58] sm:$0xff]  ;;  %v612_v13 = vld [vmem:[%s5883_s23 + $0x50] sm:$0xff] }
  0x19   : > { %v615_v14 = vld [vmem:[%s5883_s23 + $0x68] sm:$0xff]  ;;  %v614_v15 = vld [vmem:[%s5883_s23 + $0x60] sm:$0xff]  ;;  %v617_v16 = vld [vmem:[%s5883_s23 + $0x78] sm:$0xff] }
  0x1a   : > { %651 = vperm.xlu1 %5664, %v605_v4   ;;  %641 = vperm.xlu0 %5663, %v603_v5   ;;  %v616_v17 = vld [vmem:[%s5883_s23 + $0x70] sm:$0xff]  ;;  %v619_v18 = vld [vmem:[%s5883_s23 + $0x88] sm:$0xff]  ;;  %v618_v19 = vld [vmem:[%s5883_s23 + $0x80] sm:$0xff] }
  0x1b   : > { %v621_v20 = vld [vmem:[%s5883_s23 + $0x98] sm:$0xff]  ;;  %v620_v21 = vld [vmem:[%s5883_s23 + $0x90] sm:$0xff]  ;;  %v623_v24 = vld [vmem:[%s5883_s23 + $0xa8] sm:$0xff] }
  0x1c   : > { %v622_v25 = vld [vmem:[%s5883_s23 + $0xa0] sm:$0xff]  ;;  %v625_v26 = vld [vmem:[%s5883_s23 + $0xb8] sm:$0xff]  ;;  %v624_v27 = vld [vmem:[%s5883_s23 + $0xb0] sm:$0xff] }
  0x1d   : > { %v627_v28 = vld [vmem:[%s5883_s23 + $0xc8] sm:$0xff]  ;;  %v626_v29 = vld [vmem:[%s5883_s23 + $0xc0] sm:$0xff]  ;;  %v629_v31 = vld [vmem:[%s5883_s23 + $0xd8] sm:$0xff] }
  0x1e   : > { %661 = vperm.xlu1 %5664, %v607_v6   ;;  %656 = vperm.xlu0 %5663, %v606_v7   ;;  %v628_v32 = vld [vmem:[%s5883_s23 + $0xd0] sm:$0xff]  ;;  %v631_v33 = vld [vmem:[%s5883_s23 + $0xe8] sm:$0xff]  ;;  %v630_v34 = vld [vmem:[%s5883_s23 + $0xe0] sm:$0xff] }
  0x1f   : > { %v632_v35 = vld [vmem:[%s5883_s23 + $0xf0] sm:$0x1]  ;;  %v5967_v7 = vld [vmem:[%s7310_s24] ss:$0 sm:$0xff] }
  0x22   : > { %671 = vperm.xlu1 %5664, %v609_v8   ;;  %666 = vperm.xlu0 %5663, %v608_v9  }
  0x26   : > { %681 = vperm.xlu1 %5664, %v611_v10   ;;  %676 = vperm.xlu0 %5663, %v610_v11  }
  0x2a   : > { %691 = vperm.xlu1 %5664, %v613_v12   ;;  %686 = vperm.xlu0 %5663, %v612_v13  }
  0x2e   : > { %701 = vperm.xlu1 %5664, %v615_v14   ;;  %696 = vperm.xlu0 %5663, %v614_v15  }
  0x32   : > { %711 = vperm.xlu1 %5664, %v617_v16   ;;  %706 = vperm.xlu0 %5663, %v616_v17  }
  0x36   : > { %721 = vperm.xlu1 %5664, %v619_v18   ;;  %716 = vperm.xlu0 %5663, %v618_v19  }
  0x3a   : > { %731 = vperm.xlu1 %5664, %v621_v20   ;;  %726 = vperm.xlu0 %5663, %v620_v21  }
  0x3e   : > { %741 = vperm.xlu1 %5664, %v623_v24   ;;  %736 = vperm.xlu0 %5663, %v622_v25  }
  0x42   : > { %751 = vperm.xlu1 %5664, %v625_v26   ;;  %746 = vperm.xlu0 %5663, %v624_v27  }
  0x46   : > { %761 = vperm.xlu1 %5664, %v627_v28   ;;  %756 = vperm.xlu0 %5663, %v626_v29  }
  0x4a   : > { %771 = vperm.xlu1 %5664, %v629_v31   ;;  %766 = vperm.xlu0 %5663, %v628_v32  }
  0x4e   : > { %781 = vperm.xlu1 %5664, %v631_v33   ;;  %776 = vperm.xlu0 %5663, %v630_v34  }
  0x52   : > { %1042 = vperm.xlu0 %5663, %v632_v35  }
  0x95   : > { %v647_v37 = vpop.permute.xlu1 %646  ;;  %v637_v38 = vpop.permute.xlu0 %636 }
  0x96   : > { %v860_v40 = vmul.f32 %v5933_v36, %v647_v37  ;;  %v1053_v41 = vmul.f32 %v5938_v39, %v647_v37  ;;  %v858_v43 = vmul.f32 %v5933_v36, %v637_v38  ;;  %v1051_v44 = vmul.f32 %v5938_v39, %v637_v38 }
  0x97   : > { %v792_v53 = vmul.f32 %v5945_v42, %v647_v37  ;;  %v790_v54 = vmul.f32 %v5945_v42, %v637_v38 }
  0x98   : > { %v922_v47 = vrot.slane %v860_v40, 1  ;;  %v1117_v50 = vrot.slane %v1053_v41, 2  ;;  %v919_v57 = vrot.slane %v858_v43, 1  ;;  %v1114_v58 = vrot.slane %v1051_v44, 2 }
  0x99   : > { %v652_v45 = vpop.permute.xlu1 %651  ;;  %v642_v46 = vpop.permute.xlu0 %641 }
  0x9a   : > { %v861_v48 = vmul.f32 %v5933_v36, %v652_v45  ;;  %v1054_v49 = vmul.f32 %v5938_v39, %v652_v45  ;;  %v859_v51 = vmul.f32 %v5933_v36, %v642_v46  ;;  %v1052_v52 = vmul.f32 %v5938_v39, %v642_v46 }
  0x9b   : > { %v793_v63 = vmul.f32 %v5945_v42, %v652_v45  ;;  %v791_v1 = vmul.f32 %v5945_v42, %v642_v46 }
  0x9c   : > { %v924_v55 = vrot.slane %v861_v48, 1  ;;  %v1119_v56 = vrot.slane %v1054_v49, 2  ;;  %v920_v59 = vrot.slane %v859_v51, 1  ;;  %v1115_v60 = vrot.slane %v1052_v52, 2 }
  0x9d   : > { %v662_v61 = vpop.permute.xlu1 %661  ;;  %v657_v62 = vpop.permute.xlu0 %656 }
  0x9e   : > { %v925_v0 = vsel %vm918_vm1, %v922_v47, %v924_v55  ;;  %v5959_v2 = vmul.f32 %v5933_v36, %v662_v61  ;;  %v1120_v4 = vsel %vm1113_vm2, %v1117_v50, %v1119_v56  ;;  %v921_v5 = vsel %vm918_vm1, %v919_v57, %v920_v59 }
  0x9f   : > { %v1010_v3 = vadd.f32 %v925_v0, %v792_v53  ;;  %v923_v6 = vsel %vm918_vm1, %v920_v59, %v922_v47  ;;  %v1008_v8 = vadd.f32 %v921_v5, %v790_v54  ;;  %v1116_v10 = vsel %vm1113_vm2, %v1114_v58, %v1115_v60 }
  0xa0   : > { %v1009_v9 = vadd.f32 %v923_v6, %v791_v1  ;;  %v1118_v11 = vsel %vm1113_vm2, %v1115_v60, %v1117_v50  ;;  %v928_v13 = vrot.slane %v5959_v2, 1  ;;  %v1056_v14 = vmul.f32 %v5938_v39, %v662_v61 }
  0xa1   : > { %v1207_v12 = vadd.f32 %v1120_v4, %v1010_v3  ;;  %v862_v15 = vmul.f32 %v5933_v36, %v657_v62  ;;  %v672_v16 = vpop.permute.xlu1 %671  ;;  %v667_v17 = vpop.permute.xlu0 %666  ;;  %v1205_v18 = vadd.f32 %v1116_v10, %v1008_v8  ;;  %v795_v20 = vmul.f32 %v5945_v42, %v662_v61 }
  0xa2   : > { %v1206_v19 = vadd.f32 %v1118_v11, %v1009_v9  ;;  %v1055_v21 = vmul.f32 %v5938_v39, %v657_v62  ;;  %v1123_v24 = vrot.slane %v1056_v14, 2  ;;  %v865_v26 = vmul.f32 %v5933_v36, %v672_v16 }
  0xa3   : > { %v1244_v23 = vadd.f32 %v5967_v7, %v1207_v12  ;;  %v926_v25 = vrot.slane %v862_v15, 1  ;;  %v1242_v27 = vadd.f32 %v5967_v7, %v1205_v18  ;;  %v794_v29 = vmul.f32 %v5945_v42, %v657_v62 }
  0xa4   : > { %v1243_v28 = vadd.f32 %v5967_v7, %v1206_v19  ;;  %v1121_v30 = vrot.slane %v1055_v21, 2  ;;  %v1058_v34 = vmul.f32 %v5938_v39, %v672_v16  ;;  %v797_v46 = vmul.f32 %v5945_v42, %v672_v16 }
  0xa5   : > { %v1274_v31 = vmax.f32 %v1244_v23, 0.0  ;;  %v927_v32 = vsel %vm918_vm1, %v924_v55, %v926_v25  ;;  %v929_v33 = vsel %vm918_vm1, %v926_v25, %v928_v13  ;;  %v682_v35 = vpop.permute.xlu1 %681  ;;  %v677_v37 = vpop.permute.xlu0 %676  ;;  %v1272_v38 = vmax.f32 %v1242_v27, 0.0 }
  0xa6   : > { %v1273_v40 = vmax.f32 %v1243_v28, 0.0  ;;  %v1011_v41 = vadd.f32 %v927_v32, %v793_v63  ;;  %v1012_v43 = vadd.f32 %v929_v33, %v794_v29  ;;  %v1122_v44 = vsel %vm1113_vm2, %v1119_v56, %v1121_v30 }
  0xa7   : > { %1305 = vst.msk [vmem:[#allocation2 + $0x10] sm:$0xff] %vm1302_vm3, %v1274_v31  ;;  %v1124_v45 = vsel %vm1113_vm2, %v1121_v30, %v1123_v24  ;;  %v932_v47 = vrot.slane %v865_v26, 1  ;;  %1303 = vst.msk [vmem:[#allocation2] sm:$0xff] %vm1302_vm3, %v1272_v38  ;;  %v864_v50 = vmul.f32 %v5933_v36, %v667_v17  ;;  %v1057_v51 = vmul.f32 %v5938_v39, %v667_v17 }
  0xa8   : > { %1304 = vst.msk [vmem:[#allocation2 + $0x8] sm:$0xff] %vm1302_vm3, %v1273_v40  ;;  %v1208_v48 = vadd.f32 %v1122_v44, %v1011_v41  ;;  %v1209_v49 = vadd.f32 %v1124_v45, %v1012_v43  ;;  %v1127_v52 = vrot.slane %v1058_v34, 2  ;;  %v796_v53 = vmul.f32 %v5945_v42, %v667_v17 }
  0xa9   : > { %v867_v54 = vmul.f32 %v5933_v36, %v682_v35  ;;  %v1060_v55 = vmul.f32 %v5938_v39, %v682_v35  ;;  %v692_v56 = vpop.permute.xlu1 %691  ;;  %v930_v59 = vrot.slane %v864_v50, 1  ;;  %v1125_v60 = vrot.slane %v1057_v51, 2  ;;  %v687_v1 = vpop.permute.xlu0 %686 }
  0xaa   : > { %v1245_v57 = vadd.f32 %v5967_v7, %v1208_v48  ;;  %v1246_v58 = vadd.f32 %v5967_v7, %v1209_v49  ;;  %v799_v61 = vmul.f32 %v5945_v42, %v682_v35  ;;  %v866_v63 = vmul.f32 %v5933_v36, %v677_v37 }
  0xab   : > { %v936_v62 = vrot.slane %v867_v54, 1  ;;  %v1059_v0 = vmul.f32 %v5938_v39, %v677_v37  ;;  %v931_v4 = vsel %vm918_vm1, %v928_v13, %v930_v59  ;;  %v933_v5 = vsel %vm918_vm1, %v930_v59, %v932_v47 }
  0xac   : > { %v1275_v2 = vmax.f32 %v1245_v57, 0.0  ;;  %v1276_v3 = vmax.f32 %v1246_v58, 0.0  ;;  %v1013_v6 = vadd.f32 %v931_v4, %v795_v20  ;;  %v1014_v8 = vadd.f32 %v933_v5, %v796_v53 }
  0xad   : > { %v1126_v9 = vsel %vm1113_vm2, %v1123_v24, %v1125_v60  ;;  %v1131_v10 = vrot.slane %v1060_v55, 2  ;;  %v1128_v11 = vsel %vm1113_vm2, %v1125_v60, %v1127_v52  ;;  %v934_v12 = vrot.slane %v866_v63, 1  ;;  %v702_v19 = vpop.permute.xlu1 %701  ;;  %v697_v29 = vpop.permute.xlu0 %696 }
  0xae   : > { %1306 = vst.msk [vmem:[#allocation2 + $0x18] sm:$0xff] %vm1302_vm3, %v1275_v2  ;;  %1307 = vst.msk [vmem:[#allocation2 + $0x20] sm:$0xff] %vm1302_vm3, %v1276_v3  ;;  %v1129_v14 = vrot.slane %v1059_v0, 2  ;;  %v6007_v15 = vmul.f32 %v5933_v36, %v692_v56  ;;  %v1210_v16 = vadd.f32 %v1126_v9, %v1013_v6  ;;  %v1211_v13 = vadd.f32 %v1128_v11, %v1014_v8  ;;  %v1334_v58 = vld [vmem:[#allocation2] sm:$0xff] }
  0xaf   : > { %v798_v17 = vmul.f32 %v5945_v42, %v677_v37  ;;  %v6011_v18 = vmul.f32 %v5945_v42, %v692_v56  ;;  %v935_v20 = vsel %vm918_vm1, %v932_v47, %v934_v12  ;;  %v937_v21 = vsel %vm918_vm1, %v934_v12, %v936_v62  ;;  %v1335_v59 = vld [vmem:[#allocation2 + $0x8] sm:$0xff] }
  0xb0   : > { %v1130_v23 = vsel %vm1113_vm2, %v1127_v52, %v1129_v14  ;;  %v6017_v24 = vmul.f32 %v5938_v39, %v692_v56  ;;  %v1247_v25 = vadd.f32 %v5967_v7, %v1210_v16  ;;  %v1248_v26 = vadd.f32 %v5967_v7, %v1211_v13 }
  0xb1   : > { %v1015_v27 = vadd.f32 %v935_v20, %v797_v46  ;;  %v1016_v28 = vadd.f32 %v937_v21, %v798_v17  ;;  %v1132_v30 = vsel %vm1113_vm2, %v1129_v14, %v1131_v10  ;;  %v940_v31 = vrot.slane %v6007_v15, 1  ;;  %v712_v49 = vpop.permute.xlu1 %711  ;;  %v707_v60 = vpop.permute.xlu0 %706 }
  0xb2   : > { %v868_v32 = vmul.f32 %v5933_v36, %v687_v1  ;;  %v1061_v33 = vmul.f32 %v5938_v39, %v687_v1  ;;  %v1277_v34 = vmax.f32 %v1247_v25, 0.0  ;;  %v1278_v35 = vmax.f32 %v1248_v26, 0.0 }
  0xb3   : > { %v1212_v37 = vadd.f32 %v1130_v23, %v1015_v27  ;;  %v1213_v38 = vadd.f32 %v1132_v30, %v1016_v28  ;;  %v1135_v40 = vrot.slane %v6017_v24, 2  ;;  %v6027_v44 = vmul.f32 %v5933_v36, %v702_v19 }
  0xb4   : > { %v938_v41 = vrot.slane %v868_v32, 1  ;;  %v1133_v43 = vrot.slane %v1061_v33, 2  ;;  %1308 = vst.msk [vmem:[#allocation2 + $0x28] sm:$0xff] %vm1302_vm3, %v1277_v34  ;;  %1309 = vst.msk [vmem:[#allocation2 + $0x30] sm:$0xff] %vm1302_vm3, %v1278_v35  ;;  %v800_v47 = vmul.f32 %v5945_v42, %v687_v1  ;;  %v6035_v48 = vmul.f32 %v5945_v42, %v702_v19 }
  0xb5   : > { %v1249_v45 = vadd.f32 %v5967_v7, %v1212_v37  ;;  %v1250_v46 = vadd.f32 %v5967_v7, %v1213_v38  ;;  %v1064_v53 = vmul.f32 %v5938_v39, %v702_v19  ;;  %v944_v0 = vrot.slane %v6027_v44, 1  ;;  %v722_v15 = vpop.permute.xlu1 %721  ;;  %v717_v25 = vpop.permute.xlu0 %716 }
  0xb6   : > { %v939_v50 = vsel %vm918_vm1, %v936_v62, %v938_v41  ;;  %v941_v51 = vsel %vm918_vm1, %v938_v41, %v940_v31  ;;  %v1134_v52 = vsel %vm1113_vm2, %v1131_v10, %v1133_v43  ;;  %v1136_v63 = vsel %vm1113_vm2, %v1133_v43, %v1135_v40 }
  0xb7   : > { %v1279_v54 = vmax.f32 %v1249_v45, 0.0  ;;  %v1280_v55 = vmax.f32 %v1250_v46, 0.0  ;;  %v1017_v56 = vadd.f32 %v939_v50, %v799_v61  ;;  %v1018_v57 = vadd.f32 %v941_v51, %v800_v47  ;;  %v1337_v50 = vld [vmem:[#allocation2 + $0x18] sm:$0xff] }
  0xb8   : > { %v870_v1 = vmul.f32 %v5933_v36, %v697_v29  ;;  %v1063_v62 = vmul.f32 %v5938_v39, %v697_v29  ;;  %v802_v61 = vmul.f32 %v5945_v42, %v697_v29  ;;  %v6049_v4 = vmul.f32 %v5933_v36, %v712_v49 }
  0xb9   : > { %1310 = vst.msk [vmem:[#allocation2 + $0x38] sm:$0xff] %vm1302_vm3, %v1279_v54  ;;  %1311 = vst.msk [vmem:[#allocation2 + $0x40] sm:$0xff] %vm1302_vm3, %v1280_v55  ;;  %v1214_v2 = vadd.f32 %v1134_v52, %v1017_v56  ;;  %v1215_v3 = vadd.f32 %v1136_v63, %v1018_v57  ;;  %v1139_v5 = vrot.slane %v1064_v53, 2  ;;  %v6051_v9 = vpack.c.bf16 %v1335_v59, %v1334_v58  ;;  %v732_v44 = vpop.permute.xlu1 %731  ;;  %v1336_v59 = vld [vmem:[#allocation2 + $0x10] sm:$0xff] }
  0xba   : > { %v942_v6 = vrot.slane %v870_v1, 1  ;;  %v1137_v8 = vrot.slane %v1063_v62, 2  ;;  %v805_v12 = vmul.f32 %v5945_v42, %v712_v49  ;;  %v6057_v14 = vmul.f32 %v5938_v39, %v712_v49 }
  0xbb   : > { %v1251_v10 = vadd.f32 %v5967_v7, %v1214_v2  ;;  %v1252_v11 = vadd.f32 %v5967_v7, %v1215_v3  ;;  %v948_v17 = vrot.slane %v6049_v4, 1  ;;  %5188 = vmatmul.mubr.msk.bf16.vlgmr.msra.gmra.mrb[0].mxu1 %vm1302_vm3, %v6051_v9  ;;  %v804_v19 = vmul.f32 %v5945_v42, %v707_v60 }
  0xbc   : > { %v943_v16 = vsel %vm918_vm1, %v940_v31, %v942_v6  ;;  %v945_v13 = vsel %vm918_vm1, %v942_v6, %v944_v0  ;;  %5191 = vmatprep.mubr.msk.bf16.mxu1 %vm5765_vm0, %v5764_v22  ;;  %v1138_v26 = vsel %vm1113_vm2, %v1135_v40, %v1137_v8  ;;  %v1140_v27 = vsel %vm1113_vm2, %v1137_v8, %v1139_v5 }
  0xbd   : > { %v1281_v20 = vmax.f32 %v1251_v10, 0.0  ;;  %v1282_v21 = vmax.f32 %v1252_v11, 0.0  ;;  %v1019_v23 = vadd.f32 %v943_v16, %v6011_v18  ;;  %v1020_v24 = vadd.f32 %v945_v13, %v802_v61 }
  0xbe   : > { %v872_v28 = vmul.f32 %v5933_v36, %v707_v60  ;;  %v1065_v29 = vmul.f32 %v5938_v39, %v707_v60  ;;  %v6075_v18 = vmul.f32 %v5933_v36, %v722_v15  ;;  %v6078_v32 = vmul.f32 %v5938_v39, %v722_v15  ;;  %v727_v60 = vpop.permute.xlu0 %726 }
  0xbf   : > { %1312 = vst.msk [vmem:[#allocation2 + $0x48] sm:$0xff] %vm1302_vm3, %v1281_v20  ;;  %1313 = vst.msk [vmem:[#allocation2 + $0x50] sm:$0xff] %vm1302_vm3, %v1282_v21  ;;  %v1216_v30 = vadd.f32 %v1138_v26, %v1019_v23  ;;  %v1217_v31 = vadd.f32 %v1140_v27, %v1020_v24  ;;  %v1143_v33 = vrot.slane %v6057_v14, 2  ;;  %v874_v37 = vmul.f32 %v5933_v36, %v717_v25 }
  0xc0   : > { %v946_v34 = vrot.slane %v872_v28, 1  ;;  %v1141_v35 = vrot.slane %v1065_v29, 2  ;;  %v952_v41 = vrot.slane %v6075_v18, 1  ;;  %v806_v43 = vmul.f32 %v5945_v42, %v717_v25  ;;  %v5667_v18 = vld [vmem:[%s7308_s3 + $0x10] sm:$0xff]  }
  0xc1   : > { %v1253_v38 = vadd.f32 %v5967_v7, %v1216_v30  ;;  %v1254_v40 = vadd.f32 %v5967_v7, %v1217_v31  ;;  %v1147_v49 = vrot.slane %v6078_v32, 2  ;;  %v950_v56 = vrot.slane %v874_v37, 1 }
  0xc2   : > { %v947_v45 = vsel %vm918_vm1, %v944_v0, %v946_v34  ;;  %v949_v46 = vsel %vm918_vm1, %v946_v34, %v948_v17  ;;  %v1142_v47 = vsel %vm1113_vm2, %v1139_v5, %v1141_v35  ;;  %v1144_v55 = vsel %vm1113_vm2, %v1141_v35, %v1143_v33 }
  0xc3   : > { %v1283_v51 = vmax.f32 %v1253_v38, 0.0  ;;  %v1284_v52 = vmax.f32 %v1254_v40, 0.0  ;;  %v1021_v53 = vadd.f32 %v947_v45, %v6035_v48  ;;  %v1022_v54 = vadd.f32 %v949_v46, %v804_v19 }
  0xc4   : > { %v1067_v57 = vmul.f32 %v5938_v39, %v717_v25  ;;  %v6094_v58 = vmul.f32 %v5933_v36, %v732_v44  ;;  %v6099_v1 = vmul.f32 %v5938_v39, %v732_v44  ;;  %v6101_v48 = vpack.c.bf16 %v1337_v50, %v1336_v59  ;;  %v737_v25 = vpop.permute.xlu0 %736 }
  0xc5   : > { %1314 = vst.msk [vmem:[#allocation2 + $0x58] sm:$0xff] %vm1302_vm3, %v1283_v51  ;;  %1315 = vst.msk [vmem:[#allocation2 + $0x60] sm:$0xff] %vm1302_vm3, %v1284_v52  ;;  %v1218_v63 = vadd.f32 %v1142_v47, %v1021_v53  ;;  %v1219_v0 = vadd.f32 %v1144_v55, %v1022_v54  ;;  %v807_v62 = vmul.f32 %v5945_v42, %v722_v15  ;;  %v1388_v24 = vshll.u32 %v6051_v9, 16  ;;  %v1339_v55 = vld [vmem:[#allocation2 + $0x28] sm:$0xff] }
  0xc6   : > { %v951_v2 = vsel %vm918_vm1, %v948_v17, %v950_v56  ;;  %v953_v3 = vsel %vm918_vm1, %v950_v56, %v952_v41  ;;  %v1145_v61 = vrot.slane %v1067_v57, 2  ;;  %5192 = vmatmul.mubr.msk.bf16.gmra.mrb[4].mxu1 %vm1302_vm3, %v6101_v48  ;;  %v956_v14 = vrot.slane %v6094_v58, 1 }
  0xc7   : > { %v1255_v4 = vadd.f32 %v5967_v7, %v1218_v63  ;;  %v1256_v5 = vadd.f32 %v5967_v7, %v1219_v0  ;;  %v1023_v6 = vadd.f32 %v951_v2, %v805_v12  ;;  %v1024_v8 = vadd.f32 %v953_v3, %v806_v43  ;;  %5195 = vmatprep.mubr.msk.bf16.mxu1 %vm5765_vm0, %v5764_v22  ;;  %v742_v12 = vpop.permute.xlu1 %741  ;;  %v1338_v3 = vld [vmem:[#allocation2 + $0x20] sm:$0xff] }
  0xc8   : > { %v1146_v10 = vsel %vm1113_vm2, %v1143_v33, %v1145_v61  ;;  %v1148_v11 = vsel %vm1113_vm2, %v1145_v61, %v1147_v49  ;;  %v1151_v15 = vrot.slane %v6099_v1, 2  ;;  %v808_v20 = vmul.f32 %v5945_v42, %v727_v60  ;;  %v747_v56 = vpop.permute.xlu0 %746 }
  0xc9   : > { %v1285_v16 = vmax.f32 %v1255_v4, 0.0  ;;  %v1286_v13 = vmax.f32 %v1256_v5, 0.0  ;;  %v1220_v17 = vadd.f32 %v1146_v10, %v1023_v6  ;;  %v1221_v19 = vadd.f32 %v1148_v11, %v1024_v8 }
  0xca   : > { %v876_v21 = vmul.f32 %v5933_v36, %v727_v60  ;;  %v1069_v23 = vmul.f32 %v5938_v39, %v727_v60  ;;  %v1386_v28 = vshrl.u32 %v6051_v9, 16  ;;  %v1393_v29 = vshll.u32 %v6101_v48, 16 }
  0xcb   : > { %1316 = vst.msk [vmem:[#allocation2 + $0x68] sm:$0xff] %vm1302_vm3, %v1285_v16  ;;  %1317 = vst.msk [vmem:[#allocation2 + $0x70] sm:$0xff] %vm1302_vm3, %v1286_v13  ;;  %v1257_v26 = vadd.f32 %v5967_v7, %v1220_v17  ;;  %v1258_v27 = vadd.f32 %v5967_v7, %v1221_v19  ;;  %v1390_v32 = vrot.slane %v1388_v24, 1  ;;  %v6129_v33 = vmul.f32 %v5933_v36, %v742_v12 }
  0xcc   : > { %v954_v30 = vrot.slane %v876_v21, 1  ;;  %v1149_v31 = vrot.slane %v1069_v23, 2  ;;  %v1395_v37 = vrot.slane %v1393_v29, 1  ;;  %v6132_v38 = vmul.f32 %v5938_v39, %v742_v12  ;;  %v757_v24 = vpop.permute.xlu0 %756 }
  0xcd   : > { %v1287_v34 = vmax.f32 %v1257_v26, 0.0  ;;  %v1288_v35 = vmax.f32 %v1258_v27, 0.0  ;;  %v809_v40 = vmul.f32 %v5945_v42, %v732_v44  ;;  %v1391_v52 = vor.u32 %v1390_v32, %v1386_v28 }
  0xce   : > { %v955_v43 = vsel %vm918_vm1, %v952_v41, %v954_v30  ;;  %v957_v45 = vsel %vm918_vm1, %v954_v30, %v956_v14  ;;  %v1150_v46 = vsel %vm1113_vm2, %v1147_v49, %v1149_v31  ;;  %v1152_v51 = vsel %vm1113_vm2, %v1149_v31, %v1151_v15  ;;  %v752_v41 = vpop.permute.xlu1 %751 }
  0xcf   : > { %1318 = vst.msk [vmem:[#allocation2 + $0x78] sm:$0xff] %vm1302_vm3, %v1287_v34  ;;  %1319 = vst.msk [vmem:[#allocation2 + $0x80] sm:$0xff] %vm1302_vm3, %v1288_v35  ;;  %v1025_v47 = vadd.f32 %v955_v43, %v807_v62  ;;  %v1026_v50 = vadd.f32 %v957_v45, %v808_v20  ;;  %v960_v44 = vrot.slane %v6129_v33, 1  ;;  %v1155_v49 = vrot.slane %v6132_v38, 2 }
  0xd0   : > { %v878_v53 = vmul.f32 %v5933_v36, %v737_v25  ;;  %v1071_v54 = vmul.f32 %v5938_v39, %v737_v25  ;;  %v1396_v59 = vsel %vm1384_vm4, %v1391_v52, %v1395_v37  ;;  %v810_v60 = vmul.f32 %v5945_v42, %v737_v25 }
  0xd1   : > { %v1222_v57 = vadd.f32 %v1150_v46, %v1025_v47  ;;  %v1223_v58 = vadd.f32 %v1152_v51, %v1026_v50  ;;  %5126 = vmatmul.mubr.msk.bf16.vlgmr.msra.gmra.mrb[0].mxu0 %vm1302_vm3, %v1396_v59  ;;  %v6156_v62 = vmul.f32 %v5933_v36, %v752_v41  ;;  %v6159_v2 = vmul.f32 %v5938_v39, %v752_v41 }
  0xd2   : > { %v958_v63 = vrot.slane %v878_v53, 1  ;;  %v1153_v0 = vrot.slane %v1071_v54, 2  ;;  %5248 = vmatpush3.bf16.msra.mxu0 %v5667_v18  ;;  %5129 = vmatprep.mubr.msk.bf16.mxu0 %vm5765_vm0, %v5764_v22  ;;  %v6165_v5 = vpack.c.bf16 %v1339_v55, %v1338_v3  ;;  %v811_v6 = vmul.f32 %v5945_v42, %v742_v12  ;;  %v762_v20 = vpop.permute.xlu1 %761  ;;  %v1341_v53 = vld [vmem:[#allocation2 + $0x38] sm:$0xff]  ;;  %v767_v54 = vpop.permute.xlu0 %766 }
  0xd3   : > { %v1259_v61 = vadd.f32 %v5967_v7, %v1222_v57  ;;  %v1260_v4 = vadd.f32 %v5967_v7, %v1223_v58  ;;  %v1397_v11 = vshrl.u32 %v6101_v48, 16  ;;  %5375 = vmatprep.subr.bf16.mxu0 %v5764_v22  ;;  %v964_v21 = vrot.slane %v6156_v62, 1 }
  0xd4   : > { %v959_v8 = vsel %vm918_vm1, %v956_v14, %v958_v63  ;;  %v961_v10 = vsel %vm918_vm1, %v958_v63, %v960_v44  ;;  %5196 = vmatmul.mubr.msk.bf16.gmra.mrb[8].mxu1 %vm1302_vm3, %v6165_v5  ;;  %v1154_v12 = vsel %vm1113_vm2, %v1151_v15, %v1153_v0  ;;  %v1156_v14 = vsel %vm1113_vm2, %v1153_v0, %v1155_v49  ;;  %v1340_v63 = vld [vmem:[#allocation2 + $0x30] sm:$0xff] }
  0xd5   : > { %v1289_v16 = vmax.f32 %v1259_v61, 0.0  ;;  %v1290_v13 = vmax.f32 %v1260_v4, 0.0  ;;  %v1027_v17 = vadd.f32 %v959_v8, %v809_v40  ;;  %v1028_v19 = vadd.f32 %v961_v10, %v810_v60  ;;  %5199 = vmatprep.mubr.msk.bf16.mxu1 %vm5765_vm0, %v5764_v22 }
  0xd6   : > { %v880_v23 = vmul.f32 %v5933_v36, %v747_v56  ;;  %v1159_v1 = vrot.slane %v6159_v2, 2  ;;  %v1073_v15 = vmul.f32 %v5938_v39, %v747_v56  ;;  %v812_v27 = vmul.f32 %v5945_v42, %v747_v56  ;;  %v772_v50 = vpop.permute.xlu1 %771 }
  0xd7   : > { %1320 = vst.msk [vmem:[#allocation2 + $0x88] sm:$0xff] %vm1302_vm3, %v1289_v16  ;;  %1321 = vst.msk [vmem:[#allocation2 + $0x90] sm:$0xff] %vm1302_vm3, %v1290_v13  ;;  %v1224_v25 = vadd.f32 %v1154_v12, %v1027_v17  ;;  %v1225_v26 = vadd.f32 %v1156_v14, %v1028_v19  ;;  %v1399_v29 = vor.u32 %v1397_v11, %v1395_v37  ;;  %v1401_v30 = vshll.u32 %v6165_v5, 16 }
  0xd8   : > { %v962_v28 = vrot.slane %v880_v23, 1  ;;  %v1157_v33 = vrot.slane %v1073_v15, 2  ;;  %v6191_v34 = vmul.f32 %v5933_v36, %v762_v20  ;;  %v6198_v43 = vmul.f32 %v5938_v39, %v762_v20  ;;  %v777_v23 = vpop.permute.xlu0 %776 }
  0xd9   : > { %v1261_v31 = vadd.f32 %v5967_v7, %v1224_v25  ;;  %v1262_v32 = vadd.f32 %v5967_v7, %v1225_v26  ;;  %v6195_v40 = vrot.slane %v1401_v30, 1  ;;  %v813_v51 = vmul.f32 %v5945_v42, %v752_v41 }
  0xda   : > { %v963_v35 = vsel %vm918_vm1, %v960_v44, %v962_v28  ;;  %v965_v38 = vsel %vm918_vm1, %v962_v28, %v964_v21  ;;  %v1158_v52 = vsel %vm1113_vm2, %v1155_v49, %v1157_v33  ;;  %v1160_v18 = vsel %vm1113_vm2, %v1157_v33, %v1159_v1  ;;  %v782_v14 = vpop.permute.xlu1 %781 }
  0xdb   : > { %v1291_v37 = vmax.f32 %v1261_v31, 0.0  ;;  %v1292_v45 = vmax.f32 %v1262_v32, 0.0  ;;  %v1029_v46 = vadd.f32 %v963_v35, %v811_v6  ;;  %v1030_v47 = vadd.f32 %v965_v38, %v812_v27 }
  0xdc   : > { %v1404_v44 = vsel %vm1384_vm4, %v1399_v29, %v6195_v40  ;;  %v968_v57 = vrot.slane %v6191_v34, 1  ;;  %v882_v41 = vmul.f32 %v5933_v36, %v757_v24  ;;  %v815_v49 = vmul.f32 %v5945_v42, %v762_v20 }
  0xdd   : > { %1322 = vst.msk [vmem:[#allocation2 + $0x98] sm:$0xff] %vm1302_vm3, %v1291_v37  ;;  %1323 = vst.msk [vmem:[#allocation2 + $0xa0] sm:$0xff] %vm1302_vm3, %v1292_v45  ;;  %v1226_v55 = vadd.f32 %v1158_v52, %v1029_v46  ;;  %v1227_v56 = vadd.f32 %v1160_v18, %v1030_v47  ;;  %5130 = vmatmul.mubr.msk.bf16.gmra.mrb[4].mxu0 %vm1302_vm3, %v1404_v44  ;;  %v1163_v58 = vrot.slane %v6198_v43, 2  ;;  %v1405_v28 = vshrl.u32 %v6165_v5, 16  ;;  %v1343_v18 = vld [vmem:[#allocation2 + $0x48] sm:$0xff]  ;;  %v1043_v44 = vpop.permute.xlu0 %1042 }
  0xde   : > { %v1075_v59 = vmul.f32 %v5938_v39, %v757_v24  ;;  %v6214_v60 = vmul.f32 %v5933_v36, %v772_v50  ;;  %5133 = vmatprep.mubr.msk.bf16.mxu0 %vm5765_vm0, %v5764_v22  ;;  %v966_v2 = vrot.slane %v882_v41, 1  ;;  %v6220_v3 = vpack.c.bf16 %v1341_v53, %v1340_v63  ;;  %v1345_v63 = vld [vmem:[#allocation2 + $0x58] sm:$0xff] }
  0xdf   : > { %v1263_v0 = vadd.f32 %v5967_v7, %v1226_v55  ;;  %v1264_v62 = vadd.f32 %v5967_v7, %v1227_v56  ;;  %v814_v61 = vmul.f32 %v5945_v42, %v757_v24  ;;  %v6224_v6 = vmul.f32 %v5945_v42, %v772_v50 }
  0xe0   : > { %v1161_v4 = vrot.slane %v1075_v59, 2  ;;  %v6227_v8 = vmul.f32 %v5938_v39, %v772_v50  ;;  %v967_v16 = vsel %vm918_vm1, %v964_v21, %v966_v2  ;;  %v969_v13 = vsel %vm918_vm1, %v966_v2, %v968_v57  ;;  %5200 = vmatmul.mubr.msk.bf16.gmra.mrb[12].mxu1 %vm1302_vm3, %v6220_v3  ;;  %v1342_v59 = vld [vmem:[#allocation2 + $0x40] sm:$0xff] }
  0xe1   : > { %v1293_v10 = vmax.f32 %v1263_v0, 0.0  ;;  %v1294_v11 = vmax.f32 %v1264_v62, 0.0  ;;  %v1031_v17 = vadd.f32 %v967_v16, %v813_v51  ;;  %v1032_v19 = vadd.f32 %v969_v13, %v814_v61  ;;  %5203 = vmatprep.mubr.msk.bf16.mxu1 %vm5765_vm0, %v5764_v22 }
  0xe2   : > { %v1162_v20 = vsel %vm1113_vm2, %v1159_v1, %v1161_v4  ;;  %v972_v12 = vrot.slane %v6214_v60, 1  ;;  %v1164_v21 = vsel %vm1113_vm2, %v1161_v4, %v1163_v58  ;;  %v884_v24 = vmul.f32 %v5933_v36, %v767_v54 }
  0xe3   : > { %1324 = vst.msk [vmem:[#allocation2 + $0xa8] sm:$0xff] %vm1302_vm3, %v1293_v10  ;;  %1325 = vst.msk [vmem:[#allocation2 + $0xb0] sm:$0xff] %vm1302_vm3, %v1294_v11  ;;  %v1077_v25 = vmul.f32 %v5938_v39, %v767_v54  ;;  %v1409_v26 = vshll.u32 %v6220_v3, 16  ;;  %v1228_v1 = vadd.f32 %v1162_v20, %v1031_v17  ;;  %v1229_v15 = vadd.f32 %v1164_v21, %v1032_v19  ;;  %v1344_v10 = vld [vmem:[#allocation2 + $0x50] sm:$0xff] }
  0xe4   : > { %v1167_v27 = vrot.slane %v6227_v8, 2  ;;  %v970_v29 = vrot.slane %v884_v24, 1  ;;  %v887_v32 = vmul.f32 %v5933_v36, %v782_v14  ;;  %v816_v35 = vmul.f32 %v5945_v42, %v767_v54 }
  0xe5   : > { %v1165_v30 = vrot.slane %v1077_v25, 2  ;;  %v1411_v31 = vrot.slane %v1409_v26, 1  ;;  %v1265_v33 = vadd.f32 %v5967_v7, %v1228_v1  ;;  %v1266_v34 = vadd.f32 %v5967_v7, %v1229_v15 }
  0xe6   : > { %v819_v38 = vmul.f32 %v5945_v42, %v782_v14  ;;  %v971_v43 = vsel %vm918_vm1, %v968_v57, %v970_v29  ;;  %v973_v37 = vsel %vm918_vm1, %v970_v29, %v972_v12  ;;  %v1407_v45 = vor.u32 %v1405_v28, %v6195_v40 }
  0xe7   : > { %v1080_v46 = vmul.f32 %v5938_v39, %v782_v14  ;;  %v1295_v47 = vmax.f32 %v1265_v33, 0.0  ;;  %v1296_v50 = vmax.f32 %v1266_v34, 0.0  ;;  %v1033_v51 = vadd.f32 %v971_v43, %v815_v49 }
  0xe8   : > { %v1034_v52 = vadd.f32 %v973_v37, %v816_v35  ;;  %v1166_v53 = vsel %vm1113_vm2, %v1163_v58, %v1165_v30  ;;  %v1168_v54 = vsel %vm1113_vm2, %v1165_v30, %v1167_v27  ;;  %v1412_v55 = vsel %vm1384_vm4, %v1407_v45, %v1411_v31  ;;  %v1347_v30 = vld [vmem:[#allocation2 + $0x68] sm:$0xff] }
  0xe9   : > { %v976_v56 = vrot.slane %v887_v32, 1  ;;  %1326 = vst.msk [vmem:[#allocation2 + $0xb8] sm:$0xff] %vm1302_vm3, %v1295_v47  ;;  %1327 = vst.msk [vmem:[#allocation2 + $0xc0] sm:$0xff] %vm1302_vm3, %v1296_v50  ;;  %v1230_v40 = vadd.f32 %v1166_v53, %v1033_v51  ;;  %5134 = vmatmul.mubr.msk.bf16.gmra.mrb[8].mxu0 %vm1302_vm3, %v1412_v55  ;;  %v886_v41 = vmul.f32 %v5933_v36, %v777_v23  ;;  %v1171_v58 = vrot.slane %v1080_v46, 2  ;;  %v1349_v47 = vld [vmem:[#allocation2 + $0x78] sm:$0xff]  ;;  %v1348_v51 = vld [vmem:[#allocation2 + $0x70] sm:$0xff] }
  0xea   : > { %v1231_v57 = vadd.f32 %v1168_v54, %v1034_v52  ;;  %v1079_v49 = vmul.f32 %v5938_v39, %v777_v23  ;;  %v818_v0 = vmul.f32 %v5945_v42, %v777_v23  ;;  %5137 = vmatprep.mubr.msk.bf16.mxu0 %vm5765_vm0, %v5764_v22  ;;  %v6267_v62 = vpack.c.bf16 %v1343_v18, %v1342_v59  ;;  %v1351_v18 = vld [vmem:[#allocation2 + $0x88] sm:$0xff]  ;;  %v1350_v54 = vld [vmem:[#allocation2 + $0x80] sm:$0xff]  ;;  %v1353_v55 = vld [vmem:[#allocation2 + $0x98] sm:$0xff] }
  0xeb   : > { %v1081_v2 = vmul.f32 %v5938_v39, %v1043_v44  ;;  %v1267_v61 = vadd.f32 %v5967_v7, %v1230_v40  ;;  %v974_v8 = vrot.slane %v886_v41, 1  ;;  %v1413_v42 = vshrl.u32 %v6220_v3, 16 }
  0xec   : > { %v1268_v4 = vadd.f32 %v5967_v7, %v1231_v57  ;;  %v1169_v36 = vrot.slane %v1079_v49, 2  ;;  %5204 = vmatmul.mubr.msk.bf16.gmra.mrb[16].mxu1 %vm1302_vm3, %v6267_v62  ;;  %v1417_v16 = vshll.u32 %v6267_v62, 16  ;;  %v6276_v13 = vpack.c.bf16 %v1345_v63, %v1344_v10  ;;  %v1355_v57 = vld [vmem:[#allocation2 + $0xa8] sm:$0xff] }
  0xed   : > { %v1173_v11 = vrot.slane %v1081_v2, 2  ;;  %v1297_v17 = vmax.f32 %v1267_v61, 0.0  ;;  %v975_v39 = vsel %vm918_vm1, %v972_v12, %v974_v8  ;;  %v977_v20 = vsel %vm918_vm1, %v974_v8, %v976_v56  ;;  %5207 = vmatprep.mubr.msk.bf16.mxu1 %vm5765_vm0, %v5764_v22  ;;  %v1352_v2 = vld [vmem:[#allocation2 + $0x90] sm:$0xff]  ;;  %v1354_v61 = vld [vmem:[#allocation2 + $0xa0] sm:$0xff] }
  0xee   : > { %v1298_v19 = vmax.f32 %v1268_v4, 0.0  ;;  %v1037_v14 = vadd.f32 %v976_v56, %v819_v38  ;;  %v1035_v23 = vadd.f32 %v975_v39, %v6224_v6  ;;  %v1036_v21 = vadd.f32 %v977_v20, %v818_v0  ;;  %v1356_v4 = vld [vmem:[#allocation2 + $0xb0] sm:$0xff] }
  0xef   : > { %v1415_v24 = vor.u32 %v1413_v42, %v1411_v31  ;;  %1328 = vst.msk [vmem:[#allocation2 + $0xc8] sm:$0xff] %vm1302_vm3, %v1297_v17  ;;  %v1170_v25 = vsel %vm1113_vm2, %v1167_v27, %v1169_v36  ;;  %v1172_v60 = vsel %vm1113_vm2, %v1169_v36, %v1171_v58  ;;  %v1174_v12 = vsel %vm1113_vm2, %v1171_v58, %v1173_v11  ;;  %v1346_v27 = vld [vmem:[#allocation2 + $0x60] sm:$0xff] }
  0xf0   : > { %1329 = vst.msk [vmem:[#allocation2 + $0xd0] sm:$0xff] %vm1302_vm3, %v1298_v19  ;;  %v1419_v26 = vrot.slane %v1417_v16, 1  ;;  %v1232_v1 = vadd.f32 %v1170_v25, %v1035_v23  ;;  %v1233_v15 = vadd.f32 %v1172_v60, %v1036_v21  ;;  %v1234_v28 = vadd.f32 %v1174_v12, %v1037_v14  ;;  %v1357_v41 = vld [vmem:[#allocation2 + $0xb8] sm:$0xff] }
  0xf1   : > { %v1425_v6 = vshll.u32 %v6276_v13, 16  ;;  %v6300_v43 = vpack.c.bf16 %v1347_v30, %v1346_v27  ;;  %v1421_v37 = vshrl.u32 %v6267_v62, 16  ;;  %v6313_v52 = vpack.c.bf16 %v1349_v47, %v1348_v51 }
  0xf2   : > { %v1420_v29 = vsel %vm1384_vm4, %v1415_v24, %v1419_v26  ;;  %v1269_v31 = vadd.f32 %v5967_v7, %v1232_v1  ;;  %v1270_v32 = vadd.f32 %v5967_v7, %v1233_v15  ;;  %v1271_v33 = vadd.f32 %v5967_v7, %v1234_v28 }
  0xf3   : > { %5138 = vmatmul.mubr.msk.bf16.gmra.mrb[12].mxu0 %vm1302_vm3, %v1420_v29  ;;  %v1427_v45 = vrot.slane %v1425_v6, 1  ;;  %v1423_v7 = vor.u32 %v1421_v37, %v1419_v26  ;;  %v1433_v46 = vshll.u32 %v6300_v43, 16  ;;  %v1429_v44 = vshrl.u32 %v6276_v13, 16 }
  0xf4   : > { %5141 = vmatprep.mubr.msk.bf16.mxu0 %vm5765_vm0, %v5764_v22  ;;  %v1299_v34 = vmax.f32 %v1269_v31, 0.0  ;;  %v1300_v35 = vmax.f32 %v1270_v32, 0.0  ;;  %v1301_v38 = vmax.f32 %v1271_v33, 0.0  ;;  %5208 = vmatmul.mubr.msk.bf16.gmra.mrb[20].mxu1 %vm1302_vm3, %v6276_v13  ;;  %v1917_v56 = vrot.slane %v6101_v48, 1 }
  0xf5   : > { %5211 = vmatprep.mubr.msk.bf16.mxu1 %vm5765_vm0, %v5764_v22  ;;  %v1428_v50 = vsel %vm1384_vm4, %v1423_v7, %v1427_v45  ;;  %v1435_v53 = vrot.slane %v1433_v46, 1  ;;  %v1919_v40 = vrot.slane %v6165_v5, 1  ;;  %v1916_v59 = vrot.slane %v6051_v9, 1  ;;  %v1358_v5 = vld [vmem:[#allocation2 + $0xc0] sm:$0xff] }
  0xf6   : > { %1330 = vst.msk [vmem:[#allocation2 + $0xd8] sm:$0xff] %vm1302_vm3, %v1299_v34  ;;  %1331 = vst.msk [vmem:[#allocation2 + $0xe0] sm:$0xff] %vm1302_vm3, %v1300_v35  ;;  %v1359_v49 = vld [vmem:[#allocation2 + $0xc8] sm:$0xff]  ;;  %v1921_v63 = vrot.slane %v6220_v3, 1  ;;  %v1431_v58 = vor.u32 %v1429_v44, %v1427_v45  ;;  %v6324_v0 = vpack.c.bf16 %v1351_v18, %v1350_v54  ;;  %v1441_v48 = vshll.u32 %v6313_v52, 16 }
  0xf7   : > { %1333 = vst.msk [vmem:[#allocation2 + $0xe8] sm:$0x7f] %vm1332_vm5, %v1301_v38  ;;  %v6327_v8 = vpack.c.bf16 %v1353_v55, %v1352_v2  ;;  %v6330_v11 = vsel %vm918_vm1, %v1916_v59, %v1917_v56  ;;  %v6333_v9 = vsel %vm918_vm1, %v1917_v56, %v1919_v40  ;;  %v6336_v42 = vpack.c.bf16 %v1355_v57, %v1354_v61  ;;  %v1360_v19 = vld [vmem:[#allocation2 + $0xd0] sm:$0xff] }
  0xf8   : > { %v1436_v3 = vsel %vm1384_vm4, %v1431_v58, %v1435_v53  ;;  %v6338_v16 = vpack.c.bf16 %v1357_v41, %v1356_v4  ;;  %v6340_v17 = vpack.c.bf16 %v1359_v49, %v1358_v5  ;;  %v6343_v20 = vsel %vm918_vm1, %v1919_v40, %v1921_v63 }
  0xf9   : > { %v1923_v14 = vrot.slane %v6267_v62, 1  ;;  %v1925_v23 = vrot.slane %v6276_v13, 1  ;;  %v1927_v21 = vrot.slane %v6300_v43, 1  ;;  %v1929_v60 = vrot.slane %v6313_v52, 1 }
  0xfa   : > { %v1931_v12 = vrot.slane %v6324_v0, 1  ;;  %v1933_v1 = vrot.slane %v6327_v8, 1  ;;  %v1437_v15 = vshrl.u32 %v6300_v43, 16  ;;  %v1443_v28 = vrot.slane %v1441_v48, 1 }
  0xfb   : > { %5142 = vmatmul.mubr.msk.bf16.gmra.mrb[16].mxu0 %vm1302_vm3, %v1428_v50  ;;  %v6358_v26 = vsel %vm918_vm1, %v1921_v63, %v1923_v14  ;;  %v6361_v62 = vsel %vm918_vm1, %v1923_v14, %v1925_v23  ;;  %v6364_v13 = vsel %vm918_vm1, %v1925_v23, %v1927_v21  ;;  %v6371_v29 = vsel %vm918_vm1, %v1927_v21, %v1929_v60 }
  0xfc   : > { %5145 = vmatprep.mubr.msk.bf16.mxu0 %vm5765_vm0, %v5764_v22  ;;  %5212 = vmatmul.mubr.msk.bf16.gmra.mrb[24].mxu1 %vm1302_vm3, %v6300_v43  ;;  %v6376_v6 = vsel %vm918_vm1, %v1929_v60, %v1931_v12  ;;  %v6379_v30 = vsel %vm918_vm1, %v1931_v12, %v1933_v1  ;;  %v1935_v31 = vrot.slane %v6336_v42, 1  ;;  %v1937_v32 = vrot.slane %v6338_v16, 1 }
  0xfd   : > { %5215 = vmatprep.mubr.msk.bf16.mxu1 %vm5765_vm0, %v5764_v22  ;;  %v1361_v36 = vld [vmem:[#allocation2 + $0xd8] sm:$0xff]  ;;  %v1362_v39 = vld [vmem:[#allocation2 + $0xe0] sm:$0xff]  ;;  %v1939_v33 = vrot.slane %v6340_v17, 1  ;;  %v1439_v35 = vor.u32 %v1437_v15, %v1435_v53  ;;  %v1449_v47 = vshll.u32 %v6324_v0, 16  ;;  %v1445_v50 = vshrl.u32 %v6313_v52, 16 }
  0xfe   : > { %v1363_v10 = vld [vmem:[#allocation2 + $0xe8] sm:$0x7f]  ;;  %v6349_v24 = vpack.c.bf16 %v1361_v36, %v1360_v19  ;;  %v6387_v38 = vsel %vm918_vm1, %v1933_v1, %v1935_v31  ;;  %v6390_v43 = vsel %vm918_vm1, %v1935_v31, %v1937_v32  ;;  %v1457_v53 = vshll.u32 %v6327_v8, 16 }
  0xff   : > { %v6351_v25 = vpack.c.bf16 %v1363_v10, %v1362_v39  ;;  %v6393_v37 = vsel %vm918_vm1, %v1937_v32, %v1939_v33  ;;  %v1444_v46 = vsel %vm1384_vm4, %v1439_v35, %v1443_v28  ;;  %v1451_v51 = vrot.slane %v1449_v47, 1 }
 0x100   : > { %v1941_v27 = vrot.slane %v6349_v24, 1  ;;  %v1447_v18 = vor.u32 %v1445_v50, %v1443_v28  ;;  %v1453_v54 = vshrl.u32 %v6324_v0, 16  ;;  %v1465_v40 = vshll.u32 %v6336_v42, 16 }
 0x101   : > { %v1943_v34 = vrot.slane %v6351_v25, 1  ;;  %v1461_v57 = vshrl.u32 %v6327_v8, 16  ;;  %v1473_v63 = vshll.u32 %v6338_v16, 16  ;;  %v1469_v58 = vshrl.u32 %v6336_v42, 16 }
 0x102   : > { %v6396_v45 = vsel %vm918_vm1, %v1939_v33, %v1941_v27  ;;  %v1452_v44 = vsel %vm1384_vm4, %v1447_v18, %v1451_v51  ;;  %v1455_v55 = vor.u32 %v1453_v54, %v1451_v51  ;;  %v1467_v41 = vrot.slane %v1465_v40, 1 }
 0x103   : > { %5146 = vmatmul.mubr.msk.bf16.gmra.mrb[20].mxu0 %vm1302_vm3, %v1436_v3  ;;  %v6401_v7 = vsel %vm918_vm1, %v1941_v27, %v1943_v34  ;;  %v1481_v4 = vshll.u32 %v6340_v17, 16  ;;  %v1477_v48 = vshrl.u32 %v6338_v16, 16  ;;  %v1489_v10 = vshll.u32 %v6349_v24, 16 }
 0x104   : > { %5149 = vmatprep.mubr.msk.bf16.mxu0 %vm5765_vm0, %v5764_v22  ;;  %5216 = vmatmul.mubr.msk.bf16.gmra.mrb[28].mxu1 %vm1302_vm3, %v6313_v52  ;;  %v1459_v52 = vrot.slane %v1457_v53, 1  ;;  %v1471_v2 = vor.u32 %v1469_v58, %v1467_v41  ;;  %v1485_v3 = vshrl.u32 %v6340_v17, 16  ;;  %v1497_v39 = vshll.u32 %v6351_v25, 16 }
 0x105   : > { %5219 = vmatprep.mubr.msk.bf16.mxu1 %vm5765_vm0, %v5764_v22  ;;  %v1493_v14 = vshrl.u32 %v6349_v24, 16  ;;  %v1501_v60 = vshrl.u32 %v6351_v25, 16 }
 0x106   : > { %v1460_v56 = vsel %vm1384_vm4, %v1455_v55, %v1459_v52  ;;  %v1463_v49 = vor.u32 %v1461_v57, %v1459_v52  ;;  %v1499_v23 = vrot.slane %v1497_v39, 1 }
 0x108   : > { %v1468_v59 = vsel %vm1384_vm4, %v1463_v49, %v1467_v41  ;;  %v1503_v12 = vor.u32 %v1501_v60, %v1499_v23 }
 0x10b   : > { %5150 = vmatmul.mubr.msk.bf16.gmra.mrb[24].mxu0 %vm1302_vm3, %v1444_v46 }
 0x10c   : > { %5153 = vmatprep.mubr.msk.bf16.mxu0 %vm5765_vm0, %v5764_v22  ;;  %5220 = vmatmul.mubr.msk.bf16.gmra.mrb[32].mxu1 %vm1302_vm3, %v6324_v0  ;;  %v1475_v0 = vrot.slane %v1473_v63, 1 }
 0x10d   : > { %5223 = vmatprep.mubr.msk.bf16.mxu1 %vm5765_vm0, %v5764_v22 }
 0x10e   : > { %v1476_v61 = vsel %vm1384_vm4, %v1471_v2, %v1475_v0  ;;  %v1479_v5 = vor.u32 %v1477_v48, %v1475_v0 }
 0x113   : > { %5154 = vmatmul.mubr.msk.bf16.gmra.mrb[28].mxu0 %vm1302_vm3, %v1452_v44 }
 0x114   : > { %5157 = vmatprep.mubr.msk.bf16.mxu0 %vm5765_vm0, %v5764_v22  ;;  %5224 = vmatmul.mubr.msk.bf16.gmra.mrb[36].mxu1 %vm1302_vm3, %v6327_v8  ;;  %v1483_v8 = vrot.slane %v1481_v4, 1 }
 0x115   : > { %5227 = vmatprep.mubr.msk.bf16.mxu1 %vm5765_vm0, %v5764_v22 }
 0x116   : > { %v1484_v36 = vsel %vm1384_vm4, %v1479_v5, %v1483_v8 }
 0x11b   : > { %5158 = vmatmul.mubr.msk.bf16.gmra.mrb[32].mxu0 %vm1302_vm3, %v1460_v56 }
 0x11c   : > { %5161 = vmatprep.mubr.msk.bf16.mxu0 %vm5765_vm0, %v5764_v22  ;;  %5228 = vmatmul.mubr.msk.bf16.gmra.mrb[40].mxu1 %vm1302_vm3, %v6336_v42  ;;  %v1491_v42 = vrot.slane %v1489_v10, 1 }
 0x11d   : > { %5231 = vmatprep.mubr.msk.bf16.mxu1 %vm5765_vm0, %v5764_v22 }
 0x123   : > { %5162 = vmatmul.mubr.msk.bf16.gmra.mrb[36].mxu0 %vm1302_vm3, %v1468_v59 }
 0x124   : > { %5165 = vmatprep.mubr.msk.bf16.mxu0 %vm5765_vm0, %v5764_v22  ;;  %5232 = vmatmul.mubr.msk.bf16.gmra.mrb[44].mxu1 %vm1302_vm3, %v6338_v16  ;;  %v1487_v16 = vor.u32 %v1485_v3, %v1483_v8 }
 0x125   : > { %5235 = vmatprep.mubr.msk.bf16.mxu1 %vm5765_vm0, %v5764_v22 }
 0x126   : > { %v1492_v19 = vsel %vm1384_vm4, %v1487_v16, %v1491_v42 }
 0x12b   : > { %5166 = vmatmul.mubr.msk.bf16.gmra.mrb[40].mxu0 %vm1302_vm3, %v1476_v61 }
 0x12c   : > { %5169 = vmatprep.mubr.msk.bf16.mxu0 %vm5765_vm0, %v5764_v22  ;;  %5236 = vmatmul.mubr.msk.bf16.gmra.mrb[48].mxu1 %vm1302_vm3, %v6340_v17  ;;  %v1495_v17 = vor.u32 %v1493_v14, %v1491_v42 }
 0x12d   : > { %5239 = vmatprep.mubr.msk.bf16.mxu1 %vm5765_vm0, %v5764_v22 }
 0x12e   : > { %v1500_v21 = vsel %vm1384_vm4, %v1495_v17, %v1499_v23 }
 0x133   : > { %5170 = vmatmul.mubr.msk.bf16.gmra.mrb[44].mxu0 %vm1302_vm3, %v1484_v36 }
 0x134   : > { %5173 = vmatprep.mubr.msk.bf16.mxu0 %vm5765_vm0, %v5764_v22  ;;  %5240 = vmatmul.mubr.msk.bf16.gmra.mrb[52].mxu1 %vm1302_vm3, %v6349_v24 }
 0x135   : > { %5243 = vmatprep.mubr.msk.bf16.mxu1 %vm5765_vm0, %v5764_v22 }
 0x13b   : > { %5174 = vmatmul.mubr.msk.bf16.gmra.mrb[48].mxu0 %vm1302_vm3, %v1492_v19 }
 0x13c   : > { %5177 = vmatprep.mubr.msk.bf16.mxu0 %vm5765_vm0, %v5764_v22  ;;  %5244 = vmatmul.mubr.msk.bf16.gmra.mrb[56].mxu1 %vm1302_vm3, %v6351_v25 }
 0x13d   : > { %5311 = vmatprep.mubr.msk.bf16.mxu1 %vm5765_vm0, %v5764_v22 }
 0x143   : > { %5178 = vmatmul.mubr.msk.bf16.gmra.mrb[52].mxu0 %vm1302_vm3, %v1500_v21 }
 0x144   : > { %5181 = vmatprep.mubr.msk.bf16.mxu0 %vm5765_vm0, %v5764_v22 }
 0x14b   : > { %5182 = vmatmul.mubr.msk.bf16.gmra.mrb[56].mxu0 %vm1302_vm3, %v1503_v12 }
 0x14c   : > { %5249 = vmatprep.mubr.msk.bf16.mxu0 %vm5765_vm0, %v5764_v22 }
 0x153   : > { %5250 = vmatmul.mubr.msk.bf16.vlgmr.msra.gmra.mrb[60].mxu0 %vm1302_vm3, %v6330_v11 }
 0x154   : > { %5253 = vmatprep.mubr.msk.bf16.mxu0 %vm5765_vm0, %v5764_v22 }
 0x15b   : > { %5254 = vmatmul.mubr.msk.bf16.gmra.mrb[64].mxu0 %vm1302_vm3, %v6333_v9 }
 0x15c   : > { %5257 = vmatprep.mubr.msk.bf16.mxu0 %vm5765_vm0, %v5764_v22 }
 0x163   : > { %5258 = vmatmul.mubr.msk.bf16.gmra.mrb[68].mxu0 %vm1302_vm3, %v6343_v20 }
 0x164   : > { %5261 = vmatprep.mubr.msk.bf16.mxu0 %vm5765_vm0, %v5764_v22 }
 0x16b   : > { %5262 = vmatmul.mubr.msk.bf16.gmra.mrb[72].mxu0 %vm1302_vm3, %v6358_v26 }
 0x16c   : > { %5265 = vmatprep.mubr.msk.bf16.mxu0 %vm5765_vm0, %v5764_v22 }
 0x173   : > { %5266 = vmatmul.mubr.msk.bf16.gmra.mrb[76].mxu0 %vm1302_vm3, %v6361_v62 }
 0x174   : > { %5269 = vmatprep.mubr.msk.bf16.mxu0 %vm5765_vm0, %v5764_v22 }
 0x17b   : > { %5270 = vmatmul.mubr.msk.bf16.gmra.mrb[80].mxu0 %vm1302_vm3, %v6364_v13 }
 0x17c   : > { %5273 = vmatprep.mubr.msk.bf16.mxu0 %vm5765_vm0, %v5764_v22 }
 0x183   : > { %5274 = vmatmul.mubr.msk.bf16.gmra.mrb[84].mxu0 %vm1302_vm3, %v6371_v29 }
 0x184   : > { %5277 = vmatprep.mubr.msk.bf16.mxu0 %vm5765_vm0, %v5764_v22 }
 0x18b   : > { %5278 = vmatmul.mubr.msk.bf16.gmra.mrb[88].mxu0 %vm1302_vm3, %v6376_v6 }
 0x18c   : > { %5281 = vmatprep.mubr.msk.bf16.mxu0 %vm5765_vm0, %v5764_v22 }
 0x18e   : > { %v1778_v11 = vpop.f32.mrb[0].mxu1 }
 0x18f   : > { %v5189_v9 = vpop.f32.mrb[1].mxu1 }
 0x190   : > { %v1781_v20 = vpop.f32.mrb[2].mxu1 }
 0x191   : > { %v5190_v24 = vpop.f32.mrb[3].mxu1 }
 0x193   : > { %5282 = vmatmul.mubr.msk.bf16.gmra.mrb[92].mxu0 %vm1302_vm3, %v6379_v30 }
 0x194   : > { %5285 = vmatprep.mubr.msk.bf16.mxu0 %vm5765_vm0, %v5764_v22 }
 0x199   : > { %v1786_v26 = vpop.f32.mrb[4].mxu1 }
 0x19a   : > { %v5193_v62 = vpop.f32.mrb[5].mxu1 }
 0x19b   : > { %5286 = vmatmul.mubr.msk.bf16.gmra.mrb[96].mxu0 %vm1302_vm3, %v6387_v38  ;;  %v1789_v13 = vpop.f32.mrb[6].mxu1  ;;  %v5668_v38 = vld [vmem:[%s7286_s5 + $0x8] sm:$0xff]  }
 0x19c   : > { %5289 = vmatprep.mubr.msk.bf16.mxu0 %vm5765_vm0, %v5764_v22  ;;  %v5194_v1 = vpop.f32.mrb[7].mxu1  ;;  %5310 = vmatpush3.bf16.msra.mxu1 %v5668_v38 }
 0x19d   : > { %5331 = vmatprep.subr.bf16.mxu1 %v5764_v22 }
 0x1a3   : > { %5290 = vmatmul.mubr.msk.bf16.gmra.mrb[100].mxu0 %vm1302_vm3, %v6390_v43 }
 0x1a4   : > { %5293 = vmatprep.mubr.msk.bf16.mxu0 %vm5765_vm0, %v5764_v22  ;;  %v1589_v15 = vpop.f32.mrb[0].mxu0 }
 0x1a5   : > { %v6525_v28 = vadd.f32 %v1778_v11, %v1589_v15  ;;  %v5127_v29 = vpop.f32.mrb[1].mxu0 }
 0x1a6   : > { %v1592_v6 = vpop.f32.mrb[2].mxu0 }
 0x1a7   : > { %v6527_v30 = vadd.f32 %v1781_v20, %v1592_v6  ;;  %v5128_v31 = vpop.f32.mrb[3].mxu0  ;;  %v1794_v32 = vpop.f32.mrb[8].mxu1 }
 0x1a8   : > { %v5197_v33 = vpop.f32.mrb[9].mxu1 }
 0x1a9   : > { %v1797_v27 = vpop.f32.mrb[10].mxu1 }
 0x1aa   : > { %v5198_v35 = vpop.f32.mrb[11].mxu1 }
 0x1ab   : > { %5294 = vmatmul.mubr.msk.bf16.gmra.mrb[104].mxu0 %vm1302_vm3, %v6393_v37 }
 0x1ac   : > { %5297 = vmatprep.mubr.msk.bf16.mxu0 %vm5765_vm0, %v5764_v22 }
 0x1b0   : > { %v1597_v43 = vpop.f32.mrb[4].mxu0 }
 0x1b1   : > { %v6536_v46 = vadd.f32 %v1786_v26, %v1597_v43  ;;  %v5131_v47 = vpop.f32.mrb[5].mxu0 }
 0x1b2   : > { %v1600_v50 = vpop.f32.mrb[6].mxu0 }
 0x1b3   : > { %5298 = vmatmul.mubr.msk.bf16.gmra.mrb[108].mxu0 %vm1302_vm3, %v6396_v45  ;;  %v6541_v37 = vadd.f32 %v1789_v13, %v1600_v50  ;;  %v5132_v51 = vpop.f32.mrb[7].mxu0  ;;  %v1802_v18 = vpop.f32.mrb[12].mxu1 }
 0x1b4   : > { %5301 = vmatprep.mubr.msk.bf16.mxu0 %vm5765_vm0, %v5764_v22  ;;  %v5201_v44 = vpop.f32.mrb[13].mxu1 }
 0x1b5   : > { %v1805_v53 = vpop.f32.mrb[14].mxu1 }
 0x1b6   : > { %v5202_v54 = vpop.f32.mrb[15].mxu1 }
 0x1bb   : > { %5302 = vmatmul.mubr.msk.bf16.gmra.mrb[112].mxu0 %vm1302_vm3, %v6401_v7 }
 0x1bc   : > { %5305 = vmatprep.mubr.msk.bf16.mxu0 %vm5765_vm0, %v5764_v22  ;;  %v1605_v52 = vpop.f32.mrb[8].mxu0 }
 0x1bd   : > { %v6549_v55 = vadd.f32 %v1794_v32, %v1605_v52  ;;  %v5135_v45 = vpop.f32.mrb[9].mxu0 }
 0x1be   : > { %v1608_v56 = vpop.f32.mrb[10].mxu0 }
 0x1bf   : > { %v6551_v40 = vadd.f32 %v1797_v27, %v1608_v56  ;;  %v5136_v57 = vpop.f32.mrb[11].mxu0  ;;  %v1810_v41 = vpop.f32.mrb[16].mxu1 }
 0x1c0   : > { %v5205_v49 = vpop.f32.mrb[17].mxu1 }
 0x1c1   : > { %v1813_v59 = vpop.f32.mrb[18].mxu1 }
 0x1c2   : > { %v5206_v63 = vpop.f32.mrb[19].mxu1 }
 0x1c3   : > { %5306 = vmatmul.mubr.msk.bf16.gmra.mrb[116].mxu0 %vm1302_vm3, %v1943_v34 }
 0x1c4   : > { %5383 = vmatprep.mubr.msk.bf16.mxu0 %vm5765_vm0, %v5764_v22 }
 0x1c6   : > { %v1613_v7 = vpop.f32.mrb[12].mxu0 }
 0x1c7   : > { %v6558_v58 = vadd.f32 %v1802_v18, %v1613_v7  ;;  %v5139_v0 = vpop.f32.mrb[13].mxu0  ;;  %v1818_v61 = vpop.f32.mrb[20].mxu1 }
 0x1c8   : > { %v1616_v2 = vpop.f32.mrb[14].mxu0  ;;  %v5209_v8 = vpop.f32.mrb[21].mxu1 }
 0x1c9   : > { %v6560_v4 = vadd.f32 %v1805_v53, %v1616_v2  ;;  %v5140_v48 = vpop.f32.mrb[15].mxu0  ;;  %v1821_v5 = vpop.f32.mrb[22].mxu1 }
 0x1ca   : > { %v5210_v36 = vpop.f32.mrb[23].mxu1 }
 0x1ce   : > { %v1621_v10 = vpop.f32.mrb[16].mxu0 }
 0x1cf   : > { %v6562_v25 = vadd.f32 %v1810_v41, %v1621_v10  ;;  %v5143_v34 = vpop.f32.mrb[17].mxu0  ;;  %v1826_v42 = vpop.f32.mrb[24].mxu1 }
 0x1d0   : > { %v1624_v3 = vpop.f32.mrb[18].mxu0  ;;  %v5213_v39 = vpop.f32.mrb[25].mxu1 }
 0x1d1   : > { %v6564_v16 = vadd.f32 %v1813_v59, %v1624_v3  ;;  %v5144_v19 = vpop.f32.mrb[19].mxu0  ;;  %v1829_v14 = vpop.f32.mrb[26].mxu1 }
 0x1d2   : > { %v5214_v17 = vpop.f32.mrb[27].mxu1 }
 0x1d6   : > { %v1629_v23 = vpop.f32.mrb[20].mxu0 }
 0x1d7   : > { %v6566_v21 = vadd.f32 %v1818_v61, %v1629_v23  ;;  %v5147_v60 = vpop.f32.mrb[21].mxu0  ;;  %v1834_v11 = vpop.f32.mrb[28].mxu1 }
 0x1d8   : > { %v1632_v12 = vpop.f32.mrb[22].mxu0  ;;  %v5217_v24 = vpop.f32.mrb[29].mxu1 }
 0x1d9   : > { %v6568_v9 = vadd.f32 %v1821_v5, %v1632_v12  ;;  %v5148_v20 = vpop.f32.mrb[23].mxu0  ;;  %v1837_v26 = vpop.f32.mrb[30].mxu1 }
 0x1da   : > { %v5218_v62 = vpop.f32.mrb[31].mxu1 }
 0x1de   : > { %v1637_v13 = vpop.f32.mrb[24].mxu0 }
 0x1df   : > { %v6570_v1 = vadd.f32 %v1826_v42, %v1637_v13  ;;  %v5151_v15 = vpop.f32.mrb[25].mxu0  ;;  %v1842_v6 = vpop.f32.mrb[32].mxu1 }
 0x1e0   : > { %v1640_v29 = vpop.f32.mrb[26].mxu0  ;;  %v5221_v33 = vpop.f32.mrb[33].mxu1 }
 0x1e1   : > { %v6572_v31 = vadd.f32 %v1829_v14, %v1640_v29  ;;  %v5152_v32 = vpop.f32.mrb[27].mxu0  ;;  %v1845_v27 = vpop.f32.mrb[34].mxu1 }
 0x1e2   : > { %v5222_v35 = vpop.f32.mrb[35].mxu1 }
 0x1e6   : > { %v1645_v38 = vpop.f32.mrb[28].mxu0 }
 0x1e7   : > { %v6574_v43 = vadd.f32 %v1834_v11, %v1645_v38  ;;  %v5155_v47 = vpop.f32.mrb[29].mxu0  ;;  %v1850_v51 = vpop.f32.mrb[36].mxu1 }
 0x1e8   : > { %v1648_v50 = vpop.f32.mrb[30].mxu0  ;;  %v5225_v53 = vpop.f32.mrb[37].mxu1 }
 0x1e9   : > { %v6576_v18 = vadd.f32 %v1837_v26, %v1648_v50  ;;  %v5156_v44 = vpop.f32.mrb[31].mxu0  ;;  %v1853_v54 = vpop.f32.mrb[38].mxu1 }
 0x1ea   : > { %v5226_v52 = vpop.f32.mrb[39].mxu1 }
 0x1ee   : > { %v1653_v45 = vpop.f32.mrb[32].mxu0 }
 0x1ef   : > { %v6578_v56 = vadd.f32 %v1842_v6, %v1653_v45  ;;  %v5159_v57 = vpop.f32.mrb[33].mxu0  ;;  %v1858_v49 = vpop.f32.mrb[40].mxu1 }
 0x1f0   : > { %v1656_v41 = vpop.f32.mrb[34].mxu0  ;;  %v5229_v7 = vpop.f32.mrb[41].mxu1 }
 0x1f1   : > { %v6580_v59 = vadd.f32 %v1845_v27, %v1656_v41  ;;  %v5160_v63 = vpop.f32.mrb[35].mxu0  ;;  %v1861_v0 = vpop.f32.mrb[42].mxu1 }
 0x1f2   : > { %v5230_v2 = vpop.f32.mrb[43].mxu1 }
 0x1f6   : > { %v1661_v61 = vpop.f32.mrb[36].mxu0 }
 0x1f7   : > { %v6582_v48 = vadd.f32 %v1850_v51, %v1661_v61  ;;  %v5163_v8 = vpop.f32.mrb[37].mxu0  ;;  %v1866_v36 = vpop.f32.mrb[44].mxu1 }
 0x1f8   : > { %v1664_v5 = vpop.f32.mrb[38].mxu0  ;;  %v5233_v3 = vpop.f32.mrb[45].mxu1 }
 0x1f9   : > { %v6584_v10 = vadd.f32 %v1853_v54, %v1664_v5  ;;  %v5164_v34 = vpop.f32.mrb[39].mxu0  ;;  %v1869_v42 = vpop.f32.mrb[46].mxu1 }
 0x1fa   : > { %v5234_v19 = vpop.f32.mrb[47].mxu1 }
 0x1fe   : > { %v1669_v39 = vpop.f32.mrb[40].mxu0 }
 0x1ff   : > { %v6586_v14 = vadd.f32 %v1858_v49, %v1669_v39  ;;  %v5167_v17 = vpop.f32.mrb[41].mxu0  ;;  %v1874_v60 = vpop.f32.mrb[48].mxu1  ;;  %v6609_v39 = vld [vmem:[%s7285_s4] ss:$0 sm:$0xff] }
 0x200   : > { %v1672_v23 = vpop.f32.mrb[42].mxu0  ;;  %v5237_v20 = vpop.f32.mrb[49].mxu1 }
 0x201   : > { %v6588_v12 = vadd.f32 %v1861_v0, %v1672_v23  ;;  %v5168_v11 = vpop.f32.mrb[43].mxu0  ;;  %v1877_v24 = vpop.f32.mrb[50].mxu1 }
 0x202   : > { %v5238_v26 = vpop.f32.mrb[51].mxu1 }
 0x206   : > { %v1677_v62 = vpop.f32.mrb[44].mxu0 }
 0x207   : > { %v6590_v13 = vadd.f32 %v1866_v36, %v1677_v62  ;;  %v5171_v15 = vpop.f32.mrb[45].mxu0  ;;  %v1882_v6 = vpop.f32.mrb[52].mxu1 }
 0x208   : > { %v1680_v29 = vpop.f32.mrb[46].mxu0  ;;  %v5241_v27 = vpop.f32.mrb[53].mxu1 }
 0x209   : > { %v6592_v32 = vadd.f32 %v1869_v42, %v1680_v29  ;;  %v5172_v33 = vpop.f32.mrb[47].mxu0  ;;  %v1885_v35 = vpop.f32.mrb[54].mxu1 }
 0x20a   : > { %v5242_v38 = vpop.f32.mrb[55].mxu1 }
 0x20e   : > { %v1685_v47 = vpop.f32.mrb[48].mxu0 }
 0x20f   : > { %v6594_v50 = vadd.f32 %v1874_v60, %v1685_v47  ;;  %v5175_v51 = vpop.f32.mrb[49].mxu0  ;;  %v1890_v53 = vpop.f32.mrb[56].mxu1 }
 0x210   : > { %v1688_v44 = vpop.f32.mrb[50].mxu0  ;;  %v5245_v45 = vpop.f32.mrb[57].mxu1 }
 0x211   : > { %v6596_v54 = vadd.f32 %v1877_v24, %v1688_v44  ;;  %v5176_v52 = vpop.f32.mrb[51].mxu0  ;;  %v1893_v57 = vpop.f32.mrb[58].mxu1 }
 0x212   : > { %v5246_v41 = vpop.f32.mrb[59].mxu1 }
 0x216   : > { %v1693_v49 = vpop.f32.mrb[52].mxu0 }
 0x217   : > { %v6598_v63 = vadd.f32 %v1882_v6, %v1693_v49  ;;  %v5179_v7 = vpop.f32.mrb[53].mxu0 }
 0x218   : > { %v1696_v0 = vpop.f32.mrb[54].mxu0 }
 0x219   : > { %v6600_v2 = vadd.f32 %v1885_v35, %v1696_v0  ;;  %v5180_v61 = vpop.f32.mrb[55].mxu0 }
 0x21e   : > { %v1701_v8 = vpop.f32.mrb[56].mxu0 }
 0x21f   : > { %v6602_v5 = vadd.f32 %v1890_v53, %v1701_v8  ;;  %v5183_v36 = vpop.f32.mrb[57].mxu0 }
 0x220   : > { %v1704_v34 = vpop.f32.mrb[58].mxu0 }
 0x221   : > { %v6604_v3 = vadd.f32 %v1893_v57, %v1704_v34  ;;  %v5184_v42 = vpop.f32.mrb[59].mxu0 }
 0x226   : > { %v2030_v19 = vpop.f32.mrb[60].mxu0 }
 0x227   : > { %v2149_v17 = vadd.f32 %v2030_v19, %v6525_v28  ;;  %v5251_v23 = vpop.f32.mrb[61].mxu0 }
 0x228   : > { %v2033_v60 = vpop.f32.mrb[62].mxu0 }
 0x229   : > { %v2186_v11 = vadd.f32 %v6609_v39, %v2149_v17  ;;  %v2150_v20 = vadd.f32 %v2033_v60, %v6527_v30  ;;  %v5252_v24 = vpop.f32.mrb[63].mxu0 }
 0x22b   : > { %v2216_v26 = vmax.f32 %v2186_v11, 0.0  ;;  %v2187_v62 = vadd.f32 %v6609_v39, %v2150_v20 }
 0x22d   : > { %2246 = vst.msk [vmem:[#allocation3] sm:$0xff] %vm1302_vm3, %v2216_v26  ;;  %v2217_v15 = vmax.f32 %v2187_v62, 0.0 }
 0x22e   : > { %v2038_v29 = vpop.f32.mrb[64].mxu0 }
 0x22f   : > { %2247 = vst.msk [vmem:[#allocation3 + $0x8] sm:$0xff] %vm1302_vm3, %v2217_v15  ;;  %v2151_v6 = vadd.f32 %v2038_v29, %v6536_v46  ;;  %v5255_v33 = vpop.f32.mrb[65].mxu0 }
 0x230   : > { %v2041_v28 = vpop.f32.mrb[66].mxu0 }
 0x231   : > { %v2188_v27 = vadd.f32 %v6609_v39, %v2151_v6  ;;  %v2152_v35 = vadd.f32 %v2041_v28, %v6541_v37  ;;  %v5256_v38 = vpop.f32.mrb[67].mxu0 }
 0x233   : > { %v2218_v30 = vmax.f32 %v2188_v27, 0.0  ;;  %v2189_v47 = vadd.f32 %v6609_v39, %v2152_v35 }
 0x235   : > { %2248 = vst.msk [vmem:[#allocation3 + $0x10] sm:$0xff] %vm1302_vm3, %v2218_v30  ;;  %v2219_v51 = vmax.f32 %v2189_v47, 0.0 }
 0x236   : > { %v2046_v44 = vpop.f32.mrb[68].mxu0 }
 0x237   : > { %2249 = vst.msk [vmem:[#allocation3 + $0x18] sm:$0xff] %vm1302_vm3, %v2219_v51  ;;  %v2153_v53 = vadd.f32 %v2046_v44, %v6549_v55  ;;  %v5259_v52 = vpop.f32.mrb[69].mxu0 }
 0x238   : > { %v2049_v46 = vpop.f32.mrb[70].mxu0 }
 0x239   : > { %v2190_v45 = vadd.f32 %v6609_v39, %v2153_v53  ;;  %v2154_v57 = vadd.f32 %v2049_v46, %v6551_v40  ;;  %v5260_v41 = vpop.f32.mrb[71].mxu0 }
 0x23b   : > { %v2220_v37 = vmax.f32 %v2190_v45, 0.0  ;;  %v2191_v49 = vadd.f32 %v6609_v39, %v2154_v57 }
 0x23c   : > { %v2277_v7 = vld [vmem:[#allocation3] ss:$3 sm:$0xff]  ;;  %v2297_v0 = vld [vmem:[#allocation3 + $0x1] ss:$3 sm:$0xff]  ;;  %v2327_v36 = vld [vmem:[#allocation3 + $0x2] ss:$3 sm:$0xff] }
 0x23d   : > { %v2316_v61 = vmax.f32 %v2277_v7, %v2297_v0  ;;  %2250 = vst.msk [vmem:[#allocation3 + $0x20] sm:$0xff] %vm1302_vm3, %v2220_v37  ;;  %v2221_v8 = vmax.f32 %v2191_v49, 0.0 }
 0x23e   : > { %v2054_v34 = vpop.f32.mrb[72].mxu0 }
 0x23f   : > { %v2346_v42 = vmax.f32 %v2316_v61, %v2327_v36  ;;  %2251 = vst.msk [vmem:[#allocation3 + $0x28] sm:$0xff] %vm1302_vm3, %v2221_v8  ;;  %v2155_v55 = vadd.f32 %v2054_v34, %v6558_v58  ;;  %v5263_v19 = vpop.f32.mrb[73].mxu0 }
 0x240   : > { %v2057_v17 = vpop.f32.mrb[74].mxu0 }
 0x241   : > { %2356 = vst.msk [vmem:[#allocation4] sm:$0xff] %vm1302_vm3, %v2346_v42  ;;  %v2192_v40 = vadd.f32 %v6609_v39, %v2155_v55  ;;  %v2156_v23 = vadd.f32 %v2057_v17, %v6560_v4  ;;  %v5264_v60 = vpop.f32.mrb[75].mxu0 }
 0x243   : > { %v2222_v11 = vmax.f32 %v2192_v40, 0.0  ;;  %v2193_v20 = vadd.f32 %v6609_v39, %v2156_v23 }
 0x245   : > { %2252 = vst.msk [vmem:[#allocation3 + $0x30] sm:$0xff] %vm1302_vm3, %v2222_v11  ;;  %v2223_v24 = vmax.f32 %v2193_v20, 0.0 }
 0x246   : > { %v2279_v26 = vld [vmem:[#allocation3 + $0x18] ss:$3 sm:$0xff]  ;;  %v2299_v62 = vld [vmem:[#allocation3 + $0x19] ss:$3 sm:$0xff]  ;;  %v2062_v58 = vpop.f32.mrb[76].mxu0 }
 0x247   : > { %v2317_v15 = vmax.f32 %v2279_v26, %v2299_v62  ;;  %2253 = vst.msk [vmem:[#allocation3 + $0x38] sm:$0xff] %vm1302_vm3, %v2223_v24  ;;  %v2329_v29 = vld [vmem:[#allocation3 + $0x1a] ss:$3 sm:$0xff]  ;;  %v2157_v6 = vadd.f32 %v2062_v58, %v6562_v25  ;;  %v5267_v33 = vpop.f32.mrb[77].mxu0 }
 0x248   : > { %v2065_v27 = vpop.f32.mrb[78].mxu0 }
 0x249   : > { %v2347_v28 = vmax.f32 %v2317_v15, %v2329_v29  ;;  %v2194_v4 = vadd.f32 %v6609_v39, %v2157_v6  ;;  %v2158_v35 = vadd.f32 %v2065_v27, %v6564_v16  ;;  %v5268_v38 = vpop.f32.mrb[79].mxu0  ;;  %v2366_v27 = vld [vmem:[#allocation4] sm:$0xff] }
 0x24b   : > { %2357 = vst.msk [vmem:[#allocation4 + $0x8] sm:$0xff] %vm1302_vm3, %v2347_v28  ;;  %v2224_v30 = vmax.f32 %v2194_v4, 0.0  ;;  %v2195_v47 = vadd.f32 %v6609_v39, %v2158_v35 }
 0x24d   : > { %2254 = vst.msk [vmem:[#allocation3 + $0x40] sm:$0xff] %vm1302_vm3, %v2224_v30  ;;  %v2225_v51 = vmax.f32 %v2195_v47, 0.0 }
 0x24e   : > { %v2070_v44 = vpop.f32.mrb[80].mxu0 }
 0x24f   : > { %v2159_v53 = vadd.f32 %v2070_v44, %v6566_v21  ;;  %v5271_v25 = vpop.f32.mrb[81].mxu0  ;;  %2255 = vst.msk [vmem:[#allocation3 + $0x48] sm:$0xff] %vm1302_vm3, %v2225_v51 }
 0x250   : > { %v2073_v52 = vpop.f32.mrb[82].mxu0 }
 0x251   : > { %v2196_v46 = vadd.f32 %v6609_v39, %v2159_v53  ;;  %v2160_v16 = vadd.f32 %v2073_v52, %v6568_v9  ;;  %v5272_v45 = vpop.f32.mrb[83].mxu0 }
 0x252   : > { %v2367_v58 = vld [vmem:[#allocation4 + $0x8] sm:$0xff] }
 0x253   : > { %v2226_v57 = vmax.f32 %v2196_v46, 0.0  ;;  %v2197_v41 = vadd.f32 %v6609_v39, %v2160_v16  ;;  %v6661_v35 = vpack.c.bf16 %v2367_v58, %v2366_v27 }
 0x254   : > { %v2281_v37 = vld [vmem:[#allocation3 + $0x30] ss:$3 sm:$0xff]  ;;  %v2301_v49 = vld [vmem:[#allocation3 + $0x31] ss:$3 sm:$0xff]  ;;  %v2331_v21 = vld [vmem:[#allocation3 + $0x32] ss:$3 sm:$0xff] }
 0x255   : > { %2256 = vst.msk [vmem:[#allocation3 + $0x50] sm:$0xff] %vm1302_vm3, %v2226_v57  ;;  %v2318_v7 = vmax.f32 %v2281_v37, %v2301_v49  ;;  %v2227_v0 = vmax.f32 %v2197_v41, 0.0 }
 0x256   : > { %v2078_v61 = vpop.f32.mrb[84].mxu0 }
 0x257   : > { %v2161_v8 = vadd.f32 %v2078_v61, %v6570_v1  ;;  %v5275_v36 = vpop.f32.mrb[85].mxu0  ;;  %v2348_v34 = vmax.f32 %v2318_v7, %v2331_v21  ;;  %2257 = vst.msk [vmem:[#allocation3 + $0x58] sm:$0xff] %vm1302_vm3, %v2227_v0  ;;  %v2387_v21 = vshrl.u32 %v6661_v35, 16 }
 0x258   : > { %v2081_v42 = vpop.f32.mrb[86].mxu0 }
 0x259   : > { %v2198_v9 = vadd.f32 %v6609_v39, %v2161_v8  ;;  %v2162_v55 = vadd.f32 %v2081_v42, %v6572_v31  ;;  %v5276_v19 = vpop.f32.mrb[87].mxu0  ;;  %2358 = vst.msk [vmem:[#allocation4 + $0x10] sm:$0xff] %vm1302_vm3, %v2348_v34 }
 0x25a   : > { %v5669_v19 = vld [vmem:[%s7286_s5] sm:$0xff]  }
 0x25b   : > { %v2228_v17 = vmax.f32 %v2198_v9, 0.0  ;;  %v2199_v40 = vadd.f32 %v6609_v39, %v2162_v55 }
 0x25d   : > { %2258 = vst.msk [vmem:[#allocation3 + $0x60] sm:$0xff] %vm1302_vm3, %v2228_v17  ;;  %v2229_v23 = vmax.f32 %v2199_v40, 0.0 }
 0x25e   : > { %v2086_v60 = vpop.f32.mrb[88].mxu0  ;;  %v2283_v1 = vld [vmem:[#allocation3 + $0x48] ss:$3 sm:$0xff]  ;;  %v2303_v11 = vld [vmem:[#allocation3 + $0x49] ss:$3 sm:$0xff] }
 0x25f   : > { %2259 = vst.msk [vmem:[#allocation3 + $0x68] sm:$0xff] %vm1302_vm3, %v2229_v23  ;;  %v2163_v20 = vadd.f32 %v2086_v60, %v6574_v43  ;;  %v2319_v24 = vmax.f32 %v2283_v1, %v2303_v11  ;;  %v5279_v26 = vpop.f32.mrb[89].mxu0  ;;  %v2333_v62 = vld [vmem:[#allocation3 + $0x4a] ss:$3 sm:$0xff] }
 0x260   : > { %v2089_v15 = vpop.f32.mrb[90].mxu0  ;;  %v2368_v16 = vld [vmem:[#allocation4 + $0x10] sm:$0xff] }
 0x261   : > { %v2200_v31 = vadd.f32 %v6609_v39, %v2163_v20  ;;  %v2349_v29 = vmax.f32 %v2319_v24, %v2333_v62  ;;  %v2164_v6 = vadd.f32 %v2089_v15, %v6576_v18  ;;  %v5280_v33 = vpop.f32.mrb[91].mxu0  ;;  %v2389_v18 = vshll.u32 %v6661_v35, 16 }
 0x263   : > { %v2230_v28 = vmax.f32 %v2200_v31, 0.0  ;;  %2359 = vst.msk [vmem:[#allocation4 + $0x18] sm:$0xff] %vm1302_vm3, %v2349_v29  ;;  %v2201_v4 = vadd.f32 %v6609_v39, %v2164_v6 }
 0x265   : > { %2260 = vst.msk [vmem:[#allocation3 + $0x70] sm:$0xff] %vm1302_vm3, %v2230_v28  ;;  %v2231_v43 = vmax.f32 %v2201_v4, 0.0 }
 0x266   : > { %v2094_v38 = vpop.f32.mrb[92].mxu0 }
 0x267   : > { %v2165_v30 = vadd.f32 %v2094_v38, %v6578_v56  ;;  %v5283_v47 = vpop.f32.mrb[93].mxu0  ;;  %2261 = vst.msk [vmem:[#allocation3 + $0x78] sm:$0xff] %vm1302_vm3, %v2231_v43  ;;  %v2391_v56 = vrot.slane %v2389_v18, 1 }
 0x268   : > { %v2097_v51 = vpop.f32.mrb[94].mxu0 }
 0x269   : > { %v2202_v44 = vadd.f32 %v6609_v39, %v2165_v30  ;;  %v2166_v53 = vadd.f32 %v2097_v51, %v6580_v59  ;;  %v5284_v25 = vpop.f32.mrb[95].mxu0  ;;  %v2392_v9 = vor.u32 %v2391_v56, %v2387_v21 }
 0x26a   : > { %v2369_v45 = vld [vmem:[#allocation4 + $0x18] sm:$0xff] }
 0x26b   : > { %v2232_v52 = vmax.f32 %v2202_v44, 0.0  ;;  %v2203_v46 = vadd.f32 %v6609_v39, %v2166_v53  ;;  %v6670_v37 = vpack.c.bf16 %v2369_v45, %v2368_v16 }
 0x26c   : > { %v2285_v57 = vld [vmem:[#allocation3 + $0x60] ss:$3 sm:$0xff]  ;;  %v2305_v41 = vld [vmem:[#allocation3 + $0x61] ss:$3 sm:$0xff]  ;;  %v2335_v0 = vld [vmem:[#allocation3 + $0x62] ss:$3 sm:$0xff] }
 0x26d   : > { %v2320_v49 = vmax.f32 %v2285_v57, %v2305_v41  ;;  %2262 = vst.msk [vmem:[#allocation3 + $0x80] sm:$0xff] %vm1302_vm3, %v2232_v52  ;;  %v2233_v7 = vmax.f32 %v2203_v46, 0.0  ;;  %v2394_v59 = vshll.u32 %v6670_v37, 16  ;;  %v2398_v56 = vshrl.u32 %v6670_v37, 16 }
 0x26e   : > { %v2102_v61 = vpop.f32.mrb[96].mxu0 }
 0x26f   : > { %v2350_v8 = vmax.f32 %v2320_v49, %v2335_v0  ;;  %2263 = vst.msk [vmem:[#allocation3 + $0x88] sm:$0xff] %vm1302_vm3, %v2233_v7  ;;  %v2167_v36 = vadd.f32 %v2102_v61, %v6582_v48  ;;  %v5287_v34 = vpop.f32.mrb[97].mxu0  ;;  %v2396_v55 = vrot.slane %v2394_v59, 1 }
 0x270   : > { %v2105_v42 = vpop.f32.mrb[98].mxu0 }
 0x271   : > { %2360 = vst.msk [vmem:[#allocation4 + $0x20] sm:$0xff] %vm1302_vm3, %v2350_v8  ;;  %v2204_v17 = vadd.f32 %v6609_v39, %v2167_v36  ;;  %v2168_v40 = vadd.f32 %v2105_v42, %v6584_v10  ;;  %v5288_v23 = vpop.f32.mrb[99].mxu0  ;;  %v2397_v60 = vsel %vm1384_vm4, %v2392_v9, %v2396_v55  ;;  %v2400_v59 = vor.u32 %v2398_v56, %v2396_v55 }
 0x272   : > { %5312 = vmatmul.mubr.msk.bf16.vlgmr.msra.gmra.mrb[60].mxu1 %vm1302_vm3, %v2397_v60 }
 0x273   : > { %v2234_v1 = vmax.f32 %v2204_v17, 0.0  ;;  %v2205_v48 = vadd.f32 %v6609_v39, %v2168_v40  ;;  %5315 = vmatprep.mubr.msk.bf16.mxu1 %vm5765_vm0, %v5764_v22  ;;  %5332 = vmatpush3.bf16.msra.mxu1 %v5669_v19 }
 0x274   : > { %5353 = vmatprep.subr.bf16.mxu1 %v5764_v22 }
 0x275   : > { %2264 = vst.msk [vmem:[#allocation3 + $0x90] sm:$0xff] %vm1302_vm3, %v2234_v1  ;;  %v2235_v11 = vmax.f32 %v2205_v48, 0.0 }
 0x276   : > { %v2287_v20 = vld [vmem:[#allocation3 + $0x78] ss:$3 sm:$0xff]  ;;  %v2307_v24 = vld [vmem:[#allocation3 + $0x79] ss:$3 sm:$0xff]  ;;  %v2110_v26 = vpop.f32.mrb[100].mxu0 }
 0x277   : > { %v2321_v10 = vmax.f32 %v2287_v20, %v2307_v24  ;;  %2265 = vst.msk [vmem:[#allocation3 + $0x98] sm:$0xff] %vm1302_vm3, %v2235_v11  ;;  %v2337_v62 = vld [vmem:[#allocation3 + $0x7a] ss:$3 sm:$0xff]  ;;  %v2169_v31 = vadd.f32 %v2110_v26, %v6586_v14  ;;  %v5291_v15 = vpop.f32.mrb[101].mxu0 }
 0x278   : > { %v2113_v29 = vpop.f32.mrb[102].mxu0  ;;  %v2370_v44 = vld [vmem:[#allocation4 + $0x20] sm:$0xff] }
 0x279   : > { %v2351_v58 = vmax.f32 %v2321_v10, %v2337_v62  ;;  %v2206_v6 = vadd.f32 %v6609_v39, %v2169_v31  ;;  %v2170_v33 = vadd.f32 %v2113_v29, %v6588_v12  ;;  %v5292_v28 = vpop.f32.mrb[103].mxu0 }
 0x27b   : > { %2361 = vst.msk [vmem:[#allocation4 + $0x28] sm:$0xff] %vm1302_vm3, %v2351_v58  ;;  %v2236_v27 = vmax.f32 %v2206_v6, 0.0  ;;  %v2207_v4 = vadd.f32 %v6609_v39, %v2170_v33 }
 0x27d   : > { %2266 = vst.msk [vmem:[#allocation3 + $0xa0] sm:$0xff] %vm1302_vm3, %v2236_v27  ;;  %v2237_v43 = vmax.f32 %v2207_v4, 0.0 }
 0x27e   : > { %v2118_v38 = vpop.f32.mrb[104].mxu0 }
 0x27f   : > { %v2171_v30 = vadd.f32 %v2118_v38, %v6590_v13  ;;  %v5295_v14 = vpop.f32.mrb[105].mxu0  ;;  %2267 = vst.msk [vmem:[#allocation3 + $0xa8] sm:$0xff] %vm1302_vm3, %v2237_v43 }
 0x280   : > { %v2121_v47 = vpop.f32.mrb[106].mxu0 }
 0x281   : > { %v2208_v51 = vadd.f32 %v6609_v39, %v2171_v30  ;;  %v2172_v12 = vadd.f32 %v2121_v47, %v6592_v32  ;;  %v5296_v18 = vpop.f32.mrb[107].mxu0 }
 0x282   : > { %v2371_v53 = vld [vmem:[#allocation4 + $0x28] sm:$0xff] }
 0x283   : > { %v2238_v25 = vmax.f32 %v2208_v51, 0.0  ;;  %v2209_v52 = vadd.f32 %v6609_v39, %v2172_v12  ;;  %v6702_v46 = vpack.c.bf16 %v2371_v53, %v2370_v44 }
 0x284   : > { %v2289_v16 = vld [vmem:[#allocation3 + $0x90] ss:$3 sm:$0xff]  ;;  %v2309_v45 = vld [vmem:[#allocation3 + $0x91] ss:$3 sm:$0xff]  ;;  %v2339_v32 = vld [vmem:[#allocation3 + $0x92] ss:$3 sm:$0xff] }
 0x285   : > { %2268 = vst.msk [vmem:[#allocation3 + $0xb0] sm:$0xff] %vm1302_vm3, %v2238_v25  ;;  %v2322_v13 = vmax.f32 %v2289_v16, %v2309_v45  ;;  %v2239_v57 = vmax.f32 %v2209_v52, 0.0  ;;  %v2402_v49 = vshll.u32 %v6702_v46, 16  ;;  %v2406_v18 = vshrl.u32 %v6702_v46, 16 }
 0x286   : > { %v2126_v41 = vpop.f32.mrb[108].mxu0 }
 0x287   : > { %v2173_v7 = vadd.f32 %v2126_v41, %v6594_v50  ;;  %v5299_v0 = vpop.f32.mrb[109].mxu0  ;;  %v2352_v61 = vmax.f32 %v2322_v13, %v2339_v32  ;;  %2269 = vst.msk [vmem:[#allocation3 + $0xb8] sm:$0xff] %vm1302_vm3, %v2239_v57  ;;  %v2404_v8 = vrot.slane %v2402_v49, 1 }
 0x288   : > { %v2129_v21 = vpop.f32.mrb[110].mxu0 }
 0x289   : > { %v2210_v36 = vadd.f32 %v6609_v39, %v2173_v7  ;;  %v2174_v34 = vadd.f32 %v2129_v21, %v6596_v54  ;;  %v5300_v42 = vpop.f32.mrb[111].mxu0  ;;  %2362 = vst.msk [vmem:[#allocation4 + $0x30] sm:$0xff] %vm1302_vm3, %v2352_v61  ;;  %v2405_v9 = vsel %vm1384_vm4, %v2400_v59, %v2404_v8  ;;  %v2408_v53 = vor.u32 %v2406_v18, %v2404_v8 }
 0x28a   : > { %5316 = vmatmul.mubr.msk.bf16.gmra.mrb[64].mxu1 %vm1302_vm3, %v2405_v9  ;;  %v2617_v42 = vrot.slane %v6670_v37, 1  ;;  %v2616_v9 = vrot.slane %v6661_v35, 1 }
 0x28b   : > { %v2240_v19 = vmax.f32 %v2210_v36, 0.0  ;;  %v2211_v17 = vadd.f32 %v6609_v39, %v2174_v34  ;;  %5319 = vmatprep.mubr.msk.bf16.mxu1 %vm5765_vm0, %v5764_v22  ;;  %v5670_v36 = vld [vmem:[%s7286_s5 + $0x10] sm:$0xff]   ;;  %v5671_v34 = vld [vmem:[%s7288_s7 + $0x20] sm:$0xff]  }
 0x28c   : > { %5376 = vmatpush3.bf16.msra.mxu0 %v5671_v34 }
 0x28d   : > { %2270 = vst.msk [vmem:[#allocation3 + $0xc0] sm:$0xff] %vm1302_vm3, %v2240_v19  ;;  %v2241_v50 = vmax.f32 %v2211_v17, 0.0  ;;  %5377 = vmatprep.subr.bf16.mxu0 %v5764_v22  ;;  %v2618_v19 = vsel %vm918_vm1, %v2616_v9, %v2617_v42  ;;  %v2619_v17 = vrot.slane %v6702_v46, 1 }
 0x28e   : > { %v2134_v55 = vpop.f32.mrb[112].mxu0  ;;  %v2291_v40 = vld [vmem:[#allocation3 + $0xa8] ss:$3 sm:$0xff]  ;;  %v2311_v23 = vld [vmem:[#allocation3 + $0xa9] ss:$3 sm:$0xff] }
 0x28f   : > { %2271 = vst.msk [vmem:[#allocation3 + $0xc8] sm:$0xff] %vm1302_vm3, %v2241_v50  ;;  %v2175_v54 = vadd.f32 %v2134_v55, %v6598_v63  ;;  %v2323_v60 = vmax.f32 %v2291_v40, %v2311_v23  ;;  %v5303_v1 = vpop.f32.mrb[113].mxu0  ;;  %v2341_v48 = vld [vmem:[#allocation3 + $0xaa] ss:$3 sm:$0xff]  ;;  %v2620_v50 = vsel %vm918_vm1, %v2617_v42, %v2619_v17  ;;  %v5673_v23 = vld [vmem:[%s7288_s7 + $0x30] sm:$0xff]  }
 0x290   : > { %v2137_v20 = vpop.f32.mrb[114].mxu0  ;;  %v2372_v43 = vld [vmem:[#allocation4 + $0x30] sm:$0xff]  ;;  %v5672_v55 = vld [vmem:[%s7288_s7 + $0x28] sm:$0xff]  }
 0x291   : > { %v2212_v11 = vadd.f32 %v6609_v39, %v2175_v54  ;;  %v2353_v24 = vmax.f32 %v2323_v60, %v2341_v48  ;;  %v2176_v10 = vadd.f32 %v2137_v20, %v6600_v2  ;;  %v5304_v26 = vpop.f32.mrb[115].mxu0  ;;  %5378 = vmatpush3.bf16.msra.mxu0 %v5672_v55  ;;  %v5675_v20 = vld [vmem:[%s7288_s7] sm:$0xff]  }
 0x292   : > { %5379 = vmatprep.subr.bf16.mxu0 %v5764_v22  ;;  %v5678_v26 = vld [vmem:[%s7288_s7 + $0x18] sm:$0xff]  }
 0x293   : > { %v2242_v62 = vmax.f32 %v2212_v11, 0.0  ;;  %2363 = vst.msk [vmem:[#allocation4 + $0x38] sm:$0xff] %vm1302_vm3, %v2353_v24  ;;  %v2213_v31 = vadd.f32 %v6609_v39, %v2176_v10  ;;  %v5674_v11 = vld [vmem:[%s7288_s7 + $0x38] sm:$0xff]   ;;  %v5676_v24 = vld [vmem:[%s7288_s7 + $0x8] sm:$0xff]   ;;  %v5677_v10 = vld [vmem:[%s7288_s7 + $0x10] sm:$0xff]  }
 0x295   : > { %2272 = vst.msk [vmem:[#allocation3 + $0xd0] sm:$0xff] %vm1302_vm3, %v2242_v62  ;;  %v2243_v15 = vmax.f32 %v2213_v31, 0.0  ;;  %5380 = vmatpush3.bf16.msra.mxu0 %v5673_v23 }
 0x296   : > { %v2142_v58 = vpop.f32.mrb[116].mxu0  ;;  %5381 = vmatprep.subr.bf16.mxu0 %v5764_v22 }
 0x297   : > { %v2177_v63 = vadd.f32 %v2142_v58, %v6602_v5  ;;  %v5307_v29 = vpop.f32.mrb[117].mxu0  ;;  %2273 = vst.msk [vmem:[#allocation3 + $0xd8] sm:$0xff] %vm1302_vm3, %v2243_v15 }
 0x298   : > { %v2145_v6 = vpop.f32.mrb[118].mxu0 }
 0x299   : > { %v2214_v33 = vadd.f32 %v6609_v39, %v2177_v63  ;;  %v2178_v2 = vadd.f32 %v2145_v6, %v6604_v3  ;;  %v5308_v28 = vpop.f32.mrb[119].mxu0  ;;  %5382 = vmatpush3.bf16.msra.mxu0 %v5674_v11 }
 0x29a   : > { %v2373_v38 = vld [vmem:[#allocation4 + $0x38] sm:$0xff]  ;;  %5431 = vmatprep.subr.bf16.mxu0 %v5764_v22 }
 0x29b   : > { %v2244_v27 = vmax.f32 %v2214_v33, 0.0  ;;  %v2215_v4 = vadd.f32 %v6609_v39, %v2178_v2  ;;  %v6730_v47 = vpack.c.bf16 %v2373_v38, %v2372_v43 }
 0x29c   : > { %v2293_v30 = vld [vmem:[#allocation3 + $0xc0] ss:$3 sm:$0xff]  ;;  %v2313_v14 = vld [vmem:[#allocation3 + $0xc1] ss:$3 sm:$0xff]  ;;  %v2343_v12 = vld [vmem:[#allocation3 + $0xc2] ss:$3 sm:$0xff] }
 0x29d   : > { %v2324_v5 = vmax.f32 %v2293_v30, %v2313_v14  ;;  %2274 = vst.msk [vmem:[#allocation3 + $0xe0] sm:$0xff] %vm1302_vm3, %v2244_v27  ;;  %v2245_v51 = vmax.f32 %v2215_v4, 0.0  ;;  %v2410_v3 = vshll.u32 %v6730_v47, 16  ;;  %v2414_v32 = vshrl.u32 %v6730_v47, 16 }
 0x29f   : > { %v2354_v44 = vmax.f32 %v2324_v5, %v2343_v12  ;;  %2276 = vst.msk [vmem:[#allocation3 + $0xe8] sm:$0x1f] %vm2275_vm6, %v2245_v51  ;;  %v2412_v39 = vrot.slane %v2410_v3, 1 }
 0x2a1   : > { %2364 = vst.msk [vmem:[#allocation4 + $0x40] sm:$0xff] %vm1302_vm3, %v2354_v44  ;;  %v2413_v25 = vsel %vm1384_vm4, %v2408_v53, %v2412_v39  ;;  %v2416_v0 = vor.u32 %v2414_v32, %v2412_v39 }
 0x2a2   : > { %5320 = vmatmul.mubr.msk.bf16.gmra.mrb[68].mxu1 %vm1302_vm3, %v2413_v25 }
 0x2a3   : > { %5323 = vmatprep.mubr.msk.bf16.mxu1 %vm5765_vm0, %v5764_v22 }
 0x2a6   : > { %v2295_v52 = vld [vmem:[#allocation3 + $0xd8] ss:$3 sm:$0x7f]  ;;  %v2315_v16 = vld [vmem:[#allocation3 + $0xd9] ss:$3 sm:$0x7f] }
 0x2a7   : > { %v2325_v45 = vmax.f32 %v2295_v52, %v2315_v16  ;;  %v2345_v13 = vld [vmem:[#allocation3 + $0xda] ss:$3 sm:$0x7f] }
 0x2a8   : > { %v2374_v41 = vld [vmem:[#allocation4 + $0x40] sm:$0xff] }
 0x2a9   : > { %v2355_v57 = vmax.f32 %v2325_v45, %v2345_v13 }
 0x2ab   : > { %2365 = vst.msk [vmem:[#allocation4 + $0x48] sm:$0x7f] %vm1332_vm5, %v2355_v57 }
 0x2b2   : > { %v2375_v56 = vld [vmem:[#allocation4 + $0x48] sm:$0x7f] }
 0x2b3   : > { %v2380_v49 = vpack.c.bf16 %v2375_v56, %v2374_v41 }
 0x2b5   : > { %v2418_v7 = vshll.u32 %v2380_v49, 16  ;;  %v2422_v59 = vshrl.u32 %v2380_v49, 16 }
 0x2b7   : > { %v2420_v61 = vrot.slane %v2418_v7, 1 }
 0x2b9   : > { %v2421_v21 = vsel %vm1384_vm4, %v2416_v0, %v2420_v61  ;;  %v2424_v8 = vor.u32 %v2422_v59, %v2420_v61 }
 0x2ba   : > { %5324 = vmatmul.mubr.msk.bf16.gmra.mrb[72].mxu1 %vm1302_vm3, %v2421_v21 }
 0x2bb   : > { %5327 = vmatprep.mubr.msk.bf16.mxu1 %vm5765_vm0, %v5764_v22 }
 0x2c2   : > { %5328 = vmatmul.mubr.msk.bf16.gmra.mrb[76].mxu1 %vm1302_vm3, %v2424_v8 }
 0x2c3   : > { %5333 = vmatprep.mubr.msk.bf16.mxu1 %vm5765_vm0, %v5764_v22 }
 0x2ca   : > { %5334 = vmatmul.mubr.msk.bf16.vlgmr.msra.gmra.mrb[80].mxu1 %vm1302_vm3, %v6661_v35  ;;  %v2621_v35 = vrot.slane %v6730_v47, 1 }
 0x2cb   : > { %5354 = vmatpush3.bf16.msra.mxu1 %v5670_v36  ;;  %5337 = vmatprep.mubr.msk.bf16.mxu1 %vm5765_vm0, %v5764_v22 }
 0x2cc   : > { %5403 = vmatprep.subr.bf16.mxu1 %v5764_v22 }
 0x2d2   : > { %5338 = vmatmul.mubr.msk.bf16.gmra.mrb[84].mxu1 %vm1302_vm3, %v6670_v37  ;;  %v2622_v37 = vsel %vm918_vm1, %v2619_v17, %v2621_v35 }
 0x2d3   : > { %5341 = vmatprep.mubr.msk.bf16.mxu1 %vm5765_vm0, %v5764_v22 }
 0x2da   : > { %5342 = vmatmul.mubr.msk.bf16.gmra.mrb[88].mxu1 %vm1302_vm3, %v6702_v46  ;;  %v2623_v46 = vrot.slane %v2380_v49, 1 }
 0x2db   : > { %5345 = vmatprep.mubr.msk.bf16.mxu1 %vm5765_vm0, %v5764_v22 }
 0x2dc   : > { %v2624_v40 = vsel %vm918_vm1, %v2621_v35, %v2623_v46 }
 0x2e2   : > { %5346 = vmatmul.mubr.msk.bf16.gmra.mrb[92].mxu1 %vm1302_vm3, %v6730_v47 }
 0x2e3   : > { %5349 = vmatprep.mubr.msk.bf16.mxu1 %vm5765_vm0, %v5764_v22 }
 0x2ea   : > { %5350 = vmatmul.mubr.msk.bf16.gmra.mrb[96].mxu1 %vm1302_vm3, %v2380_v49 }
 0x2eb   : > { %5355 = vmatprep.mubr.msk.bf16.mxu1 %vm5765_vm0, %v5764_v22 }
 0x2f2   : > { %5356 = vmatmul.mubr.msk.bf16.vlgmr.msra.gmra.mrb[100].mxu1 %vm1302_vm3, %v2618_v19 }
 0x2f3   : > { %5359 = vmatprep.mubr.msk.bf16.mxu1 %vm5765_vm0, %v5764_v22  ;;  %5404 = vmatpush3.bf16.msra.mxu1 %v5675_v20 }
 0x2f4   : > { %5405 = vmatprep.subr.bf16.mxu1 %v5764_v22 }
 0x2f7   : > { %5406 = vmatpush3.bf16.msra.mxu1 %v5676_v24 }
 0x2f8   : > { %5407 = vmatprep.subr.bf16.mxu1 %v5764_v22 }
 0x2fa   : > { %5360 = vmatmul.mubr.msk.bf16.gmra.mrb[104].mxu1 %vm1302_vm3, %v2620_v50  ;;  %v6833_v50 = vld [vmem:[%s7287_s6] ss:$0 sm:$0xff] }
 0x2fb   : > { %5363 = vmatprep.mubr.msk.bf16.mxu1 %vm5765_vm0, %v5764_v22  ;;  %5408 = vmatpush3.bf16.msra.mxu1 %v5677_v10 }
 0x2fc   : > { %5409 = vmatprep.subr.bf16.mxu1 %v5764_v22 }
 0x2ff   : > { %5410 = vmatpush3.bf16.msra.mxu1 %v5678_v26 }
 0x302   : > { %5364 = vmatmul.mubr.msk.bf16.gmra.mrb[108].mxu1 %vm1302_vm3, %v2622_v37 }
 0x303   : > { %5367 = vmatprep.mubr.msk.bf16.mxu1 %vm5765_vm0, %v5764_v22 }
 0x30a   : > { %5368 = vmatmul.mubr.msk.bf16.gmra.mrb[112].mxu1 %vm1302_vm3, %v2624_v40 }
 0x30b   : > { %5371 = vmatprep.mubr.msk.bf16.mxu1 %vm5765_vm0, %v5764_v22 }
 0x312   : > { %5372 = vmatmul.mubr.msk.bf16.gmra.mrb[116].mxu1 %vm1302_vm3, %v2623_v46 }
 0x313   : > { %5411 = vmatprep.mubr.msk.bf16.mxu1 %vm5765_vm0, %v5764_v22 }
 0x345   : > { %v2480_v54 = vpop.f32.mrb[60].mxu1 }
 0x346   : > { %v5313_v60 = vpop.f32.mrb[61].mxu1 }
 0x347   : > { %v2483_v1 = vpop.f32.mrb[62].mxu1 }
 0x348   : > { %v5314_v48 = vpop.f32.mrb[63].mxu1 }
 0x35d   : > { %v2488_v62 = vpop.f32.mrb[64].mxu1 }
 0x35e   : > { %v5317_v31 = vpop.f32.mrb[65].mxu1 }
 0x35f   : > { %v2491_v15 = vpop.f32.mrb[66].mxu1 }
 0x360   : > { %v5318_v58 = vpop.f32.mrb[67].mxu1 }
 0x375   : > { %v2496_v63 = vpop.f32.mrb[68].mxu1 }
 0x376   : > { %v5321_v29 = vpop.f32.mrb[69].mxu1 }
 0x377   : > { %v2499_v6 = vpop.f32.mrb[70].mxu1 }
 0x378   : > { %v5322_v33 = vpop.f32.mrb[71].mxu1 }
 0x38d   : > { %v2504_v2 = vpop.f32.mrb[72].mxu1 }
 0x38e   : > { %v5325_v28 = vpop.f32.mrb[73].mxu1 }
 0x38f   : > { %v2507_v27 = vpop.f32.mrb[74].mxu1 }
 0x390   : > { %v5326_v4 = vpop.f32.mrb[75].mxu1 }
 0x395   : > { %v2512_v43 = vpop.f32.mrb[76].mxu1 }
 0x396   : > { %v5329_v38 = vpop.f32.mrb[77].mxu1 }
 0x397   : > { %v2515_v30 = vpop.f32.mrb[78].mxu1 }
 0x398   : > { %v5330_v14 = vpop.f32.mrb[79].mxu1 }
 0x39d   : > { %v2569_v47 = vpop.f32.mrb[80].mxu1 }
 0x39e   : > { %v2570_v5 = vadd.f32 %v2569_v47, %v2480_v54  ;;  %v5335_v51 = vpop.f32.mrb[81].mxu1 }
 0x39f   : > { %v2572_v12 = vpop.f32.mrb[82].mxu1 }
 0x3a0   : > { %v2573_v18 = vadd.f32 %v2572_v12, %v2483_v1  ;;  %v5336_v3 = vpop.f32.mrb[83].mxu1 }
 0x3a5   : > { %v2577_v44 = vpop.f32.mrb[84].mxu1 }
 0x3a6   : > { %v2578_v53 = vadd.f32 %v2577_v44, %v2488_v62  ;;  %v5339_v39 = vpop.f32.mrb[85].mxu1 }
 0x3a7   : > { %v2580_v25 = vpop.f32.mrb[86].mxu1 }
 0x3a8   : > { %v2581_v52 = vadd.f32 %v2580_v25, %v2491_v15  ;;  %v5340_v16 = vpop.f32.mrb[87].mxu1 }
 0x3ad   : > { %v2585_v45 = vpop.f32.mrb[88].mxu1 }
 0x3ae   : > { %v2586_v13 = vadd.f32 %v2585_v45, %v2496_v63  ;;  %v5343_v57 = vpop.f32.mrb[89].mxu1 }
 0x3af   : > { %v2588_v41 = vpop.f32.mrb[90].mxu1 }
 0x3b0   : > { %v2589_v56 = vadd.f32 %v2588_v41, %v2499_v6  ;;  %v5344_v49 = vpop.f32.mrb[91].mxu1 }
 0x3b5   : > { %v2593_v32 = vpop.f32.mrb[92].mxu1 }
 0x3b6   : > { %v2594_v7 = vadd.f32 %v2593_v32, %v2504_v2  ;;  %v5347_v0 = vpop.f32.mrb[93].mxu1 }
 0x3b7   : > { %v2596_v61 = vpop.f32.mrb[94].mxu1 }
 0x3b8   : > { %v2597_v21 = vadd.f32 %v2596_v61, %v2507_v27  ;;  %v5348_v59 = vpop.f32.mrb[95].mxu1 }
 0x3bd   : > { %v2601_v8 = vpop.f32.mrb[96].mxu1 }
 0x3be   : > { %v6826_v36 = vadd.f32 %v2601_v8, %v2512_v43  ;;  %v5351_v34 = vpop.f32.mrb[97].mxu1 }
 0x3bf   : > { %v2604_v42 = vpop.f32.mrb[98].mxu1 }
 0x3c0   : > { %v6828_v9 = vadd.f32 %v2604_v42, %v2515_v30  ;;  %v5352_v19 = vpop.f32.mrb[99].mxu1 }
 0x3c5   : > { %v2680_v17 = vpop.f32.mrb[100].mxu1 }
 0x3c6   : > { %v2719_v55 = vadd.f32 %v2680_v17, %v2570_v5  ;;  %v5357_v35 = vpop.f32.mrb[101].mxu1  ;;  %v5680_v17 = vld [vmem:[%s7288_s7 + $0x48] sm:$0xff]  }
 0x3c7   : > { %v2683_v37 = vpop.f32.mrb[102].mxu1 }
 0x3c8   : > { %v2736_v46 = vadd.f32 %v6833_v50, %v2719_v55  ;;  %v2720_v40 = vadd.f32 %v2683_v37, %v2573_v18  ;;  %v5358_v23 = vpop.f32.mrb[103].mxu1 }
 0x3ca   : > { %v2746_v54 = vmax.f32 %v2736_v46, 0.0  ;;  %v2737_v60 = vadd.f32 %v6833_v50, %v2720_v40 }
 0x3cc   : > { %2757 = vst.msk [vmem:[#allocation5] sm:$0xff] %vm2756_vm7, %v2746_v54  ;;  %v2747_v1 = vmax.f32 %v2737_v60, 0.0 }
 0x3cd   : > { %v2688_v48 = vpop.f32.mrb[104].mxu1 }
 0x3ce   : > { %2758 = vst.msk [vmem:[#allocation5 + $0x8] sm:$0xff] %vm2756_vm7, %v2747_v1  ;;  %v2721_v11 = vadd.f32 %v2688_v48, %v2578_v53  ;;  %v5361_v20 = vpop.f32.mrb[105].mxu1 }
 0x3cf   : > { %v2691_v24 = vpop.f32.mrb[106].mxu1 }
 0x3d0   : > { %v2738_v10 = vadd.f32 %v6833_v50, %v2721_v11  ;;  %v2722_v26 = vadd.f32 %v2691_v24, %v2581_v52  ;;  %v5362_v62 = vpop.f32.mrb[107].mxu1 }
 0x3d2   : > { %v2748_v31 = vmax.f32 %v2738_v10, 0.0  ;;  %v2739_v15 = vadd.f32 %v6833_v50, %v2722_v26  ;;  %v5682_v10 = vld [vmem:[%s7288_s7 + $0x58] sm:$0xff]  }
 0x3d3   : > { %v2768_v29 = vld [vmem:[#allocation5] sm:$0xff] }
 0x3d4   : > { %2759 = vst.msk [vmem:[#allocation5 + $0x10] sm:$0xff] %vm2756_vm7, %v2748_v31  ;;  %v2749_v58 = vmax.f32 %v2739_v15, 0.0 }
 0x3d5   : > { %v2696_v63 = vpop.f32.mrb[108].mxu1  ;;  %v2769_v6 = vld [vmem:[#allocation5 + $0x8] sm:$0xff] }
 0x3d6   : > { %2760 = vst.msk [vmem:[#allocation5 + $0x18] sm:$0xff] %vm2756_vm7, %v2749_v58  ;;  %v2723_v33 = vadd.f32 %v2696_v63, %v2586_v13  ;;  %v5365_v2 = vpop.f32.mrb[109].mxu1  ;;  %v6843_v28 = vpack.c.bf16 %v2769_v6, %v2768_v29 }
 0x3d7   : > { %v2699_v27 = vpop.f32.mrb[110].mxu1 }
 0x3d8   : > { %v2740_v4 = vadd.f32 %v6833_v50, %v2723_v33  ;;  %v2724_v43 = vadd.f32 %v2699_v27, %v2589_v56  ;;  %v5366_v38 = vpop.f32.mrb[111].mxu1  ;;  %5412 = vmatmul.mubr.msk.bf16.vlgmr.msra.gmra.mrb[120].mxu1 %vm2756_vm7, %v6843_v28  ;;  %v2803_v47 = vshll.u32 %v6843_v28, 16  ;;  %v2801_v13 = vshrl.u32 %v6843_v28, 16 }
 0x3d9   : > { %5415 = vmatprep.mubr.msk.bf16.mxu1 %vm5765_vm0, %v5764_v22 }
 0x3da   : > { %v2750_v30 = vmax.f32 %v2740_v4, 0.0  ;;  %v2741_v14 = vadd.f32 %v6833_v50, %v2724_v43  ;;  %v2805_v39 = vrot.slane %v2803_v47, 1  ;;  %v3072_v47 = vrot.slane %v6843_v28, 1 }
 0x3db   : > { %v2770_v12 = vld [vmem:[#allocation5 + $0x10] sm:$0xff] }
 0x3dc   : > { %2761 = vst.msk [vmem:[#allocation5 + $0x20] sm:$0xff] %vm2756_vm7, %v2750_v30  ;;  %v2751_v5 = vmax.f32 %v2741_v14, 0.0  ;;  %v2806_v49 = vor.u32 %v2805_v39, %v2801_v13  ;;  %v5684_v39 = vld [vmem:[%s7290_s9 + $0x28] sm:$0xff]  }
 0x3dd   : > { %v2704_v51 = vpop.f32.mrb[112].mxu1  ;;  %v2771_v18 = vld [vmem:[#allocation5 + $0x18] sm:$0xff] }
 0x3de   : > { %2762 = vst.msk [vmem:[#allocation5 + $0x28] sm:$0xff] %vm2756_vm7, %v2751_v5  ;;  %v2725_v3 = vadd.f32 %v2704_v51, %v2594_v7  ;;  %v5369_v44 = vpop.f32.mrb[113].mxu1  ;;  %v6854_v53 = vpack.c.bf16 %v2771_v18, %v2770_v12  ;;  %v5679_v7 = vld [vmem:[%s7288_s7 + $0x40] sm:$0xff]  }
 0x3df   : > { %v2707_v25 = vpop.f32.mrb[114].mxu1 }
 0x3e0   : > { %v2742_v52 = vadd.f32 %v6833_v50, %v2725_v3  ;;  %v2726_v16 = vadd.f32 %v2707_v25, %v2597_v21  ;;  %v5370_v45 = vpop.f32.mrb[115].mxu1  ;;  %5416 = vmatmul.mubr.msk.bf16.gmra.mrb[124].mxu1 %vm2756_vm7, %v6854_v53  ;;  %v2808_v57 = vshll.u32 %v6854_v53, 16  ;;  %v3073_v14 = vrot.slane %v6854_v53, 1  ;;  %v5685_v25 = vld [vmem:[%s7290_s9 + $0x30] sm:$0xff]  }
 0x3e1   : > { %5419 = vmatprep.mubr.msk.bf16.mxu1 %vm5765_vm0, %v5764_v22 }
 0x3e2   : > { %v2752_v41 = vmax.f32 %v2742_v52, 0.0  ;;  %v2743_v56 = vadd.f32 %v6833_v50, %v2726_v16  ;;  %v2810_v32 = vrot.slane %v2808_v57, 1  ;;  %v3074_v5 = vsel %vm918_vm1, %v3072_v47, %v3073_v14  ;;  %v5686_v52 = vld [vmem:[%s7290_s9 + $0x38] sm:$0xff]   ;;  %v6954_v16 = vld [vmem:[%s7290_s9] sm:$0xff]  }
 0x3e3   : > { %v2772_v59 = vld [vmem:[#allocation5 + $0x20] sm:$0xff] }
 0x3e4   : > { %2763 = vst.msk [vmem:[#allocation5 + $0x30] sm:$0xff] %vm2756_vm7, %v2752_v41  ;;  %v2753_v0 = vmax.f32 %v2743_v56, 0.0  ;;  %v2811_v61 = vsel %vm1384_vm4, %v2806_v49, %v2810_v32 }
 0x3e5   : > { %v2712_v21 = vpop.f32.mrb[116].mxu1  ;;  %5384 = vmatmul.mubr.msk.bf16.vlgmr.msra.gmra.mrb[120].mxu0 %vm2756_vm7, %v2811_v61  ;;  %v2773_v8 = vld [vmem:[#allocation5 + $0x28] sm:$0xff] }
 0x3e6   : > { %2764 = vst.msk [vmem:[#allocation5 + $0x38] sm:$0xff] %vm2756_vm7, %v2753_v0  ;;  %v2727_v34 = vadd.f32 %v2712_v21, %v6826_v36  ;;  %5432 = vmatpush3.bf16.msra.mxu0 %v5679_v7  ;;  %v5373_v42 = vpop.f32.mrb[117].mxu1  ;;  %v6872_v19 = vpack.c.bf16 %v2773_v8, %v2772_v59  ;;  %5387 = vmatprep.mubr.msk.bf16.mxu0 %vm5765_vm0, %v5764_v22  ;;  %v2812_v36 = vshrl.u32 %v6854_v53, 16  ;;  %v5683_v53 = vld [vmem:[%s7290_s9 + $0x20] sm:$0xff]  }
 0x3e7   : > { %v2715_v55 = vpop.f32.mrb[118].mxu1  ;;  %5433 = vmatprep.subr.bf16.mxu0 %v5764_v22  ;;  %5459 = vmatprep.subr.bf16.mxu1 %v5683_v53 }
 0x3e8   : > { %v2744_v35 = vadd.f32 %v6833_v50, %v2727_v34  ;;  %v2728_v37 = vadd.f32 %v2715_v55, %v6828_v9  ;;  %v5374_v46 = vpop.f32.mrb[119].mxu1  ;;  %5420 = vmatmul.mubr.msk.bf16.gmra.mrb[128].mxu1 %vm2756_vm7, %v6872_v19  ;;  %v2816_v40 = vshll.u32 %v6872_v19, 16  ;;  %v2814_v60 = vor.u32 %v2812_v36, %v2810_v32  ;;  %v5681_v9 = vld [vmem:[%s7288_s7 + $0x50] sm:$0xff]  }
 0x3e9   : > { %5423 = vmatprep.mubr.msk.bf16.mxu1 %vm5765_vm0, %v5764_v22  ;;  %v2820_v26 = vshrl.u32 %v6872_v19, 16  ;;  %v3075_v51 = vrot.slane %v6872_v19, 1  ;;  %5460 = vmatpush3.bf16.msra.mxu1 %v5683_v53 }
 0x3ea   : > { %v2754_v23 = vmax.f32 %v2744_v35, 0.0  ;;  %v2745_v54 = vadd.f32 %v6833_v50, %v2728_v37  ;;  %v2818_v1 = vrot.slane %v2816_v40, 1  ;;  %5434 = vmatpush3.bf16.msra.mxu0 %v5680_v17  ;;  %5461 = vmatprep.subr.bf16.mxu1 %v5684_v39 }
 0x3eb   : > { %5435 = vmatprep.subr.bf16.mxu0 %v5764_v22  ;;  %v2774_v20 = vld [vmem:[#allocation5 + $0x30] sm:$0xff]  ;;  %v3076_v12 = vsel %vm918_vm1, %v3073_v14, %v3075_v51 }
 0x3ec   : > { %2765 = vst.msk [vmem:[#allocation5 + $0x40] sm:$0xff] %vm2756_vm7, %v2754_v23  ;;  %v2755_v48 = vmax.f32 %v2745_v54, 0.0  ;;  %v2819_v11 = vsel %vm1384_vm4, %v2814_v60, %v2818_v1  ;;  %v2822_v31 = vor.u32 %v2820_v26, %v2818_v1 }
 0x3ed   : > { %5388 = vmatmul.mubr.msk.bf16.gmra.mrb[124].mxu0 %vm2756_vm7, %v2819_v11  ;;  %v2775_v24 = vld [vmem:[#allocation5 + $0x38] sm:$0xff]  ;;  %5462 = vmatpush3.bf16.msra.mxu1 %v5684_v39 }
 0x3ee   : > { %2767 = vst.msk [vmem:[#allocation5 + $0x48] sm:$0x1f] %vm2766_vm8, %v2755_v48  ;;  %v2781_v50 = vpack.c.bf16 %v2775_v24, %v2774_v20  ;;  %5391 = vmatprep.mubr.msk.bf16.mxu0 %vm5765_vm0, %v5764_v22  ;;  %5436 = vmatpush3.bf16.msra.mxu0 %v5681_v9 }
 0x3ef   : > { %5437 = vmatprep.subr.bf16.mxu0 %v5764_v22  ;;  %5463 = vmatprep.subr.bf16.mxu1 %v5685_v25 }
 0x3f0   : > { %5424 = vmatmul.mubr.msk.bf16.gmra.mrb[132].mxu1 %vm2756_vm7, %v2781_v50  ;;  %v2824_v62 = vshll.u32 %v2781_v50, 16  ;;  %v2828_v33 = vshrl.u32 %v2781_v50, 16  ;;  %v3077_v18 = vrot.slane %v2781_v50, 1 }
 0x3f1   : > { %5427 = vmatprep.mubr.msk.bf16.mxu1 %vm5765_vm0, %v5764_v22  ;;  %5464 = vmatpush3.bf16.msra.mxu1 %v5685_v25 }
 0x3f2   : > { %v2826_v15 = vrot.slane %v2824_v62, 1  ;;  %5438 = vmatpush3.bf16.msra.mxu0 %v5682_v10  ;;  %v3078_v3 = vsel %vm918_vm1, %v3075_v51, %v3077_v18  ;;  %5465 = vmatprep.subr.bf16.mxu1 %v5686_v52 }
 0x3f3   : > { %v2776_v63 = vld [vmem:[#allocation5 + $0x40] sm:$0xff] }
 0x3f4   : > { %v2827_v58 = vsel %vm1384_vm4, %v2822_v31, %v2826_v15  ;;  %v2830_v27 = vor.u32 %v2828_v33, %v2826_v15 }
 0x3f5   : > { %5392 = vmatmul.mubr.msk.bf16.gmra.mrb[128].mxu0 %vm2756_vm7, %v2827_v58  ;;  %v2777_v29 = vld [vmem:[#allocation5 + $0x48] sm:$0x1f]  ;;  %5466 = vmatpush3.bf16.msra.mxu1 %v5686_v52 }
 0x3f6   : > { %v2782_v6 = vpack.c.bf16 %v2777_v29, %v2776_v63  ;;  %5395 = vmatprep.mubr.msk.bf16.mxu0 %vm5765_vm0, %v5764_v22  ;;  %5471 = vmatprep.subr.bf16.mxu1 %v6954_v16 }
 0x3f8   : > { %5428 = vmatmul.mubr.msk.bf16.gmra.mrb[136].mxu1 %vm2756_vm7, %v2782_v6  ;;  %v2832_v2 = vshll.u32 %v2782_v6, 16  ;;  %v2836_v38 = vshrl.u32 %v2782_v6, 16  ;;  %v3079_v28 = vrot.slane %v2782_v6, 1 }
 0x3fa   : > { %v2834_v4 = vrot.slane %v2832_v2, 1  ;;  %v3080_v44 = vsel %vm918_vm1, %v3077_v18, %v3079_v28 }
 0x3fc   : > { %v2835_v43 = vsel %vm1384_vm4, %v2830_v27, %v2834_v4  ;;  %v2838_v30 = vor.u32 %v2836_v38, %v2834_v4 }
 0x3fd   : > { %5396 = vmatmul.mubr.msk.bf16.gmra.mrb[132].mxu0 %vm2756_vm7, %v2835_v43 }
 0x3fe   : > { %5399 = vmatprep.mubr.msk.bf16.mxu0 %vm5765_vm0, %v5764_v22 }
 0x405   : > { %5400 = vmatmul.mubr.msk.bf16.gmra.mrb[136].mxu0 %vm2756_vm7, %v2838_v30 }
 0x406   : > { %5439 = vmatprep.mubr.msk.bf16.mxu0 %vm5765_vm0, %v5764_v22 }
 0x40d   : > { %5440 = vmatmul.mubr.msk.bf16.vlgmr.msra.gmra.mrb[140].mxu0 %vm2756_vm7, %v3074_v5  ;;  %v6964_v5 = vld [vmem:[%s7289_s8] ss:$0 sm:$0xff] }
 0x40e   : > { %5443 = vmatprep.mubr.msk.bf16.mxu0 %vm5765_vm0, %v5764_v22 }
 0x415   : > { %5444 = vmatmul.mubr.msk.bf16.gmra.mrb[144].mxu0 %vm2756_vm7, %v3076_v12 }
 0x416   : > { %5447 = vmatprep.mubr.msk.bf16.mxu0 %vm5765_vm0, %v5764_v22 }
 0x41d   : > { %5448 = vmatmul.mubr.msk.bf16.gmra.mrb[148].mxu0 %vm2756_vm7, %v3078_v3 }
 0x41e   : > { %5451 = vmatprep.mubr.msk.bf16.mxu0 %vm5765_vm0, %v5764_v22 }
 0x425   : > { %5452 = vmatmul.mubr.msk.bf16.gmra.mrb[152].mxu0 %vm2756_vm7, %v3080_v44 }
 0x426   : > { %5455 = vmatprep.mubr.msk.bf16.mxu0 %vm5765_vm0, %v5764_v22 }
 0x42d   : > { %5456 = vmatmul.mubr.msk.bf16.gmra.mrb[156].mxu0 %vm2756_vm7, %v3079_v28 }
 0x4ab   : > { %v3019_v45 = vpop.f32.mrb[120].mxu1 }
 0x4ac   : > { %v5413_v13 = vpop.f32.mrb[121].mxu1 }
 0x4ad   : > { %v3022_v57 = vpop.f32.mrb[122].mxu1 }
 0x4ae   : > { %v5414_v41 = vpop.f32.mrb[123].mxu1 }
 0x4b3   : > { %v3027_v56 = vpop.f32.mrb[124].mxu1 }
 0x4b4   : > { %v5417_v49 = vpop.f32.mrb[125].mxu1 }
 0x4b5   : > { %v3030_v32 = vpop.f32.mrb[126].mxu1 }
 0x4b6   : > { %v5418_v7 = vpop.f32.mrb[127].mxu1 }
 0x4b8   : > { %v2912_v0 = vpop.f32.mrb[120].mxu0 }
 0x4b9   : > { %v3020_v61 = vadd.f32 %v3019_v45, %v2912_v0  ;;  %v5385_v21 = vpop.f32.mrb[121].mxu0 }
 0x4ba   : > { %v2915_v59 = vpop.f32.mrb[122].mxu0 }
 0x4bb   : > { %v3023_v8 = vadd.f32 %v3022_v57, %v2915_v59  ;;  %v5386_v34 = vpop.f32.mrb[123].mxu0  ;;  %v3035_v42 = vpop.f32.mrb[128].mxu1 }
 0x4bc   : > { %v5421_v19 = vpop.f32.mrb[129].mxu1 }
 0x4bd   : > { %v3038_v17 = vpop.f32.mrb[130].mxu1 }
 0x4be   : > { %v5422_v55 = vpop.f32.mrb[131].mxu1 }
 0x4c0   : > { %v2920_v35 = vpop.f32.mrb[124].mxu0 }
 0x4c1   : > { %v3028_v37 = vadd.f32 %v3027_v56, %v2920_v35  ;;  %v5389_v46 = vpop.f32.mrb[125].mxu0 }
 0x4c2   : > { %v2923_v36 = vpop.f32.mrb[126].mxu0 }
 0x4c3   : > { %v3031_v40 = vadd.f32 %v3030_v32, %v2923_v36  ;;  %v5390_v23 = vpop.f32.mrb[127].mxu0  ;;  %v3043_v54 = vpop.f32.mrb[132].mxu1 }
 0x4c4   : > { %v5425_v60 = vpop.f32.mrb[133].mxu1 }
 0x4c5   : > { %v3046_v1 = vpop.f32.mrb[134].mxu1 }
 0x4c6   : > { %v5426_v9 = vpop.f32.mrb[135].mxu1 }
 0x4c8   : > { %v2928_v48 = vpop.f32.mrb[128].mxu0 }
 0x4c9   : > { %v3036_v11 = vadd.f32 %v3035_v42, %v2928_v48  ;;  %v5393_v20 = vpop.f32.mrb[129].mxu0 }
 0x4ca   : > { %v2931_v24 = vpop.f32.mrb[130].mxu0 }
 0x4cb   : > { %v3039_v50 = vadd.f32 %v3038_v17, %v2931_v24  ;;  %v5394_v10 = vpop.f32.mrb[131].mxu0  ;;  %v3051_v26 = vpop.f32.mrb[136].mxu1 }
 0x4cc   : > { %v5429_v62 = vpop.f32.mrb[137].mxu1 }
 0x4cd   : > { %v3054_v31 = vpop.f32.mrb[138].mxu1 }
 0x4ce   : > { %v5430_v15 = vpop.f32.mrb[139].mxu1 }
 0x4d0   : > { %v2936_v58 = vpop.f32.mrb[132].mxu0 }
 0x4d1   : > { %v3044_v63 = vadd.f32 %v3043_v54, %v2936_v58  ;;  %v5397_v29 = vpop.f32.mrb[133].mxu0 }
 0x4d2   : > { %v2939_v6 = vpop.f32.mrb[134].mxu0 }
 0x4d3   : > { %v3047_v33 = vadd.f32 %v3046_v1, %v2939_v6  ;;  %v5398_v2 = vpop.f32.mrb[135].mxu0 }
 0x4d8   : > { %v2944_v27 = vpop.f32.mrb[136].mxu0 }
 0x4d9   : > { %v6957_v4 = vadd.f32 %v3051_v26, %v2944_v27  ;;  %v5401_v43 = vpop.f32.mrb[137].mxu0 }
 0x4da   : > { %v2947_v38 = vpop.f32.mrb[138].mxu0 }
 0x4db   : > { %v6959_v30 = vadd.f32 %v3054_v31, %v2947_v38  ;;  %v5402_v14 = vpop.f32.mrb[139].mxu0 }
 0x4e0   : > { %v3154_v47 = vpop.f32.mrb[140].mxu0 }
 0x4e1   : > { %v3193_v51 = vadd.f32 %v3154_v47, %v3020_v61  ;;  %v5441_v12 = vpop.f32.mrb[141].mxu0 }
 0x4e2   : > { %v3157_v18 = vpop.f32.mrb[142].mxu0 }
 0x4e3   : > { %v3210_v3 = vadd.f32 %v6964_v5, %v3193_v51  ;;  %v3194_v28 = vadd.f32 %v3157_v18, %v3023_v8  ;;  %v5442_v44 = vpop.f32.mrb[143].mxu0 }
 0x4e5   : > { %v3220_v53 = vmax.f32 %v3210_v3, 0.0  ;;  %v3211_v39 = vadd.f32 %v6964_v5, %v3194_v28 }
 0x4e7   : > { %3230 = vst.msk [vmem:[#allocation6] sm:$0xff] %vm2756_vm7, %v3220_v53  ;;  %v3221_v25 = vmax.f32 %v3211_v39, 0.0 }
 0x4e8   : > { %v3162_v52 = vpop.f32.mrb[144].mxu0 }
 0x4e9   : > { %3231 = vst.msk [vmem:[#allocation6 + $0x8] sm:$0xff] %vm2756_vm7, %v3221_v25  ;;  %v3195_v45 = vadd.f32 %v3162_v52, %v3028_v37  ;;  %v5445_v13 = vpop.f32.mrb[145].mxu0 }
 0x4ea   : > { %v3165_v57 = vpop.f32.mrb[146].mxu0 }
 0x4eb   : > { %v3212_v41 = vadd.f32 %v6964_v5, %v3195_v45  ;;  %v3196_v56 = vadd.f32 %v3165_v57, %v3031_v40  ;;  %v5446_v49 = vpop.f32.mrb[147].mxu0 }
 0x4ed   : > { %v3222_v32 = vmax.f32 %v3212_v41, 0.0  ;;  %v3213_v7 = vadd.f32 %v6964_v5, %v3196_v56 }
 0x4ef   : > { %3232 = vst.msk [vmem:[#allocation6 + $0x10] sm:$0xff] %vm2756_vm7, %v3222_v32  ;;  %v3223_v0 = vmax.f32 %v3213_v7, 0.0 }
 0x4f0   : > { %v3170_v61 = vpop.f32.mrb[148].mxu0 }
 0x4f1   : > { %3233 = vst.msk [vmem:[#allocation6 + $0x18] sm:$0xff] %vm2756_vm7, %v3223_v0  ;;  %v3197_v21 = vadd.f32 %v3170_v61, %v3036_v11  ;;  %v5449_v59 = vpop.f32.mrb[149].mxu0 }
 0x4f2   : > { %v3173_v8 = vpop.f32.mrb[150].mxu0 }
 0x4f3   : > { %v3214_v34 = vadd.f32 %v6964_v5, %v3197_v21  ;;  %v3198_v42 = vadd.f32 %v3173_v8, %v3039_v50  ;;  %v5450_v19 = vpop.f32.mrb[151].mxu0  ;;  %v5688_v8 = vld [vmem:[%s7290_s9 + $0x8] sm:$0xff]  }
 0x4f4   : > { %v5691_v19 = vld [vmem:[%s7290_s9 + $0x40] sm:$0xff]  }
 0x4f5   : > { %v3224_v17 = vmax.f32 %v3214_v34, 0.0  ;;  %v3215_v55 = vadd.f32 %v6964_v5, %v3198_v42  ;;  %v5689_v34 = vld [vmem:[%s7290_s9 + $0x10] sm:$0xff]   ;;  %v5690_v42 = vld [vmem:[%s7290_s9 + $0x18] sm:$0xff]  }
 0x4f6   : > { %v3241_v35 = vld [vmem:[#allocation6] ss:$3 sm:$0xff]  ;;  %v3249_v37 = vld [vmem:[#allocation6 + $0x1] ss:$3 sm:$0xff]  ;;  %v3261_v40 = vld [vmem:[#allocation6 + $0x2] ss:$3 sm:$0xff] }
 0x4f7   : > { %v3256_v46 = vmax.f32 %v3241_v35, %v3249_v37  ;;  %3234 = vst.msk [vmem:[#allocation6 + $0x20] sm:$0xff] %vm2756_vm7, %v3224_v17  ;;  %v3225_v36 = vmax.f32 %v3215_v55, 0.0  ;;  %v5692_v55 = vld [vmem:[%s7290_s9 + $0x48] sm:$0xff]   ;;  %v5693_v37 = vld [vmem:[%s7290_s9 + $0x50] sm:$0xff]  }
 0x4f8   : > { %v3178_v23 = vpop.f32.mrb[152].mxu0 }
 0x4f9   : > { %v3268_v54 = vmax.f32 %v3256_v46, %v3261_v40  ;;  %3235 = vst.msk [vmem:[#allocation6 + $0x28] sm:$0xff] %vm2756_vm7, %v3225_v36  ;;  %v3199_v60 = vadd.f32 %v3178_v23, %v3044_v63  ;;  %v5453_v1 = vpop.f32.mrb[153].mxu0  ;;  %v5694_v46 = vld [vmem:[%s7290_s9 + $0x58] sm:$0xff]   ;;  %v5695_v36 = vld [vmem:[%s7292_s11 + $0x40] sm:$0xff]   ;;  %v5697_v23 = vld [vmem:[%s7292_s11 + $0x48] sm:$0xff]  }
 0x4fa   : > { %v3181_v9 = vpop.f32.mrb[154].mxu0  ;;  %v5696_v40 = vld [vmem:[%s7292_s11] sm:$0xff]   ;;  %5495 = vmatprep.subr.bf16.mxu0 %v5695_v36  ;;  %v5700_v1 = vld [vmem:[%s7292_s11 + $0x10] sm:$0xff]  }
 0x4fb   : > { %3272 = vst.msk [vmem:[#allocation7] sm:$0xff] %vm2756_vm7, %v3268_v54  ;;  %v3216_v48 = vadd.f32 %v6964_v5, %v3199_v60  ;;  %v3200_v11 = vadd.f32 %v3181_v9, %v3047_v33  ;;  %v5454_v20 = vpop.f32.mrb[155].mxu0  ;;  %v5698_v54 = vld [vmem:[%s7292_s11 + $0x8] sm:$0xff]   ;;  %5496 = vmatpush3.bf16.msra.mxu0 %v5695_v36  ;;  %v5699_v60 = vld [vmem:[%s7292_s11 + $0x50] sm:$0xff]   ;;  %v5701_v9 = vld [vmem:[%s7292_s11 + $0x18] sm:$0xff]  }
 0x4fc   : > { %5497 = vmatprep.subr.bf16.mxu0 %v5697_v23  ;;  %v5704_v20 = vld [vmem:[%s7292_s11 + $0x60] sm:$0xff]   ;;  %v5718_v36 = vld [vmem:[%s7292_s11 + $0xb8] sm:$0xff]  }
 0x4fd   : > { %v3226_v24 = vmax.f32 %v3216_v48, 0.0  ;;  %v3217_v50 = vadd.f32 %v6964_v5, %v3200_v11  ;;  %v5702_v48 = vld [vmem:[%s7292_s11 + $0x58] sm:$0xff]   ;;  %v5703_v11 = vld [vmem:[%s7292_s11 + $0x20] sm:$0xff]  }
 0x4ff   : > { %3236 = vst.msk [vmem:[#allocation6 + $0x30] sm:$0xff] %vm2756_vm7, %v3226_v24  ;;  %v3227_v10 = vmax.f32 %v3217_v50, 0.0  ;;  %5498 = vmatpush3.bf16.msra.mxu0 %v5697_v23  ;;  %v5705_v24 = vld [vmem:[%s7292_s11 + $0x28] sm:$0xff]  }
 0x500   : > { %v3243_v26 = vld [vmem:[#allocation6 + $0x18] ss:$3 sm:$0xff]  ;;  %v3251_v62 = vld [vmem:[#allocation6 + $0x19] ss:$3 sm:$0xff]  ;;  %v3186_v15 = vpop.f32.mrb[156].mxu0  ;;  %5499 = vmatprep.subr.bf16.mxu0 %v5699_v60 }
 0x501   : > { %v3257_v31 = vmax.f32 %v3243_v26, %v3251_v62  ;;  %3237 = vst.msk [vmem:[#allocation6 + $0x38] sm:$0xff] %vm2756_vm7, %v3227_v10  ;;  %v3263_v58 = vld [vmem:[#allocation6 + $0x1a] ss:$3 sm:$0xff]  ;;  %v3201_v63 = vadd.f32 %v3186_v15, %v6957_v4  ;;  %v5457_v29 = vpop.f32.mrb[157].mxu0  ;;  %v5707_v10 = vld [vmem:[%s7292_s11 + $0x30] sm:$0xff]  }
 0x502   : > { %v3189_v2 = vpop.f32.mrb[158].mxu0  ;;  %v3277_v25 = vld [vmem:[#allocation7] sm:$0xff]  ;;  %v5706_v50 = vld [vmem:[%s7292_s11 + $0x68] sm:$0xff]   ;;  %v5709_v62 = vld [vmem:[%s7292_s11 + $0x38] sm:$0xff]  }
 0x503   : > { %v3269_v6 = vmax.f32 %v3257_v31, %v3263_v58  ;;  %v3218_v33 = vadd.f32 %v6964_v5, %v3201_v63  ;;  %v3202_v27 = vadd.f32 %v3189_v2, %v6959_v30  ;;  %v5458_v43 = vpop.f32.mrb[159].mxu0  ;;  %5500 = vmatpush3.bf16.msra.mxu0 %v5699_v60  ;;  %v5708_v26 = vld [vmem:[%s7292_s11 + $0x70] sm:$0xff]   ;;  %v5710_v31 = vld [vmem:[%s7292_s11 + $0x78] sm:$0xff]   ;;  %v5711_v15 = vld [vmem:[%s7292_s11 + $0x80] sm:$0xff]  }
 0x504   : > { %5501 = vmatprep.subr.bf16.mxu0 %v5702_v48  ;;  %v5720_v23 = vld [vmem:[%s7294_s13 + $0x8] sm:$0xff]   ;;  %v5722_v60 = vld [vmem:[%s7294_s13 + $0x10] sm:$0xff]  }
 0x505   : > { %3273 = vst.msk [vmem:[#allocation7 + $0x8] sm:$0xff] %vm2756_vm7, %v3269_v6  ;;  %v3228_v38 = vmax.f32 %v3218_v33, 0.0  ;;  %v3219_v14 = vadd.f32 %v6964_v5, %v3202_v27 }
 0x507   : > { %3238 = vst.msk [vmem:[#allocation6 + $0x40] sm:$0xff] %vm2756_vm7, %v3228_v38  ;;  %v3229_v47 = vmax.f32 %v3219_v14, 0.0  ;;  %5502 = vmatpush3.bf16.msra.mxu0 %v5702_v48  ;;  %v5725_v48 = vld [vmem:[%s7294_s13 + $0x50] sm:$0xff]  }
 0x508   : > { %5503 = vmatprep.subr.bf16.mxu0 %v5704_v20 }
 0x509   : > { %3240 = vst.msk [vmem:[#allocation6 + $0x48] sm:$0x7] %vm3239_vm9, %v3229_v47 }
 0x50b   : > { %5504 = vmatpush3.bf16.msra.mxu0 %v5704_v20  ;;  %v5727_v20 = vld [vmem:[%s7294_s13 + $0x58] sm:$0xff]  }
 0x50c   : > { %v3278_v39 = vld [vmem:[#allocation7 + $0x8] sm:$0xff]  ;;  %5505 = vmatprep.subr.bf16.mxu0 %v5706_v50 }
 0x50d   : > { %v3281_v52 = vpack.c.bf16 %v3278_v39, %v3277_v25 }
 0x50e   : > { %v3245_v4 = vld [vmem:[#allocation6 + $0x30] ss:$3 sm:$0xff]  ;;  %v3253_v51 = vld [vmem:[#allocation6 + $0x31] ss:$3 sm:$0xff]  ;;  %v3265_v18 = vld [vmem:[#allocation6 + $0x32] ss:$3 sm:$0xff] }
 0x50f   : > { %v3258_v12 = vmax.f32 %v3245_v4, %v3253_v51  ;;  %v3303_v45 = vshll.u32 %v3281_v52, 16  ;;  %v3301_v49 = vshrl.u32 %v3281_v52, 16  ;;  %v3480_v17 = vrot.slane %v3281_v52, 1  ;;  %5506 = vmatpush3.bf16.msra.mxu0 %v5706_v50  ;;  %v4791_v51 = vld [vmem:[%s7291_s10] ss:$0 sm:$0xff] }
 0x510   : > { %v3247_v3 = vld [vmem:[#allocation6 + $0x48] ss:$3 sm:$0x1]  ;;  %v3255_v28 = vld [vmem:[#allocation6 + $0x49] ss:$3 sm:$0x1]  ;;  %5507 = vmatprep.subr.bf16.mxu0 %v5708_v26 }
 0x511   : > { %v3270_v44 = vmax.f32 %v3258_v12, %v3265_v18  ;;  %v3259_v30 = vmax.f32 %v3247_v3, %v3255_v28  ;;  %v3267_v53 = vld [vmem:[#allocation6 + $0x4a] ss:$3 sm:$0x1]  ;;  %v3305_v56 = vrot.slane %v3303_v45, 1  ;;  %v5729_v50 = vld [vmem:[%s7294_s13 + $0x60] sm:$0xff]  }
 0x513   : > { %3274 = vst.msk [vmem:[#allocation7 + $0x10] sm:$0xff] %vm2756_vm7, %v3270_v44  ;;  %v3271_v5 = vmax.f32 %v3259_v30, %v3267_v53  ;;  %v3306_v7 = vor.u32 %v3305_v56, %v3301_v49  ;;  %5508 = vmatpush3.bf16.msra.mxu0 %v5708_v26  ;;  %v5731_v26 = vld [vmem:[%s7294_s13 + $0x68] sm:$0xff]  }
 0x514   : > { %5509 = vmatprep.subr.bf16.mxu0 %v5710_v31 }
 0x515   : > { %3276 = vst.msk [vmem:[#allocation7 + $0x18] sm:$0x1] %vm3275_vm10, %v3271_v5 }
 0x517   : > { %5510 = vmatpush3.bf16.msra.mxu0 %v5710_v31  ;;  %v5733_v31 = vld [vmem:[%s7294_s13 + $0x70] sm:$0xff]  }
 0x518   : > { %5535 = vmatprep.subr.bf16.mxu0 %v5711_v15 }
 0x51a   : > { %v3279_v13 = vld [vmem:[#allocation7 + $0x10] sm:$0xff] }
 0x51c   : > { %v3280_v57 = vld [vmem:[#allocation7 + $0x18] sm:$0x1] }
 0x51d   : > { %v3282_v41 = vpack.c.bf16 %v3280_v57, %v3279_v13 }
 0x51f   : > { %v3308_v32 = vshll.u32 %v3282_v41, 16  ;;  %v3312_v61 = vshrl.u32 %v3282_v41, 16 }
 0x521   : > { %v3310_v0 = vrot.slane %v3308_v32, 1 }
 0x523   : > { %v3311_v21 = vsel %vm1384_vm4, %v3306_v7, %v3310_v0  ;;  %v3314_v59 = vor.u32 %v3312_v61, %v3310_v0 }
 0x524   : > { %5467 = vmatprep.mubr.msk.bf16.mxu1 %vm2756_vm7, %v3311_v21 }
 0x525   : > { %5468 = vmatmul.mubr.msk.bf16.vlgmr.msra.gmra.mrb[140].mxu1 %vm2756_vm7, %v3314_v59 }
 0x526   : > { %5472 = vmatpush3.bf16.msra.mxu1 %v6954_v16  ;;  %5479 = vmatprep.mubr.msk.bf16.mxu1 %vm2756_vm7, %v3281_v52  ;;  %v3481_v16 = vrot.slane %v3282_v41, 1 }
 0x527   : > { %5473 = vmatprep.subr.bf16.mxu1 %v5688_v8 }
 0x528   : > { %v3482_v35 = vsel %vm918_vm1, %v3480_v17, %v3481_v16  ;;  %v5713_v17 = vld [vmem:[%s7292_s11 + $0x90] sm:$0xff]  }
 0x52a   : > { %5474 = vmatpush3.bf16.msra.mxu1 %v5688_v8 }
 0x52b   : > { %5475 = vmatprep.subr.bf16.mxu1 %v5689_v34 }
 0x52e   : > { %5476 = vmatpush3.bf16.msra.mxu1 %v5689_v34 }
 0x52f   : > { %5477 = vmatprep.subr.bf16.mxu1 %v5690_v42 }
 0x532   : > { %5478 = vmatpush3.bf16.msra.mxu1 %v5690_v42 }
 0x533   : > { %5483 = vmatprep.subr.bf16.mxu1 %v5691_v19 }
 0x535   : > { %5480 = vmatmul.mubr.msk.bf16.vlgmr.msra.gmra.mrb[144].mxu1 %vm2756_vm7, %v3282_v41 }
 0x536   : > { %5484 = vmatpush3.bf16.msra.mxu1 %v5691_v19  ;;  %5491 = vmatprep.mubr.msk.bf16.mxu1 %vm2756_vm7, %v3482_v35  ;;  %v5712_v19 = vld [vmem:[%s7292_s11 + $0x88] sm:$0xff]   ;;  %v5715_v35 = vld [vmem:[%s7292_s11 + $0xa0] sm:$0xff]  }
 0x537   : > { %5485 = vmatprep.subr.bf16.mxu1 %v5692_v55 }
 0x53a   : > { %5486 = vmatpush3.bf16.msra.mxu1 %v5692_v55  ;;  %v5714_v55 = vld [vmem:[%s7292_s11 + $0x98] sm:$0xff]  }
 0x53b   : > { %5487 = vmatprep.subr.bf16.mxu1 %v5693_v37 }
 0x53e   : > { %5488 = vmatpush3.bf16.msra.mxu1 %v5693_v37  ;;  %v5716_v37 = vld [vmem:[%s7292_s11 + $0xa8] sm:$0xff]  }
 0x53f   : > { %5489 = vmatprep.subr.bf16.mxu1 %v5694_v46 }
 0x542   : > { %5490 = vmatpush3.bf16.msra.mxu1 %v5694_v46  ;;  %v5717_v46 = vld [vmem:[%s7292_s11 + $0xb0] sm:$0xff]  }
 0x543   : > { %5515 = vmatprep.subr.bf16.mxu1 %v5696_v40 }
 0x545   : > { %5492 = vmatmul.mubr.msk.bf16.vlgmr.msra.gmra.mrb[148].mxu1 %vm2756_vm7, %v3481_v16 }
 0x546   : > { %5516 = vmatpush3.bf16.msra.mxu1 %v5696_v40  ;;  %v5719_v40 = vld [vmem:[%s7294_s13] sm:$0xff]  }
 0x547   : > { %5517 = vmatprep.subr.bf16.mxu1 %v5698_v54 }
 0x54a   : > { %5518 = vmatpush3.bf16.msra.mxu1 %v5698_v54  ;;  %v5721_v54 = vld [vmem:[%s7294_s13 + $0x40] sm:$0xff]  }
 0x54b   : > { %5519 = vmatprep.subr.bf16.mxu1 %v5700_v1 }
 0x54e   : > { %5520 = vmatpush3.bf16.msra.mxu1 %v5700_v1  ;;  %v5723_v1 = vld [vmem:[%s7294_s13 + $0x48] sm:$0xff]  }
 0x54f   : > { %5521 = vmatprep.subr.bf16.mxu1 %v5701_v9 }
 0x552   : > { %5522 = vmatpush3.bf16.msra.mxu1 %v5701_v9  ;;  %v5724_v9 = vld [vmem:[%s7294_s13 + $0x18] sm:$0xff]  }
 0x553   : > { %5523 = vmatprep.subr.bf16.mxu1 %v5703_v11 }
 0x556   : > { %5524 = vmatpush3.bf16.msra.mxu1 %v5703_v11  ;;  %v5726_v11 = vld [vmem:[%s7294_s13 + $0x20] sm:$0xff]  }
 0x557   : > { %5525 = vmatprep.subr.bf16.mxu1 %v5705_v24 }
 0x55a   : > { %5526 = vmatpush3.bf16.msra.mxu1 %v5705_v24  ;;  %v5728_v24 = vld [vmem:[%s7294_s13 + $0x28] sm:$0xff]  }
 0x55b   : > { %5527 = vmatprep.subr.bf16.mxu1 %v5707_v10 }
 0x55e   : > { %5528 = vmatpush3.bf16.msra.mxu1 %v5707_v10  ;;  %v5730_v10 = vld [vmem:[%s7294_s13 + $0x30] sm:$0xff]  }
 0x55f   : > { %5529 = vmatprep.subr.bf16.mxu1 %v5709_v62 }
 0x562   : > { %5530 = vmatpush3.bf16.msra.mxu1 %v5709_v62  ;;  %v5732_v62 = vld [vmem:[%s7294_s13 + $0x38] sm:$0xff]  }
 0x563   : > { %5555 = vmatprep.subr.bf16.mxu1 %v5764_v22 }
 0x5f8   : > { %v5469_v58 = vpop.f32.mrb[140].mxu1 }
 0x5f9   : > { %v3379_v63 = vpop.f32.mrb[141].mxu1 }
 0x5fa   : > { %v5470_v29 = vpop.f32.mrb[142].mxu1 }
 0x5fb   : > { %v3382_v6 = vpop.f32.mrb[143].mxu1 }
 0x608   : > { %v5481_v2 = vpop.f32.mrb[144].mxu1 }
 0x609   : > { %v3464_v33 = vadd.f32 %v5481_v2, %v5469_v58  ;;  %v3455_v27 = vpop.f32.mrb[145].mxu1 }
 0x60a   : > { %v3456_v43 = vadd.f32 %v3455_v27, %v3379_v63  ;;  %v5482_v38 = vpop.f32.mrb[146].mxu1 }
 0x60b   : > { %v3458_v14 = vpop.f32.mrb[147].mxu1 }
 0x60c   : > { %v3459_v47 = vadd.f32 %v3458_v14, %v3382_v6 }
 0x618   : > { %v5493_v4 = vpop.f32.mrb[148].mxu1 }
 0x619   : > { %v3563_v12 = vadd.f32 %v5493_v4, %v3464_v33  ;;  %v3547_v18 = vpop.f32.mrb[149].mxu1 }
 0x61a   : > { %v3561_v3 = vadd.f32 %v3547_v18, %v3456_v43  ;;  %v5494_v28 = vpop.f32.mrb[150].mxu1 }
 0x61b   : > { %v3573_v44 = vadd.f32 %v4791_v51, %v3563_v12  ;;  %v3550_v30 = vpop.f32.mrb[151].mxu1 }
 0x61c   : > { %v3571_v53 = vadd.f32 %v4791_v51, %v3561_v3  ;;  %v3562_v39 = vadd.f32 %v3550_v30, %v3459_v47 }
 0x61d   : > { %v3576_v5 = vmax.f32 %v3573_v44, 0.0 }
 0x61e   : > { %v3574_v25 = vmax.f32 %v3571_v53, 0.0  ;;  %v3572_v52 = vadd.f32 %v4791_v51, %v3562_v39  ;;  %v4848_v51 = vld [vmem:[%s7293_s12] ss:$0 sm:$0xff] }
 0x61f   : > { %3579 = vst [vmem:[#allocation8 + $0x10] sm:$0x7f] %v3576_v5 }
 0x620   : > { %v3575_v45 = vmax.f32 %v3572_v52, 0.0 }
 0x622   : > { %v3583_v13 = vpack.c.bf16 %v3575_v45, %v3574_v25 }
 0x624   : > { %5531 = vmatprep.mubr.bf16.mxu1 %v3583_v13  ;;  %v3621_v57 = vshll.u32 %v3583_v13, 16  ;;  %v3619_v32 = vshrl.u32 %v3583_v13, 16  ;;  %v3846_v42 = vrot.slane %v3583_v13, 1 }
 0x626   : > { %v3582_v41 = vld [vmem:[#allocation8 + $0x10] sm:$0x7f]  ;;  %v3623_v49 = vrot.slane %v3621_v57, 1 }
 0x627   : > { %v3584_v56 = vpack.c.bf16 %v3582_v41, %v3582_v41 }
 0x628   : > { %v3624_v0 = vor.u32 %v3623_v49, %v3619_v32 }
 0x629   : > { %5532 = vmatmul.mubr.bf16.vlgmr.msra.gmra.mrb[152].mxu1 %v3584_v56  ;;  %v3626_v7 = vshll.u32 %v3584_v56, 16  ;;  %v3630_v21 = vshrl.u32 %v3584_v56, 16  ;;  %v3847_v59 = vrot.slane %v3584_v56, 1 }
 0x62a   : > { %5571 = vmatprep.mubr.msk.bf16.mxu1 %vm5765_vm0, %v5764_v22  ;;  %5556 = vmatpush3.bf16.msra.mxu1 %v5721_v54  ;;  %v5747_v54 = vld [vmem:[%s7296_s15 + $0x50] sm:$0xff]  }
 0x62b   : > { %v3628_v61 = vrot.slane %v3626_v7, 1  ;;  %v3848_v16 = vsel %vm918_vm1, %v3846_v42, %v3847_v59  ;;  %5557 = vmatprep.subr.bf16.mxu1 %v5764_v22  ;;  %v5737_v42 = vld [vmem:[%s7294_s13 + $0x90] sm:$0xff]  }
 0x62d   : > { %v3629_v8 = vsel %vm1384_vm4, %v3624_v0, %v3628_v61  ;;  %v3632_v34 = vor.u32 %v3630_v21, %v3628_v61 }
 0x62e   : > { %5511 = vmatprep.mubr.bf16.mxu0 %v3629_v8  ;;  %5558 = vmatpush3.bf16.msra.mxu1 %v5723_v1  ;;  %v5749_v1 = vld [vmem:[%s7296_s15 + $0x58] sm:$0xff]  }
 0x62f   : > { %5512 = vmatmul.mubr.bf16.vlgmr.msra.gmra.mrb[160].mxu0 %v3632_v34  ;;  %5559 = vmatprep.subr.bf16.mxu1 %v5764_v22  ;;  %v5736_v34 = vld [vmem:[%s7294_s13 + $0x88] sm:$0xff]  }
 0x630   : > { %5536 = vmatpush3.bf16.msra.mxu0 %v5711_v15  ;;  %5551 = vmatprep.mubr.bf16.mxu0 %v3848_v16  ;;  %v5734_v15 = vld [vmem:[%s7294_s13 + $0x78] sm:$0xff]   ;;  %v5739_v16 = vld [vmem:[%s7294_s13 + $0xa0] sm:$0xff]  }
 0x631   : > { %5537 = vmatprep.subr.bf16.mxu0 %v5712_v19 }
 0x632   : > { %5560 = vmatpush3.bf16.msra.mxu1 %v5725_v48 }
 0x633   : > { %5561 = vmatprep.subr.bf16.mxu1 %v5764_v22 }
 0x634   : > { %5538 = vmatpush3.bf16.msra.mxu0 %v5712_v19  ;;  %v5738_v19 = vld [vmem:[%s7294_s13 + $0x98] sm:$0xff]  }
 0x635   : > { %5539 = vmatprep.subr.bf16.mxu0 %v5713_v17 }
 0x636   : > { %5562 = vmatpush3.bf16.msra.mxu1 %v5727_v20 }
 0x637   : > { %5563 = vmatprep.subr.bf16.mxu1 %v5764_v22 }
 0x638   : > { %5540 = vmatpush3.bf16.msra.mxu0 %v5713_v17  ;;  %v5740_v17 = vld [vmem:[%s7294_s13 + $0xa8] sm:$0xff]  }
 0x639   : > { %5541 = vmatprep.subr.bf16.mxu0 %v5714_v55 }
 0x63a   : > { %5564 = vmatpush3.bf16.msra.mxu1 %v5729_v50 }
 0x63b   : > { %5565 = vmatprep.subr.bf16.mxu1 %v5764_v22 }
 0x63c   : > { %5542 = vmatpush3.bf16.msra.mxu0 %v5714_v55  ;;  %v5741_v55 = vld [vmem:[%s7294_s13 + $0xb0] sm:$0xff]  }
 0x63d   : > { %5543 = vmatprep.subr.bf16.mxu0 %v5715_v35 }
 0x63e   : > { %5566 = vmatpush3.bf16.msra.mxu1 %v5731_v26 }
 0x63f   : > { %5567 = vmatprep.subr.bf16.mxu1 %v5764_v22 }
 0x640   : > { %5544 = vmatpush3.bf16.msra.mxu0 %v5715_v35  ;;  %v5742_v35 = vld [vmem:[%s7294_s13 + $0xb8] sm:$0xff]  }
 0x641   : > { %5545 = vmatprep.subr.bf16.mxu0 %v5716_v37 }
 0x642   : > { %5568 = vmatpush3.bf16.msra.mxu1 %v5733_v31 }
 0x643   : > { %5569 = vmatprep.subr.bf16.mxu1 %v5764_v22 }
 0x644   : > { %5546 = vmatpush3.bf16.msra.mxu0 %v5716_v37 }
 0x645   : > { %5547 = vmatprep.subr.bf16.mxu0 %v5717_v46 }
 0x646   : > { %5570 = vmatpush3.bf16.msra.mxu1 %v5734_v15 }
 0x647   : > { %5595 = vmatprep.subr.bf16.mxu1 %v5764_v22 }
 0x648   : > { %5548 = vmatpush3.bf16.msra.mxu0 %v5717_v46  ;;  %v5743_v46 = vld [vmem:[%s7296_s15 + $0x40] sm:$0xff]  }
 0x649   : > { %5549 = vmatprep.subr.bf16.mxu0 %v5718_v36 }
 0x64c   : > { %5550 = vmatpush3.bf16.msra.mxu0 %v5718_v36  ;;  %v5744_v36 = vld [vmem:[%s7296_s15 + $0x20] sm:$0xff]  }
 0x64d   : > { %5575 = vmatprep.subr.bf16.mxu0 %v5764_v22 }
 0x64f   : > { %5552 = vmatmul.mubr.bf16.vlgmr.msra.gmra.mrb[164].mxu0 %v3847_v59  ;;  %v5735_v59 = vld [vmem:[%s7294_s13 + $0x80] sm:$0xff]  }
 0x650   : > { %5591 = vmatprep.mubr.msk.bf16.mxu0 %vm5765_vm0, %v5764_v22  ;;  %5576 = vmatpush3.bf16.msra.mxu0 %v5719_v40  ;;  %v5745_v40 = vld [vmem:[%s7296_s15 + $0x48] sm:$0xff]  }
 0x651   : > { %5577 = vmatprep.subr.bf16.mxu0 %v5764_v22 }
 0x654   : > { %5578 = vmatpush3.bf16.msra.mxu0 %v5720_v23  ;;  %v5746_v23 = vld [vmem:[%s7296_s15 + $0x28] sm:$0xff]  }
 0x655   : > { %5579 = vmatprep.subr.bf16.mxu0 %v5764_v22 }
 0x658   : > { %5580 = vmatpush3.bf16.msra.mxu0 %v5722_v60  ;;  %v5748_v60 = vld [vmem:[%s7296_s15 + $0x30] sm:$0xff]  }
 0x659   : > { %5581 = vmatprep.subr.bf16.mxu0 %v5764_v22 }
 0x65c   : > { %5582 = vmatpush3.bf16.msra.mxu0 %v5724_v9  ;;  %v5750_v9 = vld [vmem:[%s7296_s15 + $0x38] sm:$0xff]  }
 0x65d   : > { %5583 = vmatprep.subr.bf16.mxu0 %v5764_v22 }
 0x660   : > { %5584 = vmatpush3.bf16.msra.mxu0 %v5726_v11 }
 0x661   : > { %5585 = vmatprep.subr.bf16.mxu0 %v5764_v22 }
 0x664   : > { %5586 = vmatpush3.bf16.msra.mxu0 %v5728_v24 }
 0x665   : > { %5587 = vmatprep.subr.bf16.mxu0 %v5764_v22 }
 0x668   : > { %5588 = vmatpush3.bf16.msra.mxu0 %v5730_v10 }
 0x669   : > { %5589 = vmatprep.subr.bf16.mxu0 %v5764_v22 }
 0x66c   : > { %5590 = vmatpush3.bf16.msra.mxu0 %v5732_v62 }
 0x66d   : > { %5615 = vmatprep.subr.bf16.mxu0 %v5764_v22 }
 0x6fc   : > { %v5533_v58 = vpop.f32.mrb[152].mxu1 }
 0x6fd   : > { %v3813_v63 = vpop.f32.mrb[153].mxu1 }
 0x6fe   : > { %v5534_v29 = vpop.f32.mrb[154].mxu1 }
 0x6ff   : > { %v3816_v6 = vpop.f32.mrb[155].mxu1 }
 0x702   : > { %v5513_v2 = vpop.f32.mrb[160].mxu0 }
 0x703   : > { %v3822_v33 = vadd.f32 %v5533_v58, %v5513_v2  ;;  %v3717_v27 = vpop.f32.mrb[161].mxu0  ;;  %v4905_v58 = vld [vmem:[%s7295_s14] ss:$0 sm:$0xff] }
 0x704   : > { %v3814_v43 = vadd.f32 %v3813_v63, %v3717_v27  ;;  %v5514_v38 = vpop.f32.mrb[162].mxu0 }
 0x705   : > { %v3720_v14 = vpop.f32.mrb[163].mxu0 }
 0x706   : > { %v3817_v47 = vadd.f32 %v3816_v6, %v3720_v14 }
 0x722   : > { %v5553_v4 = vpop.f32.mrb[164].mxu0 }
 0x723   : > { %v3949_v12 = vadd.f32 %v5553_v4, %v3822_v33  ;;  %v3933_v18 = vpop.f32.mrb[165].mxu0 }
 0x724   : > { %v3947_v3 = vadd.f32 %v3933_v18, %v3814_v43  ;;  %v5554_v28 = vpop.f32.mrb[166].mxu0 }
 0x725   : > { %v3959_v44 = vadd.f32 %v4848_v51, %v3949_v12  ;;  %v3936_v30 = vpop.f32.mrb[167].mxu0  ;;  %v5751_v12 = vld [vmem:[%s7296_s15] sm:$0xff]   ;;  %v5753_v28 = vld [vmem:[%s7296_s15 + $0x10] sm:$0xff]  }
 0x726   : > { %v3957_v53 = vadd.f32 %v4848_v51, %v3947_v3  ;;  %v3948_v39 = vadd.f32 %v3936_v30, %v3817_v47  ;;  %v5752_v3 = vld [vmem:[%s7296_s15 + $0x8] sm:$0xff]  }
 0x727   : > { %v3962_v5 = vmax.f32 %v3959_v44, 0.0  ;;  %v5754_v44 = vld [vmem:[%s7296_s15 + $0x18] sm:$0xff]  }
 0x728   : > { %v3960_v25 = vmax.f32 %v3957_v53, 0.0  ;;  %v3958_v52 = vadd.f32 %v4848_v51, %v3948_v39 }
 0x729   : > { %3965 = vst [vmem:[#allocation9 + $0x10] sm:$0x1f] %v3962_v5 }
 0x72a   : > { %3963 = vst [vmem:[#allocation9] sm:$0xff] %v3960_v25  ;;  %v3961_v45 = vmax.f32 %v3958_v52, 0.0 }
 0x72c   : > { %3964 = vst [vmem:[#allocation9 + $0x8] sm:$0xff] %v3961_v45 }
 0x733   : > { %v3966_v13 = vld [vmem:[#allocation9] ss:$3 sm:$0x7f]  ;;  %v3968_v57 = vld [vmem:[#allocation9 + $0x1] ss:$3 sm:$0x7f] }
 0x734   : > { %v3969_v41 = vmax.f32 %v3966_v13, %v3968_v57  ;;  %v3971_v56 = vld [vmem:[#allocation9 + $0x2] ss:$3 sm:$0x7f] }
 0x736   : > { %v3972_v49 = vmax.f32 %v3969_v41, %v3971_v56 }
 0x738   : > { %3973 = vst [vmem:[#allocation10] sm:$0x7f] %v3972_v49  ;;  %v4937_v49 = vld [vmem:[%s7297_s16] ss:$0 sm:$0xff] }
 0x73f   : > { %v3974_v32 = vld [vmem:[#allocation10] sm:$0x7f] }
 0x740   : > { %v3975_v7 = vpack.c.bf16 %v3974_v32, %v3974_v32 }
 0x742   : > { %5592 = vmatmul.mubr.bf16.vlgmr.msra.gmra.mrb[168].mxu0 %v3975_v7  ;;  %v4012_v0 = vshll.u32 %v3975_v7, 16  ;;  %v4010_v61 = vshrl.u32 %v3975_v7, 16  ;;  %v4211_v37 = vrot.slane %v3975_v7, 1 }
 0x743   : > { %5623 = vmatprep.mubr.msk.bf16.mxu0 %vm5765_vm0, %v5764_v22  ;;  %5616 = vmatpush3.bf16.msra.mxu0 %v5744_v36 }
 0x744   : > { %v4014_v21 = vrot.slane %v4012_v0, 1  ;;  %5617 = vmatprep.subr.bf16.mxu0 %v5764_v22 }
 0x746   : > { %v4015_v8 = vor.u32 %v4014_v21, %v4010_v61 }
 0x747   : > { %5618 = vmatpush3.bf16.msra.mxu0 %v5746_v23 }
 0x748   : > { %5572 = vmatmul.mubr.bf16.vlgmr.msra.gmra.mrb[156].mxu1 %v4015_v8  ;;  %5619 = vmatprep.subr.bf16.mxu0 %v5764_v22 }
 0x749   : > { %5596 = vmatpush3.bf16.msra.mxu1 %v5735_v59  ;;  %5611 = vmatprep.mubr.msk.bf16.mxu1 %vm5765_vm0, %v5764_v22 }
 0x74a   : > { %5597 = vmatprep.subr.bf16.mxu1 %v5764_v22 }
 0x74b   : > { %5620 = vmatpush3.bf16.msra.mxu0 %v5748_v60 }
 0x74c   : > { %5621 = vmatprep.subr.bf16.mxu0 %v5764_v22 }
 0x74d   : > { %5598 = vmatpush3.bf16.msra.mxu1 %v5736_v34 }
 0x74e   : > { %5599 = vmatprep.subr.bf16.mxu1 %v5764_v22 }
 0x74f   : > { %5622 = vmatpush3.bf16.msra.mxu0 %v5750_v9 }
 0x750   : > { %5627 = vmatprep.subr.bf16.mxu0 %v5764_v22 }
 0x751   : > { %5600 = vmatpush3.bf16.msra.mxu1 %v5737_v42 }
 0x752   : > { %5601 = vmatprep.subr.bf16.mxu1 %v5764_v22 }
 0x755   : > { %5602 = vmatpush3.bf16.msra.mxu1 %v5738_v19  ;;  %v4569_v19 = vld [vmem:[%s7298_s17] sm:$0x1] }
 0x756   : > { %5603 = vmatprep.subr.bf16.mxu1 %v5764_v22 }
 0x759   : > { %5604 = vmatpush3.bf16.msra.mxu1 %v5739_v16 }
 0x75a   : > { %5605 = vmatprep.subr.bf16.mxu1 %v5764_v22 }
 0x75d   : > { %5606 = vmatpush3.bf16.msra.mxu1 %v5740_v17 }
 0x75e   : > { %5607 = vmatprep.subr.bf16.mxu1 %v5764_v22 }
 0x761   : > { %5608 = vmatpush3.bf16.msra.mxu1 %v5741_v55 }
 0x762   : > { %5609 = vmatprep.subr.bf16.mxu1 %v5764_v22 }
 0x765   : > { %5610 = vmatpush3.bf16.msra.mxu1 %v5742_v35  ;;  %v4574_v35 = vld [vmem:[#allocation14] sm:$0x1] }
 0x766   : > { %5639 = vmatprep.subr.bf16.mxu1 %v5764_v22 }
 0x768   : > { %5612 = vmatmul.mubr.bf16.vlgmr.msra.gmra.mrb[160].mxu1 %v4211_v37 }
 0x769   : > { %5647 = vmatprep.mubr.msk.bf16.mxu1 %vm5765_vm0, %v5764_v22  ;;  %5640 = vmatpush3.bf16.msra.mxu1 %v5743_v46 }
 0x76a   : > { %5641 = vmatprep.subr.bf16.mxu1 %v5764_v22 }
 0x76d   : > { %5642 = vmatpush3.bf16.msra.mxu1 %v5745_v40 }
 0x76e   : > { %5643 = vmatprep.subr.bf16.mxu1 %v5764_v22 }
 0x771   : > { %5644 = vmatpush3.bf16.msra.mxu1 %v5747_v54 }
 0x772   : > { %5645 = vmatprep.subr.bf16.mxu1 %v5764_v22 }
 0x775   : > { %5646 = vmatpush3.bf16.msra.mxu1 %v5749_v1 }
 0x815   : > { %v4187_v48 = vpop.f32.mrb[168].mxu0 }
 0x816   : > { %v5593_v11 = vpop.f32.mrb[169].mxu0 }
 0x817   : > { %v4190_v20 = vpop.f32.mrb[170].mxu0 }
 0x818   : > { %v5594_v24 = vpop.f32.mrb[171].mxu0 }
 0x81b   : > { %v4099_v50 = vpop.f32.mrb[156].mxu1 }
 0x81c   : > { %v4188_v10 = vadd.f32 %v4187_v48, %v4099_v50  ;;  %v5573_v26 = vpop.f32.mrb[157].mxu1 }
 0x81d   : > { %v4102_v62 = vpop.f32.mrb[158].mxu1 }
 0x81e   : > { %v5574_v31 = vpop.f32.mrb[159].mxu1 }
 0x83b   : > { %v4295_v15 = vpop.f32.mrb[160].mxu1 }
 0x83c   : > { %v4301_v63 = vadd.f32 %v4295_v15, %v4188_v10  ;;  %v5613_v29 = vpop.f32.mrb[161].mxu1 }
 0x83d   : > { %v4298_v6 = vpop.f32.mrb[162].mxu1 }
 0x83e   : > { %v4309_v2 = vadd.f32 %v4905_v58, %v4301_v63  ;;  %v5614_v33 = vpop.f32.mrb[163].mxu1 }
 0x840   : > { %v4310_v27 = vmax.f32 %v4309_v2, 0.0 }
 0x842   : > { %4311 = vst.msk [vmem:[#allocation11] sm:$0x1f] %vm2766_vm8, %v4310_v27 }
 0x849   : > { %v4312_v43 = vld [vmem:[#allocation11] sm:$0x1f] }
 0x84a   : > { %v4313_v38 = vpack.c.bf16 %v4312_v43, %v4312_v43 }
 0x84c   : > { %v4481_v14 = vrot.slane %v4313_v38, 1  ;;  %v4334_v47 = vshll.u32 %v4313_v38, 16  ;;  %v4332_v4 = vshrl.u32 %v4313_v38, 16 }
 0x84e   : > { %5648 = vmatmul.mubr.msk.bf16.vlgmr.msra.gmra.mrb[164].mxu1 %vm2756_vm7, %v4481_v14  ;;  %v4336_v51 = vrot.slane %v4334_v47, 1 }
 0x850   : > { %v4337_v18 = vor.u32 %v4336_v51, %v4332_v4 }
 0x852   : > { %5624 = vmatmul.mubr.msk.bf16.vlgmr.msra.gmra.mrb[172].mxu0 %vm2756_vm7, %v4337_v18 }
 0x853   : > { %5628 = vmatpush3.bf16.msra.mxu0 %v5751_v12  ;;  %5635 = vmatprep.mubr.msk.bf16.mxu0 %vm5765_vm0, %v5764_v22 }
 0x854   : > { %5629 = vmatprep.subr.bf16.mxu0 %v5764_v22 }
 0x857   : > { %5630 = vmatpush3.bf16.msra.mxu0 %v5752_v3 }
 0x858   : > { %5631 = vmatprep.subr.bf16.mxu0 %v5764_v22 }
 0x85b   : > { %5632 = vmatpush3.bf16.msra.mxu0 %v5753_v28 }
 0x85c   : > { %5633 = vmatprep.subr.bf16.mxu0 %v5764_v22 }
 0x85f   : > { %5634 = vmatpush3.bf16.msra.mxu0 %v5754_v44 }
 0x862   : > { %5636 = vmatmul.mubr.msk.bf16.vlgmr.msra.gmra.mrb[176].mxu0 %vm2756_vm7, %v4313_v38 }
 0x921   : > { %v4543_v30 = vpop.f32.mrb[164].mxu1 }
 0x922   : > { %v5649_v53 = vpop.f32.mrb[165].mxu1 }
 0x923   : > { %v4546_v39 = vpop.f32.mrb[166].mxu1 }
 0x924   : > { %v5650_v5 = vpop.f32.mrb[167].mxu1 }
 0x925   : > { %v4399_v25 = vpop.f32.mrb[172].mxu0 }
 0x926   : > { %v5625_v52 = vpop.f32.mrb[173].mxu0 }
 0x927   : > { %v4402_v45 = vpop.f32.mrb[174].mxu0 }
 0x928   : > { %v5626_v13 = vpop.f32.mrb[175].mxu0 }
 0x935   : > { %v4465_v57 = vpop.f32.mrb[176].mxu0 }
 0x936   : > { %v4466_v41 = vadd.f32 %v4465_v57, %v4399_v25  ;;  %v5637_v56 = vpop.f32.mrb[177].mxu0 }
 0x937   : > { %v4468_v32 = vpop.f32.mrb[178].mxu0 }
 0x938   : > { %v4549_v22 = vadd.f32 %v4543_v30, %v4466_v41  ;;  %v5638_v7 = vpop.f32.mrb[179].mxu0 }
 0x93a   : > { %v4557_v0 = vadd.f32 %v4937_v49, %v4549_v22 }
 0x93c   : > { %v4558_v61 = vmax.f32 %v4557_v0, 0.0 }
 0x93e   : > { %4559 = vst.msk [vmem:[#allocation12] sm:$0x7] %vm3239_vm9, %v4558_v61 }
 0x945   : > { %v4560_v21 = vld [vmem:[#allocation12] ss:$3 sm:$0x1]  ;;  %v4562_v59 = vld [vmem:[#allocation12 + $0x1] ss:$3 sm:$0x1] }
 0x946   : > { %v4563_v8 = vmax.f32 %v4560_v21, %v4562_v59  ;;  %v4565_v34 = vld [vmem:[#allocation12 + $0x2] ss:$3 sm:$0x1] }
 0x948   : > { %v4566_v42 = vmax.f32 %v4563_v8, %v4565_v34 }
 0x94a   : > { %4567 = vst.msk [vmem:[#allocation13] sm:$0x1] %vm3275_vm10, %v4566_v42 }
 0x951   : > { %v4568_v16 = vld [vmem:[#allocation13] sm:$0x1] }
 0x952   : > { %v4570_v17 = vmul.f32 %v4569_v19, %v4568_v16 }
 0x954   : > { %v4571_v55 = vsel %vm3275_vm10, %v4570_v17, 0.0 }
 0x955   : > { %4572 = vadd.xlane.f32.xlu1 %v4571_v55 }
 0x9e2   : > { %v4573_v37 = vpop.xlane.xlu1 %4572 }
 0x9e3   : > { %v4575_v46 = vadd.f32 %v4574_v35, %v4573_v37 }
 0x9e5   : > { %4577 = vst.msk [vmem:[%s600_s27] sm:$0x1] %vm4576_vm11, %v4575_v46 }
 0x9e6 PF: > { %s31_s20 = sadd.s32 1, %s5761_s20  }
 0x9e7   : > { %p28_p4 = scmp.ge.s32.totalorder %s31_s20, 4  }
 0x9e9   :  { %30 = sbr.rel (!%p28_p4) target bundleno = 5 (0x5), region = 186 }

</bundles_post_ra>
